<compile_context>
chip_gen: v7x
topology: tpu7x:2x2x1
jax: 0.10.0
libtpu: 0.0.40
codegen_flags: <defaults>
</compile_context>

<pallas_src>
import functools

import jax
import jax.numpy as jnp
import numpy as np
from jax.experimental import pallas as pl
from jax.experimental.pallas import tpu as pltpu

HID_CHANNELS = 32
KERNEL = 4
STRIDE = 2
PAD = 1
HIDDEN_DIM = 256
LATENT_DIM = 2


# ----------------------------- conv GEMM kernel ------------------------------
def _conv_gemm_kernel(w_ref, p_ref, b_ref, o_ref):
    # o = relu(W @ P + b)
    #   W: (32, K) bf16   P: (K, tm) f32 (cast to bf16 in-kernel)
    #   b: (32, 1) f32    o: (32, tm) f32   (lane-dense output)
    acc = jnp.dot(w_ref[...], p_ref[...].astype(jnp.bfloat16),
                  preferred_element_type=jnp.float32)
    acc = acc + b_ref[...]                       # (32,1) broadcast over lanes
    o_ref[...] = jnp.maximum(acc, 0.0).astype(o_ref.dtype)


def conv_gemm(w_bf16, patches, b_col):
    """relu(W @ P + b): W:(N,K) bf16, P:(K,M) f32, b:(N,1) f32 -> (N,M) f32."""
    N, K = w_bf16.shape
    K2, M = patches.shape
    assert K == K2
    # Column tile: lane-dense (multiple of 128) and >=2 grid steps on the two
    # big conv layers (megacore sharding); otherwise one full-extent block.
    if M >= 2048 and M % 1024 == 0:
        tm = 1024
    elif M >= 512 and M % 256 == 0:
        tm = 256
    else:
        tm = M
    grid = (M // tm,)
    cost = pl.CostEstimate(
        flops=2 * N * K * M,
        transcendentals=0,
        bytes_accessed=N * K * 2 + K * M * 4 + N * M * 4 + N * 4)
    return pl.pallas_call(
        _conv_gemm_kernel,
        out_shape=jax.ShapeDtypeStruct((N, M), jnp.float32),
        grid=grid,
        in_specs=[
            pl.BlockSpec((N, K), lambda i: (0, 0)),    # weights (VMEM resident)
            pl.BlockSpec((K, tm), lambda i: (0, i)),   # patch column tile
            pl.BlockSpec((N, 1), lambda i: (0, 0)),    # bias
        ],
        out_specs=pl.BlockSpec((N, tm), lambda i: (0, i)),
        compiler_params=pltpu.CompilerParams(
            dimension_semantics=("parallel",)),
        cost_estimate=cost,
    )(w_bf16, patches, b_col)


# ----------------------------- fused FC kernel --------------------------------
def _fc_fused_kernel(x_ref, w1_ref, b1_ref, w2_ref, b2_ref, w3_ref, b3_ref,
                     o_ref):
    # All three FC layers chained in VMEM; bias/ReLU in f32, matmuls in bf16.
    h = jnp.dot(x_ref[...].astype(jnp.bfloat16), w1_ref[...],
                preferred_element_type=jnp.float32)
    h = jnp.maximum(h + b1_ref[...], 0.0)
    h = jnp.dot(h.astype(jnp.bfloat16), w2_ref[...],
                preferred_element_type=jnp.float32)
    h = jnp.maximum(h + b2_ref[...], 0.0)
    out = jnp.dot(h.astype(jnp.bfloat16), w3_ref[...],
                  preferred_element_type=jnp.float32)
    o_ref[...] = (out + b3_ref[...]).astype(o_ref.dtype)


def fc_fused(feat, w1, b1, w2, b2, w3, b3):
    B = feat.shape[0]
    N3 = w3.shape[1]

    def full(shape):
        return pl.BlockSpec(shape, lambda i: (0, 0))

    return pl.pallas_call(
        _fc_fused_kernel,
        out_shape=jax.ShapeDtypeStruct((B, N3), jnp.float32),
        grid=(1,),
        in_specs=[full(feat.shape), full(w1.shape), full(b1.shape),
                  full(w2.shape), full(b2.shape), full(w3.shape),
                  full(b3.shape)],
        out_specs=full((B, N3)),
        compiler_params=pltpu.CompilerParams(
            dimension_semantics=("arbitrary",)),
    )(feat, w1, b1, w2, b2, w3, b3)


# ------------------------------- im2col glue ----------------------------------
def im2col_cbhw(x, k=KERNEL, stride=STRIDE, pad=PAD):
    """x: (C, B, H, W) -> (C*k*k, B*Ho*Wo); K-axis ordering (C, kh, kw)."""
    C, B, H, W = x.shape
    xp = jnp.pad(x, ((0, 0), (0, 0), (pad, pad), (pad, pad)))
    Ho = (H + 2 * pad - k) // stride + 1
    Wo = (W + 2 * pad - k) // stride + 1
    cols = []
    for kh in range(k):
        for kw in range(k):
            cols.append(
                xp[:, :, kh:kh + stride * Ho:stride, kw:kw + stride * Wo:stride])
    patches = jnp.stack(cols, axis=1)                   # (C, k*k, B, Ho, Wo)
    patches = patches.reshape(C * k * k, B * Ho * Wo)   # (C, kh, kw) ordering
    return patches, Ho, Wo


# ------------------------------- parameters ------------------------------------
def init_params(key, n_chan, latent_dim=LATENT_DIM):
    """PyTorch-layout parameters (Conv2d OIHW weights, Linear (out,in))."""
    def lin_init(k, out_f, in_f):
        k1, k2 = jax.random.split(k)
        bound = 1.0 / np.sqrt(in_f)
        w = jax.random.uniform(k1, (out_f, in_f), jnp.float32, -bound, bound)
        b = jax.random.uniform(k2, (out_f,), jnp.float32, -bound, bound)
        return w, b

    def conv_init(k, out_c, in_c):
        k1, k2 = jax.random.split(k)
        fan_in = in_c * KERNEL * KERNEL
        bound = 1.0 / np.sqrt(fan_in)
        w = jax.random.uniform(k1, (out_c, in_c, KERNEL, KERNEL),
                               jnp.float32, -bound, bound)
        b = jax.random.uniform(k2, (out_c,), jnp.float32, -bound, bound)
        return w, b

    keys = jax.random.split(key, 7)
    convs = [conv_init(keys[0], HID_CHANNELS, n_chan)]
    for i in range(1, 4):
        convs.append(conv_init(keys[i], HID_CHANNELS, HID_CHANNELS))
    return dict(
        convs=convs,
        lin1=lin_init(keys[4], HIDDEN_DIM, HID_CHANNELS * KERNEL * KERNEL),
        lin2=lin_init(keys[5], HIDDEN_DIM, HIDDEN_DIM),
        mu_logvar=lin_init(keys[6], latent_dim * 2, HIDDEN_DIM),
    )


def prepare_params(params):
    """One-time weight re-layout: conv -> (32, Cin*16) bf16 + (32,1) f32 bias;
    linear -> W^T bf16 + (1, out) f32 bias."""
    convs = []
    for w, b in params["convs"]:
        c_out = w.shape[0]
        convs.append((w.reshape(c_out, -1).astype(jnp.bfloat16),
                      b.reshape(c_out, 1).astype(jnp.float32)))

    def lin(wb):
        w, b = wb
        return (w.T.astype(jnp.bfloat16), b.reshape(1, -1).astype(jnp.float32))

    return dict(convs=convs, lin1=lin(params["lin1"]),
                lin2=lin(params["lin2"]), mu_logvar=lin(params["mu_logvar"]))


# ------------------------------- forward pass ----------------------------------
def encoder_burgess_forward(x, prep, latent_dim=LATENT_DIM):
    """x: (B, C, 64, 64) f32, prep = prepare_params(...) -> (mu, logvar)."""
    B = x.shape[0]
    h = jnp.transpose(x, (1, 0, 2, 3))                  # NCHW -> CBHW (once)
    for w_r, b_col in prep["convs"]:
        patches, Ho, Wo = im2col_cbhw(h)                # (Cin*16, B*Ho*Wo)
        out = conv_gemm(w_r, patches, b_col)            # (32, B*Ho*Wo)
        h = out.reshape(HID_CHANNELS, B, Ho, Wo)        # already next CBHW

    # PyTorch flatten order is (C, H, W) per batch element.
    feat = jnp.transpose(h, (1, 0, 2, 3)).reshape(B, -1)   # (B, 512)
    w1, b1 = prep["lin1"]
    w2, b2 = prep["lin2"]
    w3, b3 = prep["mu_logvar"]
    ml = fc_fused(feat, w1, b1, w2, b2, w3, b3)         # (B, 2*latent)
    ml = ml.reshape(B, latent_dim, 2)
    return ml[..., 0], ml[..., 1]


# -------------------------------- reference ------------------------------------
def reference_forward(x, params, latent_dim=LATENT_DIM):
    h = x
    for w, b in params["convs"]:
        h = jax.lax.conv_general_dilated(
            h, w, (STRIDE, STRIDE), ((PAD, PAD), (PAD, PAD)),
            dimension_numbers=("NCHW", "OIHW", "NCHW"))
        h = jax.nn.relu(h + b[None, :, None, None])
    B = x.shape[0]
    f = h.reshape(B, -1)
    w, b = params["lin1"]
    f = jax.nn.relu(f @ w.T + b)
    w, b = params["lin2"]
    f = jax.nn.relu(f @ w.T + b)
    w, b = params["mu_logvar"]
    ml = (f @ w.T + b).reshape(B, latent_dim, 2)
    return ml[..., 0], ml[..., 1]


if __name__ == "__main__":
    key = jax.random.PRNGKey(0)
    k_x, k_p = jax.random.split(key)

    # Architecture hard-wires 32*4*4 features into lin1 => 64x64 spatial input.
    batch, n_chan = 2, 1
    x = jax.random.normal(k_x, (batch, n_chan, 64, 64), dtype=jnp.float32)
    params = init_params(k_p, n_chan)
    prep = prepare_params(params)

    fwd = jax.jit(encoder_burgess_forward)
    mu, logvar = fwd(x, prep)
    mu = jax.block_until_ready(mu)
    logvar = jax.block_until_ready(logvar)

    assert mu.shape == (batch, LATENT_DIM) and logvar.shape == (batch, LATENT_DIM)

    mu_ref, logvar_ref = reference_forward(x, params)
    # bf16 MXU inputs (f32 accumulate) -> use bf16-appropriate tolerance.
    np.testing.assert_allclose(np.asarray(mu), np.asarray(mu_ref),
                               rtol=2e-2, atol=2e-2)
    np.testing.assert_allclose(np.asarray(logvar), np.asarray(logvar_ref),
                               rtol=2e-2, atol=2e-2)

    print("KERNEL_OK")
</pallas_src>

<mosaic_0001>
module attributes {stable_mosaic.version = 11 : i64} {
  func.func @_conv_gemm_kernel(%arg0: i32, %arg1: memref<32x16xbf16, #tpu.memory_space<vmem>>, %arg2: memref<16x1024xf32, #tpu.memory_space<vmem>>, %arg3: memref<32x1xf32, #tpu.memory_space<vmem>>, %arg4: memref<32x1024xf32, #tpu.memory_space<vmem>>) attributes {dimension_semantics = [#tpu.dimension_semantics<parallel>], iteration_bounds = array<i64: 2>, scalar_prefetch = 0 : i64, scratch_operands = 0 : i64, tpu.core_type = #tpu.core_type<tc>, window_params = [{pipeline_mode = #tpu.pipeline_mode<synchronous>, transform_indices = @transform_0, window_bounds = array<i64: 32, 16>}, {transform_indices = @transform_1, window_bounds = array<i64: 16, 1024>}, {pipeline_mode = #tpu.pipeline_mode<synchronous>, transform_indices = @transform_2, window_bounds = array<i64: 32, 1>}, {transform_indices = @transform_3, window_bounds = array<i64: 32, 1024>}]} {
    %c0 = arith.constant 0 : index
    %c0_0 = arith.constant 0 : index
    %0 = vector.load %arg1[%c0, %c0_0] : memref<32x16xbf16, #tpu.memory_space<vmem>>, vector<32x16xbf16>
    %c0_1 = arith.constant 0 : index
    %c0_2 = arith.constant 0 : index
    %1 = vector.load %arg2[%c0_1, %c0_2] : memref<16x1024xf32, #tpu.memory_space<vmem>>, vector<16x1024xf32>
    %2 = arith.truncf %1 : vector<16x1024xf32> to vector<16x1024xbf16>
    %cst = arith.constant dense<0.000000e+00> : vector<32x1024xf32>
    %3 = tpu.matmul %0, %2, %cst {dimension_numbers = #tpu.dot_dimension_numbers<[1], [0], [0], [1], [0, 0, 1, 1], [], []>} : vector<32x16xbf16>, vector<16x1024xbf16>, vector<32x1024xf32> -> vector<32x1024xf32>
    %c0_3 = arith.constant 0 : index
    %c0_4 = arith.constant 0 : index
    %4 = vector.load %arg3[%c0_3, %c0_4] : memref<32x1xf32, #tpu.memory_space<vmem>>, vector<32x1xf32>
    %5 = vector.broadcast %4 : vector<32x1xf32> to vector<32x1024xf32>
    %6 = arith.addf %3, %5 : vector<32x1024xf32>
    %cst_5 = arith.constant 0.000000e+00 : f32
    %7 = vector.broadcast %cst_5 : f32 to vector<32x1024xf32>
    %8 = arith.maximumf %6, %7 : vector<32x1024xf32>
    %c0_6 = arith.constant 0 : index
    %c0_7 = arith.constant 0 : index
    %9 = vector.load %arg4[%c0_6, %c0_7] : memref<32x1024xf32, #tpu.memory_space<vmem>>, vector<32x1024xf32>
    tpu.vector_store %arg4[%c0_6, %c0_7], %8 {strides = array<i32>} : memref<32x1024xf32, #tpu.memory_space<vmem>>, vector<32x1024xf32>,
    return
  }
  func.func @transform_0(%arg0: i32) -> (i32, i32) {
    %c0_i32 = arith.constant 0 : i32
    %c0_i32_0 = arith.constant 0 : i32
    %c0_i32_1 = arith.constant 0 : i32
    return %c0_i32, %c0_i32_0 : i32, i32
  }
  func.func @transform_1(%arg0: i32) -> (i32, i32) {
    %c0_i32 = arith.constant 0 : i32
    %c0_i32_0 = arith.constant 0 : i32
    return %c0_i32, %arg0 : i32, i32
  }
  func.func @transform_2(%arg0: i32) -> (i32, i32) {
    %c0_i32 = arith.constant 0 : i32
    %c0_i32_0 = arith.constant 0 : i32
    %c0_i32_1 = arith.constant 0 : i32
    return %c0_i32, %c0_i32_0 : i32, i32
  }
  func.func @transform_3(%arg0: i32) -> (i32, i32) {
    %c0_i32 = arith.constant 0 : i32
    %c0_i32_0 = arith.constant 0 : i32
    return %c0_i32, %arg0 : i32, i32
  }
}

module attributes {stable_mosaic.version = 11 : i64} {
  func.func @_conv_gemm_kernel(%arg0: i32, %arg1: memref<32x512xbf16, #tpu.memory_space<vmem>>, %arg2: memref<512x256xf32, #tpu.memory_space<vmem>>, %arg3: memref<32x1xf32, #tpu.memory_space<vmem>>, %arg4: memref<32x256xf32, #tpu.memory_space<vmem>>) attributes {dimension_semantics = [#tpu.dimension_semantics<parallel>], iteration_bounds = array<i64: 2>, scalar_prefetch = 0 : i64, scratch_operands = 0 : i64, tpu.core_type = #tpu.core_type<tc>, window_params = [{pipeline_mode = #tpu.pipeline_mode<synchronous>, transform_indices = @transform_0, window_bounds = array<i64: 32, 512>}, {transform_indices = @transform_1, window_bounds = array<i64: 512, 256>}, {pipeline_mode = #tpu.pipeline_mode<synchronous>, transform_indices = @transform_2, window_bounds = array<i64: 32, 1>}, {transform_indices = @transform_3, window_bounds = array<i64: 32, 256>}]} {
    %c0 = arith.constant 0 : index
    %c0_0 = arith.constant 0 : index
    %0 = vector.load %arg1[%c0, %c0_0] : memref<32x512xbf16, #tpu.memory_space<vmem>>, vector<32x512xbf16>
    %c0_1 = arith.constant 0 : index
    %c0_2 = arith.constant 0 : index
    %1 = vector.load %arg2[%c0_1, %c0_2] : memref<512x256xf32, #tpu.memory_space<vmem>>, vector<512x256xf32>
    %2 = arith.truncf %1 : vector<512x256xf32> to vector<512x256xbf16>
    %cst = arith.constant dense<0.000000e+00> : vector<32x256xf32>
    %3 = tpu.matmul %0, %2, %cst {dimension_numbers = #tpu.dot_dimension_numbers<[1], [0], [0], [1], [0, 0, 1, 1], [], []>} : vector<32x512xbf16>, vector<512x256xbf16>, vector<32x256xf32> -> vector<32x256xf32>
    %c0_3 = arith.constant 0 : index
    %c0_4 = arith.constant 0 : index
    %4 = vector.load %arg3[%c0_3, %c0_4] : memref<32x1xf32, #tpu.memory_space<vmem>>, vector<32x1xf32>
    %5 = vector.broadcast %4 : vector<32x1xf32> to vector<32x256xf32>
    %6 = arith.addf %3, %5 : vector<32x256xf32>
    %cst_5 = arith.constant 0.000000e+00 : f32
    %7 = vector.broadcast %cst_5 : f32 to vector<32x256xf32>
    %8 = arith.maximumf %6, %7 : vector<32x256xf32>
    %c0_6 = arith.constant 0 : index
    %c0_7 = arith.constant 0 : index
    %9 = vector.load %arg4[%c0_6, %c0_7] : memref<32x256xf32, #tpu.memory_space<vmem>>, vector<32x256xf32>
    tpu.vector_store %arg4[%c0_6, %c0_7], %8 {strides = array<i32>} : memref<32x256xf32, #tpu.memory_space<vmem>>, vector<32x256xf32>,
    return
  }
  func.func @transform_0(%arg0: i32) -> (i32, i32) {
    %c0_i32 = arith.constant 0 : i32
    %c0_i32_0 = arith.constant 0 : i32
    %c0_i32_1 = arith.constant 0 : i32
    return %c0_i32, %c0_i32_0 : i32, i32
  }
  func.func @transform_1(%arg0: i32) -> (i32, i32) {
    %c0_i32 = arith.constant 0 : i32
    %c0_i32_0 = arith.constant 0 : i32
    return %c0_i32, %arg0 : i32, i32
  }
  func.func @transform_2(%arg0: i32) -> (i32, i32) {
    %c0_i32 = arith.constant 0 : i32
    %c0_i32_0 = arith.constant 0 : i32
    %c0_i32_1 = arith.constant 0 : i32
    return %c0_i32, %c0_i32_0 : i32, i32
  }
  func.func @transform_3(%arg0: i32) -> (i32, i32) {
    %c0_i32 = arith.constant 0 : i32
    %c0_i32_0 = arith.constant 0 : i32
    return %c0_i32, %arg0 : i32, i32
  }
}

module attributes {stable_mosaic.version = 11 : i64} {
  func.func @_conv_gemm_kernel(%arg0: i32, %arg1: memref<32x512xbf16, #tpu.memory_space<vmem>>, %arg2: memref<512x128xf32, #tpu.memory_space<vmem>>, %arg3: memref<32x1xf32, #tpu.memory_space<vmem>>, %arg4: memref<32x128xf32, #tpu.memory_space<vmem>>) attributes {dimension_semantics = [#tpu.dimension_semantics<parallel>], iteration_bounds = array<i64: 1>, scalar_prefetch = 0 : i64, scratch_operands = 0 : i64, tpu.core_type = #tpu.core_type<tc>, window_params = [{pipeline_mode = #tpu.pipeline_mode<synchronous>, transform_indices = @transform_0, window_bounds = array<i64: 32, 512>}, {transform_indices = @transform_1, window_bounds = array<i64: 512, 128>}, {pipeline_mode = #tpu.pipeline_mode<synchronous>, transform_indices = @transform_2, window_bounds = array<i64: 32, 1>}, {transform_indices = @transform_3, window_bounds = array<i64: 32, 128>}]} {
    %c0 = arith.constant 0 : index
    %c0_0 = arith.constant 0 : index
    %0 = vector.load %arg1[%c0, %c0_0] : memref<32x512xbf16, #tpu.memory_space<vmem>>, vector<32x512xbf16>
    %c0_1 = arith.constant 0 : index
    %c0_2 = arith.constant 0 : index
    %1 = vector.load %arg2[%c0_1, %c0_2] : memref<512x128xf32, #tpu.memory_space<vmem>>, vector<512x128xf32>
    %2 = arith.truncf %1 : vector<512x128xf32> to vector<512x128xbf16>
    %cst = arith.constant dense<0.000000e+00> : vector<32x128xf32>
    %3 = tpu.matmul %0, %2, %cst {dimension_numbers = #tpu.dot_dimension_numbers<[1], [0], [0], [1], [0, 0, 1, 1], [], []>} : vector<32x512xbf16>, vector<512x128xbf16>, vector<32x128xf32> -> vector<32x128xf32>
    %c0_3 = arith.constant 0 : index
    %c0_4 = arith.constant 0 : index
    %4 = vector.load %arg3[%c0_3, %c0_4] : memref<32x1xf32, #tpu.memory_space<vmem>>, vector<32x1xf32>
    %5 = vector.broadcast %4 : vector<32x1xf32> to vector<32x128xf32>
    %6 = arith.addf %3, %5 : vector<32x128xf32>
    %cst_5 = arith.constant 0.000000e+00 : f32
    %7 = vector.broadcast %cst_5 : f32 to vector<32x128xf32>
    %8 = arith.maximumf %6, %7 : vector<32x128xf32>
    %c0_6 = arith.constant 0 : index
    %c0_7 = arith.constant 0 : index
    %9 = vector.load %arg4[%c0_6, %c0_7] : memref<32x128xf32, #tpu.memory_space<vmem>>, vector<32x128xf32>
    tpu.vector_store %arg4[%c0_6, %c0_7], %8 {strides = array<i32>} : memref<32x128xf32, #tpu.memory_space<vmem>>, vector<32x128xf32>,
    return
  }
  func.func @transform_0(%arg0: i32) -> (i32, i32) {
    %c0_i32 = arith.constant 0 : i32
    %c0_i32_0 = arith.constant 0 : i32
    %c0_i32_1 = arith.constant 0 : i32
    return %c0_i32, %c0_i32_0 : i32, i32
  }
  func.func @transform_1(%arg0: i32) -> (i32, i32) {
    %c0_i32 = arith.constant 0 : i32
    %c0_i32_0 = arith.constant 0 : i32
    return %c0_i32, %arg0 : i32, i32
  }
  func.func @transform_2(%arg0: i32) -> (i32, i32) {
    %c0_i32 = arith.constant 0 : i32
    %c0_i32_0 = arith.constant 0 : i32
    %c0_i32_1 = arith.constant 0 : i32
    return %c0_i32, %c0_i32_0 : i32, i32
  }
  func.func @transform_3(%arg0: i32) -> (i32, i32) {
    %c0_i32 = arith.constant 0 : i32
    %c0_i32_0 = arith.constant 0 : i32
    return %c0_i32, %arg0 : i32, i32
  }
}

module attributes {stable_mosaic.version = 11 : i64} {
  func.func @_conv_gemm_kernel(%arg0: i32, %arg1: memref<32x512xbf16, #tpu.memory_space<vmem>>, %arg2: memref<512x32xf32, #tpu.memory_space<vmem>>, %arg3: memref<32x1xf32, #tpu.memory_space<vmem>>, %arg4: memref<32x32xf32, #tpu.memory_space<vmem>>) attributes {dimension_semantics = [#tpu.dimension_semantics<parallel>], iteration_bounds = array<i64: 1>, scalar_prefetch = 0 : i64, scratch_operands = 0 : i64, tpu.core_type = #tpu.core_type<tc>, window_params = [{pipeline_mode = #tpu.pipeline_mode<synchronous>, transform_indices = @transform_0, window_bounds = array<i64: 32, 512>}, {transform_indices = @transform_1, window_bounds = array<i64: 512, 32>}, {pipeline_mode = #tpu.pipeline_mode<synchronous>, transform_indices = @transform_2, window_bounds = array<i64: 32, 1>}, {transform_indices = @transform_3, window_bounds = array<i64: 32, 32>}]} {
    %c0 = arith.constant 0 : index
    %c0_0 = arith.constant 0 : index
    %0 = vector.load %arg1[%c0, %c0_0] : memref<32x512xbf16, #tpu.memory_space<vmem>>, vector<32x512xbf16>
    %c0_1 = arith.constant 0 : index
    %c0_2 = arith.constant 0 : index
    %1 = vector.load %arg2[%c0_1, %c0_2] : memref<512x32xf32, #tpu.memory_space<vmem>>, vector<512x32xf32>
    %2 = arith.truncf %1 : vector<512x32xf32> to vector<512x32xbf16>
    %cst = arith.constant dense<0.000000e+00> : vector<32x32xf32>
    %3 = tpu.matmul %0, %2, %cst {dimension_numbers = #tpu.dot_dimension_numbers<[1], [0], [0], [1], [0, 0, 1, 1], [], []>} : vector<32x512xbf16>, vector<512x32xbf16>, vector<32x32xf32> -> vector<32x32xf32>
    %c0_3 = arith.constant 0 : index
    %c0_4 = arith.constant 0 : index
    %4 = vector.load %arg3[%c0_3, %c0_4] : memref<32x1xf32, #tpu.memory_space<vmem>>, vector<32x1xf32>
    %5 = vector.broadcast %4 : vector<32x1xf32> to vector<32x32xf32>
    %6 = arith.addf %3, %5 : vector<32x32xf32>
    %cst_5 = arith.constant 0.000000e+00 : f32
    %7 = vector.broadcast %cst_5 : f32 to vector<32x32xf32>
    %8 = arith.maximumf %6, %7 : vector<32x32xf32>
    %c0_6 = arith.constant 0 : index
    %c0_7 = arith.constant 0 : index
    %9 = vector.load %arg4[%c0_6, %c0_7] : memref<32x32xf32, #tpu.memory_space<vmem>>, vector<32x32xf32>
    tpu.vector_store %arg4[%c0_6, %c0_7], %8 {strides = array<i32>} : memref<32x32xf32, #tpu.memory_space<vmem>>, vector<32x32xf32>,
    return
  }
  func.func @transform_0(%arg0: i32) -> (i32, i32) {
    %c0_i32 = arith.constant 0 : i32
    %c0_i32_0 = arith.constant 0 : i32
    %c0_i32_1 = arith.constant 0 : i32
    return %c0_i32, %c0_i32_0 : i32, i32
  }
  func.func @transform_1(%arg0: i32) -> (i32, i32) {
    %c0_i32 = arith.constant 0 : i32
    %c0_i32_0 = arith.constant 0 : i32
    return %c0_i32, %arg0 : i32, i32
  }
  func.func @transform_2(%arg0: i32) -> (i32, i32) {
    %c0_i32 = arith.constant 0 : i32
    %c0_i32_0 = arith.constant 0 : i32
    %c0_i32_1 = arith.constant 0 : i32
    return %c0_i32, %c0_i32_0 : i32, i32
  }
  func.func @transform_3(%arg0: i32) -> (i32, i32) {
    %c0_i32 = arith.constant 0 : i32
    %c0_i32_0 = arith.constant 0 : i32
    return %c0_i32, %arg0 : i32, i32
  }
}

module attributes {stable_mosaic.version = 11 : i64} {
  func.func @_fc_fused_kernel(%arg0: i32, %arg1: memref<2x512xf32, #tpu.memory_space<vmem>>, %arg2: memref<512x256xbf16, #tpu.memory_space<vmem>>, %arg3: memref<1x256xf32, #tpu.memory_space<vmem>>, %arg4: memref<256x256xbf16, #tpu.memory_space<vmem>>, %arg5: memref<1x256xf32, #tpu.memory_space<vmem>>, %arg6: memref<256x4xbf16, #tpu.memory_space<vmem>>, %arg7: memref<1x4xf32, #tpu.memory_space<vmem>>, %arg8: memref<2x4xf32, #tpu.memory_space<vmem>>) attributes {dimension_semantics = [#tpu.dimension_semantics<arbitrary>], iteration_bounds = array<i64: 1>, scalar_prefetch = 0 : i64, scratch_operands = 0 : i64, tpu.core_type = #tpu.core_type<tc>, window_params = [{pipeline_mode = #tpu.pipeline_mode<synchronous>, transform_indices = @transform_0, window_bounds = array<i64: 2, 512>}, {pipeline_mode = #tpu.pipeline_mode<synchronous>, transform_indices = @transform_1, window_bounds = array<i64: 512, 256>}, {pipeline_mode = #tpu.pipeline_mode<synchronous>, transform_indices = @transform_2, window_bounds = array<i64: 1, 256>}, {pipeline_mode = #tpu.pipeline_mode<synchronous>, transform_indices = @transform_3, window_bounds = array<i64: 256, 256>}, {pipeline_mode = #tpu.pipeline_mode<synchronous>, transform_indices = @transform_4, window_bounds = array<i64: 1, 256>}, {pipeline_mode = #tpu.pipeline_mode<synchronous>, transform_indices = @transform_5, window_bounds = array<i64: 256, 4>}, {pipeline_mode = #tpu.pipeline_mode<synchronous>, transform_indices = @transform_6, window_bounds = array<i64: 1, 4>}, {pipeline_mode = #tpu.pipeline_mode<synchronous>, transform_indices = @transform_7, window_bounds = array<i64: 2, 4>}]} {
    %c0 = arith.constant 0 : index
    %c0_0 = arith.constant 0 : index
    %0 = vector.load %arg1[%c0, %c0_0] : memref<2x512xf32, #tpu.memory_space<vmem>>, vector<2x512xf32>
    %1 = arith.truncf %0 : vector<2x512xf32> to vector<2x512xbf16>
    %c0_1 = arith.constant 0 : index
    %c0_2 = arith.constant 0 : index
    %2 = vector.load %arg2[%c0_1, %c0_2] : memref<512x256xbf16, #tpu.memory_space<vmem>>, vector<512x256xbf16>
    %cst = arith.constant dense<0.000000e+00> : vector<2x256xf32>
    %3 = tpu.matmul %1, %2, %cst {dimension_numbers = #tpu.dot_dimension_numbers<[1], [0], [0], [1], [0, 0, 1, 1], [], []>} : vector<2x512xbf16>, vector<512x256xbf16>, vector<2x256xf32> -> vector<2x256xf32>
    %c0_3 = arith.constant 0 : index
    %c0_4 = arith.constant 0 : index
    %4 = vector.load %arg3[%c0_3, %c0_4] : memref<1x256xf32, #tpu.memory_space<vmem>>, vector<1x256xf32>
    %5 = vector.broadcast %4 : vector<1x256xf32> to vector<2x256xf32>
    %6 = arith.addf %3, %5 : vector<2x256xf32>
    %cst_5 = arith.constant 0.000000e+00 : f32
    %7 = vector.broadcast %cst_5 : f32 to vector<2x256xf32>
    %8 = arith.maximumf %6, %7 : vector<2x256xf32>
    %9 = arith.truncf %8 : vector<2x256xf32> to vector<2x256xbf16>
    %c0_6 = arith.constant 0 : index
    %c0_7 = arith.constant 0 : index
    %10 = vector.load %arg4[%c0_6, %c0_7] : memref<256x256xbf16, #tpu.memory_space<vmem>>, vector<256x256xbf16>
    %cst_8 = arith.constant dense<0.000000e+00> : vector<2x256xf32>
    %11 = tpu.matmul %9, %10, %cst_8 {dimension_numbers = #tpu.dot_dimension_numbers<[1], [0], [0], [1], [0, 0, 1, 1], [], []>} : vector<2x256xbf16>, vector<256x256xbf16>, vector<2x256xf32> -> vector<2x256xf32>
    %c0_9 = arith.constant 0 : index
    %c0_10 = arith.constant 0 : index
    %12 = vector.load %arg5[%c0_9, %c0_10] : memref<1x256xf32, #tpu.memory_space<vmem>>, vector<1x256xf32>
    %13 = vector.broadcast %12 : vector<1x256xf32> to vector<2x256xf32>
    %14 = arith.addf %11, %13 : vector<2x256xf32>
    %cst_11 = arith.constant 0.000000e+00 : f32
    %15 = vector.broadcast %cst_11 : f32 to vector<2x256xf32>
    %16 = arith.maximumf %14, %15 : vector<2x256xf32>
    %17 = arith.truncf %16 : vector<2x256xf32> to vector<2x256xbf16>
    %c0_12 = arith.constant 0 : index
    %c0_13 = arith.constant 0 : index
    %18 = vector.load %arg6[%c0_12, %c0_13] : memref<256x4xbf16, #tpu.memory_space<vmem>>, vector<256x4xbf16>
    %cst_14 = arith.constant dense<0.000000e+00> : vector<2x4xf32>
    %19 = tpu.matmul %17, %18, %cst_14 {dimension_numbers = #tpu.dot_dimension_numbers<[1], [0], [0], [1], [0, 0, 1, 1], [], []>} : vector<2x256xbf16>, vector<256x4xbf16>, vector<2x4xf32> -> vector<2x4xf32>
    %c0_15 = arith.constant 0 : index
    %c0_16 = arith.constant 0 : index
    %20 = vector.load %arg7[%c0_15, %c0_16] : memref<1x4xf32, #tpu.memory_space<vmem>>, vector<1x4xf32>
    %21 = vector.broadcast %20 : vector<1x4xf32> to vector<2x4xf32>
    %22 = arith.addf %19, %21 : vector<2x4xf32>
    %c0_17 = arith.constant 0 : index
    %c0_18 = arith.constant 0 : index
    %23 = vector.load %arg8[%c0_17, %c0_18] : memref<2x4xf32, #tpu.memory_space<vmem>>, vector<2x4xf32>
    tpu.vector_store %arg8[%c0_17, %c0_18], %22 {strides = array<i32>} : memref<2x4xf32, #tpu.memory_space<vmem>>, vector<2x4xf32>,
    return
  }
  func.func @transform_0(%arg0: i32) -> (i32, i32) {
    %c0_i32 = arith.constant 0 : i32
    %c0_i32_0 = arith.constant 0 : i32
    %c0_i32_1 = arith.constant 0 : i32
    return %c0_i32, %c0_i32_0 : i32, i32
  }
  func.func @transform_1(%arg0: i32) -> (i32, i32) {
    %c0_i32 = arith.constant 0 : i32
    %c0_i32_0 = arith.constant 0 : i32
    %c0_i32_1 = arith.constant 0 : i32
    return %c0_i32, %c0_i32_0 : i32, i32
  }
  func.func @transform_2(%arg0: i32) -> (i32, i32) {
    %c0_i32 = arith.constant 0 : i32
    %c0_i32_0 = arith.constant 0 : i32
    %c0_i32_1 = arith.constant 0 : i32
    return %c0_i32, %c0_i32_0 : i32, i32
  }
  func.func @transform_3(%arg0: i32) -> (i32, i32) {
    %c0_i32 = arith.constant 0 : i32
    %c0_i32_0 = arith.constant 0 : i32
    %c0_i32_1 = arith.constant 0 : i32
    return %c0_i32, %c0_i32_0 : i32, i32
  }
  func.func @transform_4(%arg0: i32) -> (i32, i32) {
    %c0_i32 = arith.constant 0 : i32
    %c0_i32_0 = arith.constant 0 : i32
    %c0_i32_1 = arith.constant 0 : i32
    return %c0_i32, %c0_i32_0 : i32, i32
  }
  func.func @transform_5(%arg0: i32) -> (i32, i32) {
    %c0_i32 = arith.constant 0 : i32
    %c0_i32_0 = arith.constant 0 : i32
    %c0_i32_1 = arith.constant 0 : i32
    return %c0_i32, %c0_i32_0 : i32, i32
  }
  func.func @transform_6(%arg0: i32) -> (i32, i32) {
    %c0_i32 = arith.constant 0 : i32
    %c0_i32_0 = arith.constant 0 : i32
    %c0_i32_1 = arith.constant 0 : i32
    return %c0_i32, %c0_i32_0 : i32, i32
  }
  func.func @transform_7(%arg0: i32) -> (i32, i32) {
    %c0_i32 = arith.constant 0 : i32
    %c0_i32_0 = arith.constant 0 : i32
    %c0_i32_1 = arith.constant 0 : i32
    return %c0_i32, %c0_i32_0 : i32, i32
  }
}

</mosaic_0001>

<bundles_post_ra>
// kernel: encoder_burgess_forward.5
= control target key start
LH: loop header
LB: loop body
LE: loop exit
PB: predicated region body
PF: predicated region fallthrough
CT: control target
= control target key end

     0   :  { %s809_s12 = smov 0   ;;  %s811_s13 = smov 0   ;;  %s1057_s0 = inlined_call_operand.vmem [shape: bf16[32,16], index: 0, kind: input, shape index: {}]   ;;  %s1058_s1 = inlined_call_operand.vmem [shape: f32[16,2048], index: 1, kind: input, shape index: {}]   ;;  %s1059_s2 = inlined_call_operand.vmem [shape: f32[32,1], index: 2, kind: input, shape index: {}]   ;;  %s1060_s3 = inlined_call_operand.vmem [shape: f32[32,2048], index: 3, kind: output, shape index: {}]  }
   0x1   :  { %s813_s14 = smov 0  }
   0x2 LB: > { %s708_s15 = sadd.s32 4294967295, %s786_s14   ;;  %s826_s16 = sadd.s32 1, %s786_s14   ;;  %s786_s14 = sphi %s813_s14, %s1064_s14   ;;  %s782_s13 = sphi %s811_s13, %s1063_s13   ;;  %s778_s12 = sphi %s809_s12, %s1062_s12  }
   0x3   : > { %s38_s17 = ssub.s32 %s786_s14, %s826_s16  ;;  %s41_s18 = sadd.s32 1, %s782_s13 }
   0x4   : > { %p39_p0 = scmp.eq.s32.totalorder %s38_s17, 0  ;;  %p48_p1 = scmp.ne.s32.totalorder %s782_s13, %s778_s12 }
   0x5   : > { %p49_p2 = scmp.eq.s32.totalorder %s786_s14, 0  ;;  %p99_p3 = scmp.eq.s32.totalorder %s708_s15, 1 }
   0x6   : > { %s837_s19 = scalar_select %p39_p0, %s782_s13, %s41_s18  }
   0x7   : > { %p50_p4 = por %p49_p2, %p48_p1  ;;  %p839_p5 = por %p99_p3, %p48_p1 }
   0x8   : > { %p711_p6 = scmp.ge.s32.totalorder %s786_s14, 2 }
   0xa   : > { %127 = sbr.rel (%p711_p6) target bundleno = 29 (0x1d), region = 24 }
  0x11   : > { %130 = sbr.rel (!%p50_p4) target bundleno = 29 (0x1d), region = 28  ;;  %s132_s21 = sand.u32 (%p50_p4), 1, %s782_s13  }
  0x12   : > { %s733_s22 = sshll.u32 (%p50_p4), %s786_s14, 6  ;;  %s712_s23 = sshll.u32 (%p50_p4), %s132_s21, 7 }
  0x13   : > { %s849_s26 = scalar_lea.vmem (%p50_p4), %s1058_s1, %s733_s22  ;;  %s134_s27 = scalar_lea.vmem (%p50_p4), [#allocation2], %s712_s23 }
  0x14   : > { %v150_v0 = vld [vmem:[%s849_s26] sm:$0xff] (%p50_p4)  ;;  %v152_v1 = vld [vmem:[%s849_s26 + $0x8] sm:$0xff] (%p50_p4)  ;;  %v154_v2 = vld [vmem:[%s849_s26 + $0x10] sm:$0xff] (%p50_p4) }
  0x15   : > { %151 = vst [vmem:[%s134_s27] sm:$0xff] (%p50_p4), %v150_v0  ;;  %153 = vst [vmem:[%s134_s27 + $0x8] sm:$0xff] (%p50_p4), %v152_v1  ;;  %v156_v3 = vld [vmem:[%s849_s26 + $0x18] sm:$0xff] (%p50_p4)  ;;  %v158_v4 = vld [vmem:[%s849_s26 + $0x20] sm:$0xff] (%p50_p4) }
  0x16   : > { %155 = vst [vmem:[%s134_s27 + $0x10] sm:$0xff] (%p50_p4), %v154_v2  ;;  %v160_v5 = vld [vmem:[%s849_s26 + $0x28] sm:$0xff] (%p50_p4)  ;;  %157 = vst [vmem:[%s134_s27 + $0x18] sm:$0xff] (%p50_p4), %v156_v3  ;;  %v162_v6 = vld [vmem:[%s849_s26 + $0x30] sm:$0xff] (%p50_p4) }
  0x17   : > { %159 = vst [vmem:[%s134_s27 + $0x20] sm:$0xff] (%p50_p4), %v158_v4  ;;  %161 = vst [vmem:[%s134_s27 + $0x28] sm:$0xff] (%p50_p4), %v160_v5  ;;  %v164_v7 = vld [vmem:[%s849_s26 + $0x38] sm:$0xff] (%p50_p4)  ;;  %v166_v8 = vld [vmem:[%s849_s26 + $0x80] sm:$0xff] (%p50_p4) }
  0x18   : > { %163 = vst [vmem:[%s134_s27 + $0x30] sm:$0xff] %v162_v6  ;;  %165 = vst [vmem:[%s134_s27 + $0x38] sm:$0xff] %v164_v7  ;;  %v168_v9 = vld [vmem:[%s849_s26 + $0x88] sm:$0xff]  ;;  %v170_v10 = vld [vmem:[%s849_s26 + $0x90] sm:$0xff] }
  0x19   : > { %167 = vst [vmem:[%s134_s27 + $0x40] sm:$0xff] %v166_v8  ;;  %v172_v11 = vld [vmem:[%s849_s26 + $0x98] sm:$0xff]  ;;  %169 = vst [vmem:[%s134_s27 + $0x48] sm:$0xff] %v168_v9  ;;  %v174_v12 = vld [vmem:[%s849_s26 + $0xa0] sm:$0xff] }
  0x1a   : > { %171 = vst [vmem:[%s134_s27 + $0x50] sm:$0xff] %v170_v10  ;;  %173 = vst [vmem:[%s134_s27 + $0x58] sm:$0xff] %v172_v11  ;;  %v176_v13 = vld [vmem:[%s849_s26 + $0xa8] sm:$0xff]  ;;  %v178_v14 = vld [vmem:[%s849_s26 + $0xb0] sm:$0xff] }
  0x1b   : > { %175 = vst [vmem:[%s134_s27 + $0x60] sm:$0xff] %v174_v12  ;;  %177 = vst [vmem:[%s134_s27 + $0x68] sm:$0xff] %v176_v13  ;;  %v180_v15 = vld [vmem:[%s849_s26 + $0xb8] sm:$0xff] }
  0x1c   : > { %179 = vst [vmem:[%s134_s27 + $0x70] sm:$0xff] %v178_v14  ;;  %181 = vst [vmem:[%s134_s27 + $0x78] sm:$0xff] %v180_v15 }
  0x1d PF: > { %p715_p7 = scmp.ge.s32.totalorder %s786_s14, 1  ;;  %p186_p8 = scmp.lt.s32.totalorder %s786_s14, 3 }
  0x1f   : > { %p187_p9 = pnand %p715_p7, %p186_p8 }
  0x20   : > { %s193_s28 = sand.u32 (!%p187_p9), 1, %s778_s12   ;;  %v788_v16 = vmov (!%p187_p9), 0   ;;  %v246_v17 = vld [vmem:[%s1059_s2] sm:$0xff] (!%p187_p9)  ;;  %vm280_vm0 = vcmask (!%p187_p9), 130048   ;;  %v247_v42 = vld [vmem:[%s1059_s2 + $0x8] sm:$0xff] (!%p187_p9)  ;;  %v248_v44 = vld [vmem:[%s1059_s2 + $0x10] sm:$0xff] (!%p187_p9) }
  0x21   : > { %190 = sbr.rel (%p187_p9) target bundleno = 296 (0x128), region = 51  ;;  %s716_s29 = sshll.u32 (!%p187_p9), %s193_s28, 7  ;;  %319 = vmatprep.mubr.bf16.mxu0 (!%p187_p9), %v788_v16  ;;  %372 = vmatprep.mubr.bf16.mxu1 (!%p187_p9), %v788_v16  ;;  %v762_v25 = vld [vmem:[%s1057_s0] sm:$0xff] (!%p187_p9)   ;;  %v763_v45 = vld [vmem:[%s1057_s0 + $0x8] sm:$0xff] (!%p187_p9)   ;;  %v249_v46 = vld [vmem:[%s1059_s2 + $0x18] sm:$0xff] (!%p187_p9) }
  0x22   : > { %760 = vset.pattern.permute.xlu0 (!%p187_p9), %v788_v16  ;;  %761 = vset.pattern.permute.xlu1 (!%p187_p9), %v788_v16  ;;  %s195_s5 = scalar_lea.vmem (!%p187_p9), [#allocation2], %s716_s29  ;;  %s717_s23 = sshll.u32 (!%p187_p9), %s193_s28, 8 }
  0x23   : > { %v223_v18 = vld [vmem:[%s195_s5 + $0x8] sm:$0xff] (!%p187_p9)  ;;  %v225_v20 = vld [vmem:[%s195_s5 + $0x18] sm:$0xff] (!%p187_p9)  ;;  %252 = vperm.xlu0 (!%p187_p9), %760, %v246_v17   ;;  %v222_v23 = vld [vmem:[%s195_s5] sm:$0xff] (!%p187_p9)  ;;  %262 = vperm.xlu1 (!%p187_p9), %761, %v248_v44   ;;  %s913_s12 = scalar_lea.vmem (!%p187_p9), [#allocation3], %s717_s23 }
  0x24   : > { %v231_v19 = vld [vmem:[%s195_s5 + $0x48] sm:$0xff] (!%p187_p9)  ;;  %v233_v22 = vld [vmem:[%s195_s5 + $0x58] sm:$0xff] (!%p187_p9)  ;;  %v230_v24 = vld [vmem:[%s195_s5 + $0x40] sm:$0xff] (!%p187_p9) }
  0x25   : > { %v239_v21 = vpack.c.bf16 (!%p187_p9), %v231_v19, %v223_v18  ;;  %v241_v26 = vpack.c.bf16 (!%p187_p9), %v233_v22, %v225_v20  ;;  %v238_v27 = vpack.c.bf16 (!%p187_p9), %v230_v24, %v222_v23  ;;  %v224_v28 = vld [vmem:[%s195_s5 + $0x10] sm:$0xff] (!%p187_p9)  ;;  %v227_v30 = vld [vmem:[%s195_s5 + $0x28] sm:$0xff] (!%p187_p9)  ;;  %v229_v33 = vld [vmem:[%s195_s5 + $0x38] sm:$0xff] (!%p187_p9) }
  0x26   : > { %v232_v29 = vld [vmem:[%s195_s5 + $0x50] sm:$0xff] (!%p187_p9)  ;;  %v235_v32 = vld [vmem:[%s195_s5 + $0x68] sm:$0xff] (!%p187_p9)  ;;  %v237_v34 = vld [vmem:[%s195_s5 + $0x78] sm:$0xff] (!%p187_p9) }
  0x27   : > { %287 = vmatprep.subr.bf16.mxu0 (!%p187_p9), %v239_v21  ;;  %v240_v31 = vpack.c.bf16 (!%p187_p9), %v232_v29, %v224_v28  ;;  %340 = vmatprep.subr.bf16.mxu1 (!%p187_p9), %v241_v26  ;;  %v243_v35 = vpack.c.bf16 (!%p187_p9), %v235_v32, %v227_v30  ;;  %v245_v36 = vpack.c.bf16 (!%p187_p9), %v237_v34, %v229_v33  ;;  %v226_v37 = vld [vmem:[%s195_s5 + $0x20] sm:$0xff] (!%p187_p9)  ;;  %v228_v39 = vld [vmem:[%s195_s5 + $0x30] sm:$0xff] (!%p187_p9) }
  0x28   : > { %288 = vmatpush1.bf16.msra.mxu0 %v238_v27  ;;  %v234_v38 = vld [vmem:[%s195_s5 + $0x60] sm:$0xff]  ;;  %v236_v41 = vld [vmem:[%s195_s5 + $0x70] sm:$0xff]  ;;  %257 = vperm.xlu0 %760, %v247_v42   ;;  %s734_s24 = sshll.u32 (%p839_p5), %s708_s15, 6 }
  0x29   : > { %341 = vmatpush1.bf16.msra.mxu1 %v240_v31  ;;  %v242_v40 = vpack.c.bf16 %v234_v38, %v226_v37  ;;  %393 = vmatprep.subr.bf16.mxu0 %v243_v35  ;;  %v244_v43 = vpack.c.bf16 %v236_v41, %v228_v39  ;;  %s984_s20 = scalar_lea.vmem (%p839_p5), %s1060_s3, %s734_s24 }
  0x2a   : > { %446 = vmatprep.subr.bf16.mxu1 %v245_v36  ;;  %267 = vperm.xlu1 %761, %v249_v46  }
  0x2b   : > { %720 = vmatmul.mubr.msk.bf16.vlgmr.msra.gmra.mrb[0].mxu0 %vm280_vm0, %v762_v25 }
  0x2c   : > { %722 = vmatmul.mubr.msk.bf16.vlgmr.msra.gmra.mrb[0].mxu1 %vm280_vm0, %v762_v25  ;;  %394 = vmatpush1.bf16.msra.mxu0 %v242_v40 }
  0x2d   : > { %447 = vmatpush1.bf16.msra.mxu1 %v244_v43  ;;  %329 = vmatprep.mubr.bf16.mxu0 %v788_v16 }
  0x2e   : > { %382 = vmatprep.mubr.bf16.mxu1 %v788_v16 }
  0x33   : > { %721 = vmatmul.mubr.msk.bf16.gmra.mrb[4].mxu0 %vm280_vm0, %v763_v45 }
  0x34   : > { %723 = vmatmul.mubr.msk.bf16.gmra.mrb[4].mxu1 %vm280_vm0, %v763_v45  ;;  %425 = vmatprep.mubr.bf16.mxu0 %v788_v16 }
  0x35   : > { %478 = vmatprep.mubr.bf16.mxu1 %v788_v16 }
  0x3b   : > { %724 = vmatmul.mubr.msk.bf16.vlgmr.msra.gmra.mrb[8].mxu0 %vm280_vm0, %v762_v25 }
  0x3c   : > { %726 = vmatmul.mubr.msk.bf16.vlgmr.msra.gmra.mrb[8].mxu1 %vm280_vm0, %v762_v25  ;;  %435 = vmatprep.mubr.bf16.mxu0 %v788_v16 }
  0x3d   : > { %488 = vmatprep.mubr.bf16.mxu1 %v788_v16 }
  0x43   : > { %725 = vmatmul.mubr.msk.bf16.gmra.mrb[12].mxu0 %vm280_vm0, %v763_v45 }
  0x44   : > { %727 = vmatmul.mubr.msk.bf16.gmra.mrb[12].mxu1 %vm280_vm0, %v763_v45 }
  0xa2   : > { %v898_v47 = vpop.permute.xlu0 %252  ;;  %v904_v50 = vpop.permute.xlu1 %262 }
  0xa7   : > { %v902_v48 = vpop.permute.xlu0 %257 }
  0xa9   : > { %v923_v11 = vpop.permute.xlu1 %267 }
  0xfe   : > { %v321_v49 = vpop.f32.mrb[0].mxu0 }
  0xff   : > { %v322_v51 = vadd.f32 %v321_v49, %v898_v47  ;;  %v374_v52 = vpop.f32.mrb[0].mxu1  ;;  %v323_v53 = vpop.f32.mrb[1].mxu0 }
 0x100   : > { %v375_v54 = vadd.f32 %v374_v52, %v898_v47  ;;  %v324_v55 = vadd.f32 %v323_v53, %v898_v47  ;;  %v376_v56 = vpop.f32.mrb[1].mxu1  ;;  %v325_v57 = vpop.f32.mrb[2].mxu0 }
 0x101   : > { %v499_v58 = vmax.f32 %v322_v51, 0.0  ;;  %v377_v59 = vadd.f32 %v376_v56, %v898_v47  ;;  %v326_v60 = vadd.f32 %v325_v57, %v902_v48  ;;  %v378_v61 = vpop.f32.mrb[2].mxu1  ;;  %v327_v62 = vpop.f32.mrb[3].mxu0 }
 0x102   : > { %v501_v63 = vmax.f32 %v375_v54, 0.0  ;;  %v500_v0 = vmax.f32 %v324_v55, 0.0  ;;  %v379_v1 = vadd.f32 %v378_v61, %v902_v48  ;;  %v328_v2 = vadd.f32 %v327_v62, %v902_v48  ;;  %v380_v3 = vpop.f32.mrb[3].mxu1 }
 0x103   : > { %531 = vst [vmem:[%s913_s12] sm:$0xff] %v499_v58  ;;  %v502_v4 = vmax.f32 %v377_v59, 0.0  ;;  %v507_v5 = vmax.f32 %v326_v60, 0.0  ;;  %v381_v6 = vadd.f32 %v380_v3, %v902_v48 }
 0x104   : > { %533 = vst [vmem:[%s913_s12 + $0x10] sm:$0xff] %v501_v63  ;;  %532 = vst [vmem:[%s913_s12 + $0x8] sm:$0xff] %v500_v0  ;;  %v509_v7 = vmax.f32 %v379_v1, 0.0  ;;  %v508_v8 = vmax.f32 %v328_v2, 0.0 }
 0x105   : > { %534 = vst [vmem:[%s913_s12 + $0x18] sm:$0xff] %v502_v4  ;;  %539 = vst [vmem:[%s913_s12 + $0x40] sm:$0xff] %v507_v5  ;;  %v510_v9 = vmax.f32 %v381_v6, 0.0 }
 0x106   : > { %541 = vst [vmem:[%s913_s12 + $0x50] sm:$0xff] %v509_v7  ;;  %540 = vst [vmem:[%s913_s12 + $0x48] sm:$0xff] %v508_v8  ;;  %v331_v10 = vpop.f32.mrb[4].mxu0 }
 0x107   : > { %542 = vst [vmem:[%s913_s12 + $0x58] sm:$0xff] %v510_v9  ;;  %v332_v12 = vadd.f32 %v331_v10, %v904_v50  ;;  %v384_v13 = vpop.f32.mrb[4].mxu1  ;;  %v333_v14 = vpop.f32.mrb[5].mxu0 }
 0x108   : > { %v385_v15 = vadd.f32 %v384_v13, %v904_v50  ;;  %v334_v16 = vadd.f32 %v333_v14, %v904_v50  ;;  %v386_v17 = vpop.f32.mrb[5].mxu1  ;;  %v335_v18 = vpop.f32.mrb[6].mxu0 }
 0x109   : > { %v515_v19 = vmax.f32 %v332_v12, 0.0  ;;  %v387_v20 = vadd.f32 %v386_v17, %v904_v50  ;;  %v336_v21 = vadd.f32 %v335_v18, %v923_v11  ;;  %v388_v22 = vpop.f32.mrb[6].mxu1  ;;  %v337_v23 = vpop.f32.mrb[7].mxu0 }
 0x10a   : > { %v517_v24 = vmax.f32 %v385_v15, 0.0  ;;  %v516_v25 = vmax.f32 %v334_v16, 0.0  ;;  %v389_v26 = vadd.f32 %v388_v22, %v923_v11  ;;  %v338_v27 = vadd.f32 %v337_v23, %v923_v11  ;;  %v390_v28 = vpop.f32.mrb[7].mxu1 }
 0x10b   : > { %547 = vst [vmem:[%s913_s12 + $0x80] sm:$0xff] %v515_v19  ;;  %v518_v29 = vmax.f32 %v387_v20, 0.0  ;;  %v523_v30 = vmax.f32 %v336_v21, 0.0  ;;  %v391_v31 = vadd.f32 %v390_v28, %v923_v11  ;;  %v587_v20 = vld [vmem:[%s913_s12 + $0x8] sm:$0xff] (%p839_p5)  ;;  %v589_v21 = vld [vmem:[%s913_s12 + $0x10] sm:$0xff] (%p839_p5) }
 0x10c   : > { %549 = vst [vmem:[%s913_s12 + $0x90] sm:$0xff] %v517_v24  ;;  %548 = vst [vmem:[%s913_s12 + $0x88] sm:$0xff] %v516_v25  ;;  %v525_v32 = vmax.f32 %v389_v26, 0.0  ;;  %v524_v33 = vmax.f32 %v338_v27, 0.0  ;;  %v591_v22 = vld [vmem:[%s913_s12 + $0x18] sm:$0xff] (%p839_p5)  ;;  %v601_v27 = vld [vmem:[%s913_s12 + $0x40] sm:$0xff] (%p839_p5) }
 0x10d   : > { %550 = vst [vmem:[%s913_s12 + $0x98] sm:$0xff] %v518_v29  ;;  %555 = vst [vmem:[%s913_s12 + $0xc0] sm:$0xff] %v523_v30  ;;  %v526_v34 = vmax.f32 %v391_v31, 0.0  ;;  %v603_v28 = vld [vmem:[%s913_s12 + $0x48] sm:$0xff] (%p839_p5)  ;;  %v605_v29 = vld [vmem:[%s913_s12 + $0x50] sm:$0xff] (%p839_p5) }
 0x10e   : > { %557 = vst [vmem:[%s913_s12 + $0xd0] sm:$0xff] %v525_v32  ;;  %556 = vst [vmem:[%s913_s12 + $0xc8] sm:$0xff] %v524_v33  ;;  %v427_v35 = vpop.f32.mrb[8].mxu0  ;;  %v607_v30 = vld [vmem:[%s913_s12 + $0x58] sm:$0xff] (%p839_p5) }
 0x10f   : > { %558 = vst [vmem:[%s913_s12 + $0xd8] sm:$0xff] %v526_v34  ;;  %v428_v36 = vadd.f32 %v427_v35, %v898_v47  ;;  %v480_v37 = vpop.f32.mrb[8].mxu1  ;;  %v429_v38 = vpop.f32.mrb[9].mxu0  ;;  %588 = vst [vmem:[%s984_s20 + $0x8] sm:$0xff] (%p839_p5), %v587_v20 }
 0x110   : > { %v481_v39 = vadd.f32 %v480_v37, %v898_v47  ;;  %v430_v40 = vadd.f32 %v429_v38, %v898_v47  ;;  %v482_v41 = vpop.f32.mrb[9].mxu1  ;;  %v431_v42 = vpop.f32.mrb[10].mxu0  ;;  %590 = vst [vmem:[%s984_s20 + $0x10] sm:$0xff] (%p839_p5), %v589_v21  ;;  %592 = vst [vmem:[%s984_s20 + $0x18] sm:$0xff] (%p839_p5), %v591_v22 }
 0x111   : > { %v503_v43 = vmax.f32 %v428_v36, 0.0  ;;  %v483_v44 = vadd.f32 %v482_v41, %v898_v47  ;;  %v432_v45 = vadd.f32 %v431_v42, %v902_v48  ;;  %v484_v46 = vpop.f32.mrb[10].mxu1  ;;  %v433_v49 = vpop.f32.mrb[11].mxu0  ;;  %602 = vst [vmem:[%s984_s20 + $0x80] sm:$0xff] (%p839_p5), %v601_v27  ;;  %604 = vst [vmem:[%s984_s20 + $0x88] sm:$0xff] (%p839_p5), %v603_v28 }
 0x112   : > { %v505_v51 = vmax.f32 %v481_v39, 0.0  ;;  %v504_v52 = vmax.f32 %v430_v40, 0.0  ;;  %v485_v53 = vadd.f32 %v484_v46, %v902_v48  ;;  %v434_v54 = vadd.f32 %v433_v49, %v902_v48  ;;  %v486_v55 = vpop.f32.mrb[11].mxu1  ;;  %606 = vst [vmem:[%s984_s20 + $0x90] sm:$0xff] (%p839_p5), %v605_v29  ;;  %608 = vst [vmem:[%s984_s20 + $0x98] sm:$0xff] (%p839_p5), %v607_v30  ;;  %v617_v35 = vld [vmem:[%s913_s12 + $0x80] sm:$0xff] (%p839_p5) }
 0x113   : > { %535 = vst [vmem:[%s913_s12 + $0x20] sm:$0xff] %v503_v43  ;;  %v506_v56 = vmax.f32 %v483_v44, 0.0  ;;  %v511_v57 = vmax.f32 %v432_v45, 0.0  ;;  %v487_v47 = vadd.f32 %v486_v55, %v902_v48  ;;  %v619_v36 = vld [vmem:[%s913_s12 + $0x88] sm:$0xff] (%p839_p5)  ;;  %618 = vst [vmem:[%s984_s20 + $0x100] sm:$0xff] (%p839_p5), %v617_v35  ;;  %v621_v37 = vld [vmem:[%s913_s12 + $0x90] sm:$0xff] (%p839_p5) }
 0x114   : > { %537 = vst [vmem:[%s913_s12 + $0x30] sm:$0xff] %v505_v51  ;;  %536 = vst [vmem:[%s913_s12 + $0x28] sm:$0xff] %v504_v52  ;;  %v513_v58 = vmax.f32 %v485_v53, 0.0  ;;  %v512_v59 = vmax.f32 %v434_v54, 0.0  ;;  %v623_v38 = vld [vmem:[%s913_s12 + $0x98] sm:$0xff] (%p839_p5)  ;;  %v633_v43 = vld [vmem:[%s913_s12 + $0xc0] sm:$0xff] (%p839_p5) }
 0x115   : > { %538 = vst [vmem:[%s913_s12 + $0x38] sm:$0xff] %v506_v56  ;;  %543 = vst [vmem:[%s913_s12 + $0x60] sm:$0xff] %v511_v57  ;;  %v514_v60 = vmax.f32 %v487_v47, 0.0  ;;  %v635_v44 = vld [vmem:[%s913_s12 + $0xc8] sm:$0xff] (%p839_p5)  ;;  %v637_v45 = vld [vmem:[%s913_s12 + $0xd0] sm:$0xff] (%p839_p5) }
 0x116   : > { %545 = vst [vmem:[%s913_s12 + $0x70] sm:$0xff] %v513_v58  ;;  %544 = vst [vmem:[%s913_s12 + $0x68] sm:$0xff] %v512_v59  ;;  %v437_v61 = vpop.f32.mrb[12].mxu0  ;;  %v639_v46 = vld [vmem:[%s913_s12 + $0xd8] sm:$0xff] (%p839_p5) }
 0x117   : > { %546 = vst [vmem:[%s913_s12 + $0x78] sm:$0xff] %v514_v60  ;;  %v438_v62 = vadd.f32 %v437_v61, %v904_v50  ;;  %v490_v63 = vpop.f32.mrb[12].mxu1  ;;  %v439_v0 = vpop.f32.mrb[13].mxu0  ;;  %620 = vst [vmem:[%s984_s20 + $0x108] sm:$0xff] (%p839_p5), %v619_v36 }
 0x118   : > { %v491_v1 = vadd.f32 %v490_v63, %v904_v50  ;;  %v440_v48 = vadd.f32 %v439_v0, %v904_v50  ;;  %v492_v2 = vpop.f32.mrb[13].mxu1  ;;  %v441_v3 = vpop.f32.mrb[14].mxu0  ;;  %622 = vst [vmem:[%s984_s20 + $0x110] sm:$0xff] (%p839_p5), %v621_v37  ;;  %624 = vst [vmem:[%s984_s20 + $0x118] sm:$0xff] (%p839_p5), %v623_v38 }
 0x119   : > { %v519_v4 = vmax.f32 %v438_v62, 0.0  ;;  %v493_v5 = vadd.f32 %v492_v2, %v904_v50  ;;  %v442_v6 = vadd.f32 %v441_v3, %v923_v11  ;;  %v494_v7 = vpop.f32.mrb[14].mxu1  ;;  %v443_v8 = vpop.f32.mrb[15].mxu0  ;;  %569 = sbr.rel (!%p839_p5) target bundleno = 296 (0x128), region = 59  ;;  %634 = vst [vmem:[%s984_s20 + $0x180] sm:$0xff] (%p839_p5), %v633_v43  ;;  %636 = vst [vmem:[%s984_s20 + $0x188] sm:$0xff] (%p839_p5), %v635_v44 }
 0x11a   : > { %v521_v9 = vmax.f32 %v491_v1, 0.0  ;;  %v520_v10 = vmax.f32 %v440_v48, 0.0  ;;  %v495_v12 = vadd.f32 %v494_v7, %v923_v11  ;;  %v444_v13 = vadd.f32 %v443_v8, %v923_v11  ;;  %v496_v14 = vpop.f32.mrb[15].mxu1  ;;  %v593_v23 = vld [vmem:[%s913_s12 + $0x20] sm:$0xff] (%p839_p5)  ;;  %638 = vst [vmem:[%s984_s20 + $0x190] sm:$0xff] (%p839_p5), %v637_v45  ;;  %640 = vst [vmem:[%s984_s20 + $0x198] sm:$0xff] (%p839_p5), %v639_v46 }
 0x11b   : > { %551 = vst [vmem:[%s913_s12 + $0xa0] sm:$0xff] %v519_v4  ;;  %v522_v15 = vmax.f32 %v493_v5, 0.0  ;;  %v527_v16 = vmax.f32 %v442_v6, 0.0  ;;  %v497_v50 = vadd.f32 %v496_v14, %v923_v11  ;;  %v585_v11 = vld [vmem:[%s913_s12] sm:$0xff] (%p839_p5)  ;;  %v595_v24 = vld [vmem:[%s913_s12 + $0x28] sm:$0xff] (%p839_p5)  ;;  %594 = vst [vmem:[%s984_s20 + $0x20] sm:$0xff] (%p839_p5), %v593_v23 }
 0x11c   : > { %553 = vst [vmem:[%s913_s12 + $0xb0] sm:$0xff] %v521_v9  ;;  %552 = vst [vmem:[%s913_s12 + $0xa8] sm:$0xff] %v520_v10  ;;  %v529_v17 = vmax.f32 %v495_v12, 0.0  ;;  %v528_v18 = vmax.f32 %v444_v13, 0.0  ;;  %v597_v25 = vld [vmem:[%s913_s12 + $0x30] sm:$0xff] (%p839_p5)  ;;  %v599_v26 = vld [vmem:[%s913_s12 + $0x38] sm:$0xff] (%p839_p5) }
 0x11d   : > { %554 = vst [vmem:[%s913_s12 + $0xb8] sm:$0xff] %v522_v15  ;;  %559 = vst [vmem:[%s913_s12 + $0xe0] sm:$0xff] %v527_v16  ;;  %v530_v19 = vmax.f32 %v497_v50, 0.0  ;;  %v609_v31 = vld [vmem:[%s913_s12 + $0x60] sm:$0xff] (%p839_p5)  ;;  %v611_v32 = vld [vmem:[%s913_s12 + $0x68] sm:$0xff] (%p839_p5) }
 0x11e   : > { %561 = vst [vmem:[%s913_s12 + $0xf0] sm:$0xff] %v529_v17  ;;  %560 = vst [vmem:[%s913_s12 + $0xe8] sm:$0xff] %v528_v18  ;;  %v613_v33 = vld [vmem:[%s913_s12 + $0x70] sm:$0xff] (%p839_p5)  ;;  %v615_v34 = vld [vmem:[%s913_s12 + $0x78] sm:$0xff] (%p839_p5) }
 0x11f   : > { %562 = vst [vmem:[%s913_s12 + $0xf8] sm:$0xff] %v530_v19  ;;  %586 = vst [vmem:[%s984_s20] sm:$0xff] (%p839_p5), %v585_v11 }
 0x120   : > { %596 = vst [vmem:[%s984_s20 + $0x28] sm:$0xff] %v595_v24  ;;  %598 = vst [vmem:[%s984_s20 + $0x30] sm:$0xff] %v597_v25 }
 0x121   : > { %600 = vst [vmem:[%s984_s20 + $0x38] sm:$0xff] %v599_v26  ;;  %610 = vst [vmem:[%s984_s20 + $0xa0] sm:$0xff] %v609_v31 }
 0x122   : > { %612 = vst [vmem:[%s984_s20 + $0xa8] sm:$0xff] %v611_v32  ;;  %614 = vst [vmem:[%s984_s20 + $0xb0] sm:$0xff] %v613_v33  ;;  %v625_v39 = vld [vmem:[%s913_s12 + $0xa0] sm:$0xff] }
 0x123   : > { %616 = vst [vmem:[%s984_s20 + $0xb8] sm:$0xff] %v615_v34  ;;  %626 = vst [vmem:[%s984_s20 + $0x120] sm:$0xff] %v625_v39  ;;  %v627_v40 = vld [vmem:[%s913_s12 + $0xa8] sm:$0xff]  ;;  %v629_v41 = vld [vmem:[%s913_s12 + $0xb0] sm:$0xff] }
 0x124   : > { %v631_v42 = vld [vmem:[%s913_s12 + $0xb8] sm:$0xff]  ;;  %628 = vst [vmem:[%s984_s20 + $0x128] sm:$0xff] %v627_v40  ;;  %630 = vst [vmem:[%s984_s20 + $0x130] sm:$0xff] %v629_v41  ;;  %v641_v49 = vld [vmem:[%s913_s12 + $0xe0] sm:$0xff] }
 0x125   : > { %632 = vst [vmem:[%s984_s20 + $0x138] sm:$0xff] %v631_v42  ;;  %v643_v51 = vld [vmem:[%s913_s12 + $0xe8] sm:$0xff]  ;;  %642 = vst [vmem:[%s984_s20 + $0x1a0] sm:$0xff] %v641_v49  ;;  %v645_v52 = vld [vmem:[%s913_s12 + $0xf0] sm:$0xff] }
 0x126   : > { %644 = vst [vmem:[%s984_s20 + $0x1a8] sm:$0xff] %v643_v51  ;;  %v647_v53 = vld [vmem:[%s913_s12 + $0xf8] sm:$0xff]  ;;  %646 = vst [vmem:[%s984_s20 + $0x1b0] sm:$0xff] %v645_v52 }
 0x127   : > { %648 = vst [vmem:[%s984_s20 + $0x1b8] sm:$0xff] %v647_v53 }
 0x128 PF: > { %p10_p10 = scmp.ge.s32.totalorder %s826_s16, 4   ;;  %s1062_s12 = smov %s782_s13 }
 0x129   : > { %s1063_s13 = smov %s837_s19  ;;  %s1064_s14 = smov %s826_s16 }
 0x12a   :  { %12 = sbr.rel (!%p10_p10) target bundleno = 2 (0x2), region = 113 }

// kernel: encoder_burgess_forward.6
= control target key start
LH: loop header
LB: loop body
LE: loop exit
PB: predicated region body
PF: predicated region fallthrough
CT: control target
= control target key end

     0   :  { %s1049_s12 = smov 0   ;;  %s1051_s13 = smov 0   ;;  %s1557_s0 = inlined_call_operand.vmem [shape: bf16[32,512], index: 0, kind: input, shape index: {}]   ;;  %s1558_s1 = inlined_call_operand.vmem [shape: f32[512,512], index: 1, kind: input, shape index: {}]   ;;  %s1559_s2 = inlined_call_operand.vmem [shape: f32[32,1], index: 2, kind: input, shape index: {}]   ;;  %s1560_s3 = inlined_call_operand.vmem [shape: f32[32,512], index: 3, kind: output, shape index: {}]  }
   0x1   :  { %s1053_s14 = smov 0  }
   0x2 LB: > { %s924_s15 = sadd.s32 4294967295, %s1026_s14   ;;  %s1066_s16 = sadd.s32 1, %s1026_s14   ;;  %s1026_s14 = sphi %s1053_s14, %s1564_s14   ;;  %s1022_s13 = sphi %s1051_s13, %s1563_s13   ;;  %s1018_s12 = sphi %s1049_s12, %s1562_s12  }
   0x3   : > { %s38_s17 = ssub.s32 %s1026_s14, %s1066_s16  ;;  %s41_s18 = sadd.s32 1, %s1022_s13 }
   0x4   : > { %p39_p0 = scmp.eq.s32.totalorder %s38_s17, 0  ;;  %p48_p1 = scmp.ne.s32.totalorder %s1022_s13, %s1018_s12 }
   0x5   : > { %p49_p2 = scmp.eq.s32.totalorder %s1026_s14, 0  ;;  %p99_p3 = scmp.eq.s32.totalorder %s924_s15, 1 }
   0x6   : > { %s1077_s19 = scalar_select %p39_p0, %s1022_s13, %s41_s18  }
   0x7   : > { %p50_p4 = por %p49_p2, %p48_p1  ;;  %p1079_p5 = por %p99_p3, %p48_p1 }
   0x8   : > { %p927_p6 = scmp.ge.s32.totalorder %s1026_s14, 2 }
   0xa   : > { %127 = sbr.rel (%p927_p6) target bundleno = 85 (0x55), region = 24 }
  0x11   : > { %130 = sbr.rel (!%p50_p4) target bundleno = 85 (0x55), region = 28  ;;  %s132_s21 = sand.u32 (%p50_p4), 1, %s1022_s13  }
  0x12   : > { %s947_s22 = sshll.u32 (%p50_p4), %s1026_s14, 4  ;;  %s928_s23 = sshll.u32 (%p50_p4), %s132_s21, 10 }
  0x13   : > { %s1089_s26 = scalar_lea.vmem (%p50_p4), %s1558_s1, %s947_s22  ;;  %s1094_s27 = scalar_lea.vmem (%p50_p4), [#allocation2], %s928_s23 }
  0x14   : > { %v150_v0 = vld [vmem:[%s1089_s26] sm:$0xff] (%p50_p4)  ;;  %v152_v1 = vld [vmem:[%s1089_s26 + $0x8] sm:$0xff] (%p50_p4) }
  0x15   : > { %v154_v2 = vld [vmem:[%s1089_s26 + $0x20] sm:$0xff] (%p50_p4)  ;;  %151 = vst [vmem:[%s1094_s27] sm:$0xff] (%p50_p4), %v150_v0  ;;  %153 = vst [vmem:[%s1094_s27 + $0x8] sm:$0xff] (%p50_p4), %v152_v1  ;;  %v156_v3 = vld [vmem:[%s1089_s26 + $0x28] sm:$0xff] (%p50_p4) }
  0x16   : > { %155 = vst [vmem:[%s1094_s27 + $0x10] sm:$0xff] (%p50_p4), %v154_v2  ;;  %v158_v4 = vld [vmem:[%s1089_s26 + $0x40] sm:$0xff] (%p50_p4)  ;;  %v160_v5 = vld [vmem:[%s1089_s26 + $0x48] sm:$0xff] (%p50_p4)  ;;  %157 = vst [vmem:[%s1094_s27 + $0x18] sm:$0xff] (%p50_p4), %v156_v3 }
  0x17   : > { %159 = vst [vmem:[%s1094_s27 + $0x20] sm:$0xff] (%p50_p4), %v158_v4  ;;  %161 = vst [vmem:[%s1094_s27 + $0x28] sm:$0xff] (%p50_p4), %v160_v5  ;;  %v162_v6 = vld [vmem:[%s1089_s26 + $0x60] sm:$0xff] (%p50_p4)  ;;  %v164_v7 = vld [vmem:[%s1089_s26 + $0x68] sm:$0xff] (%p50_p4) }
  0x18   : > { %v166_v8 = vld [vmem:[%s1089_s26 + $0x80] sm:$0xff]  ;;  %163 = vst [vmem:[%s1094_s27 + $0x30] sm:$0xff] %v162_v6  ;;  %165 = vst [vmem:[%s1094_s27 + $0x38] sm:$0xff] %v164_v7  ;;  %v168_v9 = vld [vmem:[%s1089_s26 + $0x88] sm:$0xff] }
  0x19   : > { %167 = vst [vmem:[%s1094_s27 + $0x40] sm:$0xff] %v166_v8  ;;  %v170_v10 = vld [vmem:[%s1089_s26 + $0xa0] sm:$0xff]  ;;  %v172_v11 = vld [vmem:[%s1089_s26 + $0xa8] sm:$0xff]  ;;  %169 = vst [vmem:[%s1094_s27 + $0x48] sm:$0xff] %v168_v9 }
  0x1a   : > { %171 = vst [vmem:[%s1094_s27 + $0x50] sm:$0xff] %v170_v10  ;;  %173 = vst [vmem:[%s1094_s27 + $0x58] sm:$0xff] %v172_v11  ;;  %v174_v12 = vld [vmem:[%s1089_s26 + $0xc0] sm:$0xff]  ;;  %v176_v13 = vld [vmem:[%s1089_s26 + $0xc8] sm:$0xff] }
  0x1b   : > { %v178_v14 = vld [vmem:[%s1089_s26 + $0xe0] sm:$0xff]  ;;  %175 = vst [vmem:[%s1094_s27 + $0x60] sm:$0xff] %v174_v12  ;;  %177 = vst [vmem:[%s1094_s27 + $0x68] sm:$0xff] %v176_v13  ;;  %v180_v15 = vld [vmem:[%s1089_s26 + $0xe8] sm:$0xff] }
  0x1c   : > { %179 = vst [vmem:[%s1094_s27 + $0x70] sm:$0xff] %v178_v14  ;;  %v182_v16 = vld [vmem:[%s1089_s26 + $0x100] sm:$0xff]  ;;  %v184_v17 = vld [vmem:[%s1089_s26 + $0x108] sm:$0xff]  ;;  %181 = vst [vmem:[%s1094_s27 + $0x78] sm:$0xff] %v180_v15 }
  0x1d   : > { %183 = vst [vmem:[%s1094_s27 + $0x80] sm:$0xff] %v182_v16  ;;  %185 = vst [vmem:[%s1094_s27 + $0x88] sm:$0xff] %v184_v17  ;;  %v186_v18 = vld [vmem:[%s1089_s26 + $0x120] sm:$0xff]  ;;  %v188_v19 = vld [vmem:[%s1089_s26 + $0x128] sm:$0xff] }
  0x1e   : > { %v190_v20 = vld [vmem:[%s1089_s26 + $0x140] sm:$0xff]  ;;  %187 = vst [vmem:[%s1094_s27 + $0x90] sm:$0xff] %v186_v18  ;;  %189 = vst [vmem:[%s1094_s27 + $0x98] sm:$0xff] %v188_v19  ;;  %v192_v21 = vld [vmem:[%s1089_s26 + $0x148] sm:$0xff] }
  0x1f   : > { %191 = vst [vmem:[%s1094_s27 + $0xa0] sm:$0xff] %v190_v20  ;;  %v194_v22 = vld [vmem:[%s1089_s26 + $0x160] sm:$0xff]  ;;  %v196_v23 = vld [vmem:[%s1089_s26 + $0x168] sm:$0xff]  ;;  %193 = vst [vmem:[%s1094_s27 + $0xa8] sm:$0xff] %v192_v21 }
  0x20   : > { %195 = vst [vmem:[%s1094_s27 + $0xb0] sm:$0xff] %v194_v22  ;;  %197 = vst [vmem:[%s1094_s27 + $0xb8] sm:$0xff] %v196_v23  ;;  %v198_v24 = vld [vmem:[%s1089_s26 + $0x180] sm:$0xff]  ;;  %v200_v25 = vld [vmem:[%s1089_s26 + $0x188] sm:$0xff] }
  0x21   : > { %v202_v26 = vld [vmem:[%s1089_s26 + $0x1a0] sm:$0xff]  ;;  %199 = vst [vmem:[%s1094_s27 + $0xc0] sm:$0xff] %v198_v24  ;;  %201 = vst [vmem:[%s1094_s27 + $0xc8] sm:$0xff] %v200_v25  ;;  %v204_v27 = vld [vmem:[%s1089_s26 + $0x1a8] sm:$0xff] }
  0x22   : > { %203 = vst [vmem:[%s1094_s27 + $0xd0] sm:$0xff] %v202_v26  ;;  %v206_v28 = vld [vmem:[%s1089_s26 + $0x1c0] sm:$0xff]  ;;  %v208_v29 = vld [vmem:[%s1089_s26 + $0x1c8] sm:$0xff]  ;;  %205 = vst [vmem:[%s1094_s27 + $0xd8] sm:$0xff] %v204_v27 }
  0x23   : > { %207 = vst [vmem:[%s1094_s27 + $0xe0] sm:$0xff] %v206_v28  ;;  %209 = vst [vmem:[%s1094_s27 + $0xe8] sm:$0xff] %v208_v29  ;;  %v210_v30 = vld [vmem:[%s1089_s26 + $0x1e0] sm:$0xff]  ;;  %v212_v31 = vld [vmem:[%s1089_s26 + $0x1e8] sm:$0xff] }
  0x24   : > { %v214_v32 = vld [vmem:[%s1089_s26 + $0x200] sm:$0xff]  ;;  %211 = vst [vmem:[%s1094_s27 + $0xf0] sm:$0xff] %v210_v30  ;;  %213 = vst [vmem:[%s1094_s27 + $0xf8] sm:$0xff] %v212_v31  ;;  %v216_v33 = vld [vmem:[%s1089_s26 + $0x208] sm:$0xff] }
  0x25   : > { %215 = vst [vmem:[%s1094_s27 + $0x100] sm:$0xff] %v214_v32  ;;  %v218_v34 = vld [vmem:[%s1089_s26 + $0x220] sm:$0xff]  ;;  %v220_v35 = vld [vmem:[%s1089_s26 + $0x228] sm:$0xff]  ;;  %217 = vst [vmem:[%s1094_s27 + $0x108] sm:$0xff] %v216_v33 }
  0x26   : > { %219 = vst [vmem:[%s1094_s27 + $0x110] sm:$0xff] %v218_v34  ;;  %221 = vst [vmem:[%s1094_s27 + $0x118] sm:$0xff] %v220_v35  ;;  %v222_v36 = vld [vmem:[%s1089_s26 + $0x240] sm:$0xff]  ;;  %v224_v37 = vld [vmem:[%s1089_s26 + $0x248] sm:$0xff] }
  0x27   : > { %v226_v38 = vld [vmem:[%s1089_s26 + $0x260] sm:$0xff]  ;;  %223 = vst [vmem:[%s1094_s27 + $0x120] sm:$0xff] %v222_v36  ;;  %225 = vst [vmem:[%s1094_s27 + $0x128] sm:$0xff] %v224_v37  ;;  %v228_v39 = vld [vmem:[%s1089_s26 + $0x268] sm:$0xff] }
  0x28   : > { %227 = vst [vmem:[%s1094_s27 + $0x130] sm:$0xff] %v226_v38  ;;  %v230_v40 = vld [vmem:[%s1089_s26 + $0x280] sm:$0xff]  ;;  %v232_v41 = vld [vmem:[%s1089_s26 + $0x288] sm:$0xff]  ;;  %229 = vst [vmem:[%s1094_s27 + $0x138] sm:$0xff] %v228_v39 }
  0x29   : > { %231 = vst [vmem:[%s1094_s27 + $0x140] sm:$0xff] %v230_v40  ;;  %233 = vst [vmem:[%s1094_s27 + $0x148] sm:$0xff] %v232_v41  ;;  %v234_v42 = vld [vmem:[%s1089_s26 + $0x2a0] sm:$0xff]  ;;  %v236_v43 = vld [vmem:[%s1089_s26 + $0x2a8] sm:$0xff] }
  0x2a   : > { %v238_v44 = vld [vmem:[%s1089_s26 + $0x2c0] sm:$0xff]  ;;  %235 = vst [vmem:[%s1094_s27 + $0x150] sm:$0xff] %v234_v42  ;;  %237 = vst [vmem:[%s1094_s27 + $0x158] sm:$0xff] %v236_v43  ;;  %v240_v45 = vld [vmem:[%s1089_s26 + $0x2c8] sm:$0xff] }
  0x2b   : > { %239 = vst [vmem:[%s1094_s27 + $0x160] sm:$0xff] %v238_v44  ;;  %v242_v46 = vld [vmem:[%s1089_s26 + $0x2e0] sm:$0xff]  ;;  %v244_v47 = vld [vmem:[%s1089_s26 + $0x2e8] sm:$0xff]  ;;  %241 = vst [vmem:[%s1094_s27 + $0x168] sm:$0xff] %v240_v45 }
  0x2c   : > { %243 = vst [vmem:[%s1094_s27 + $0x170] sm:$0xff] %v242_v46  ;;  %245 = vst [vmem:[%s1094_s27 + $0x178] sm:$0xff] %v244_v47  ;;  %v246_v48 = vld [vmem:[%s1089_s26 + $0x300] sm:$0xff]  ;;  %v248_v49 = vld [vmem:[%s1089_s26 + $0x308] sm:$0xff] }
  0x2d   : > { %v250_v50 = vld [vmem:[%s1089_s26 + $0x320] sm:$0xff]  ;;  %247 = vst [vmem:[%s1094_s27 + $0x180] sm:$0xff] %v246_v48  ;;  %249 = vst [vmem:[%s1094_s27 + $0x188] sm:$0xff] %v248_v49  ;;  %v252_v51 = vld [vmem:[%s1089_s26 + $0x328] sm:$0xff] }
  0x2e   : > { %251 = vst [vmem:[%s1094_s27 + $0x190] sm:$0xff] %v250_v50  ;;  %v254_v52 = vld [vmem:[%s1089_s26 + $0x340] sm:$0xff]  ;;  %v256_v53 = vld [vmem:[%s1089_s26 + $0x348] sm:$0xff]  ;;  %253 = vst [vmem:[%s1094_s27 + $0x198] sm:$0xff] %v252_v51 }
  0x2f   : > { %255 = vst [vmem:[%s1094_s27 + $0x1a0] sm:$0xff] %v254_v52  ;;  %257 = vst [vmem:[%s1094_s27 + $0x1a8] sm:$0xff] %v256_v53  ;;  %v258_v54 = vld [vmem:[%s1089_s26 + $0x360] sm:$0xff]  ;;  %v260_v55 = vld [vmem:[%s1089_s26 + $0x368] sm:$0xff] }
  0x30   : > { %v262_v56 = vld [vmem:[%s1089_s26 + $0x380] sm:$0xff]  ;;  %259 = vst [vmem:[%s1094_s27 + $0x1b0] sm:$0xff] %v258_v54  ;;  %261 = vst [vmem:[%s1094_s27 + $0x1b8] sm:$0xff] %v260_v55  ;;  %v264_v57 = vld [vmem:[%s1089_s26 + $0x388] sm:$0xff] }
  0x31   : > { %263 = vst [vmem:[%s1094_s27 + $0x1c0] sm:$0xff] %v262_v56  ;;  %v266_v58 = vld [vmem:[%s1089_s26 + $0x3a0] sm:$0xff]  ;;  %v268_v59 = vld [vmem:[%s1089_s26 + $0x3a8] sm:$0xff]  ;;  %265 = vst [vmem:[%s1094_s27 + $0x1c8] sm:$0xff] %v264_v57 }
  0x32   : > { %267 = vst [vmem:[%s1094_s27 + $0x1d0] sm:$0xff] %v266_v58  ;;  %269 = vst [vmem:[%s1094_s27 + $0x1d8] sm:$0xff] %v268_v59  ;;  %v270_v60 = vld [vmem:[%s1089_s26 + $0x3c0] sm:$0xff]  ;;  %v272_v61 = vld [vmem:[%s1089_s26 + $0x3c8] sm:$0xff] }
  0x33   : > { %v274_v62 = vld [vmem:[%s1089_s26 + $0x3e0] sm:$0xff]  ;;  %271 = vst [vmem:[%s1094_s27 + $0x1e0] sm:$0xff] %v270_v60  ;;  %273 = vst [vmem:[%s1094_s27 + $0x1e8] sm:$0xff] %v272_v61  ;;  %v276_v63 = vld [vmem:[%s1089_s26 + $0x3e8] sm:$0xff] }
  0x34   : > { %275 = vst [vmem:[%s1094_s27 + $0x1f0] sm:$0xff] %v274_v62  ;;  %v278_v0 = vld [vmem:[%s1089_s26 + $0x400] sm:$0xff]  ;;  %v280_v1 = vld [vmem:[%s1089_s26 + $0x408] sm:$0xff]  ;;  %277 = vst [vmem:[%s1094_s27 + $0x1f8] sm:$0xff] %v276_v63 }
  0x35   : > { %279 = vst [vmem:[%s1094_s27 + $0x200] sm:$0xff] %v278_v0  ;;  %281 = vst [vmem:[%s1094_s27 + $0x208] sm:$0xff] %v280_v1  ;;  %v282_v2 = vld [vmem:[%s1089_s26 + $0x420] sm:$0xff]  ;;  %v284_v3 = vld [vmem:[%s1089_s26 + $0x428] sm:$0xff] }
  0x36   : > { %v286_v4 = vld [vmem:[%s1089_s26 + $0x440] sm:$0xff]  ;;  %283 = vst [vmem:[%s1094_s27 + $0x210] sm:$0xff] %v282_v2  ;;  %285 = vst [vmem:[%s1094_s27 + $0x218] sm:$0xff] %v284_v3  ;;  %v288_v5 = vld [vmem:[%s1089_s26 + $0x448] sm:$0xff] }
  0x37   : > { %287 = vst [vmem:[%s1094_s27 + $0x220] sm:$0xff] %v286_v4  ;;  %v290_v6 = vld [vmem:[%s1089_s26 + $0x460] sm:$0xff]  ;;  %v292_v7 = vld [vmem:[%s1089_s26 + $0x468] sm:$0xff]  ;;  %289 = vst [vmem:[%s1094_s27 + $0x228] sm:$0xff] %v288_v5 }
  0x38   : > { %291 = vst [vmem:[%s1094_s27 + $0x230] sm:$0xff] %v290_v6  ;;  %293 = vst [vmem:[%s1094_s27 + $0x238] sm:$0xff] %v292_v7  ;;  %v294_v8 = vld [vmem:[%s1089_s26 + $0x480] sm:$0xff]  ;;  %v296_v9 = vld [vmem:[%s1089_s26 + $0x488] sm:$0xff] }
  0x39   : > { %v298_v10 = vld [vmem:[%s1089_s26 + $0x4a0] sm:$0xff]  ;;  %295 = vst [vmem:[%s1094_s27 + $0x240] sm:$0xff] %v294_v8  ;;  %297 = vst [vmem:[%s1094_s27 + $0x248] sm:$0xff] %v296_v9  ;;  %v300_v11 = vld [vmem:[%s1089_s26 + $0x4a8] sm:$0xff] }
  0x3a   : > { %299 = vst [vmem:[%s1094_s27 + $0x250] sm:$0xff] %v298_v10  ;;  %v302_v12 = vld [vmem:[%s1089_s26 + $0x4c0] sm:$0xff]  ;;  %v304_v13 = vld [vmem:[%s1089_s26 + $0x4c8] sm:$0xff]  ;;  %301 = vst [vmem:[%s1094_s27 + $0x258] sm:$0xff] %v300_v11 }
  0x3b   : > { %303 = vst [vmem:[%s1094_s27 + $0x260] sm:$0xff] %v302_v12  ;;  %305 = vst [vmem:[%s1094_s27 + $0x268] sm:$0xff] %v304_v13  ;;  %v306_v14 = vld [vmem:[%s1089_s26 + $0x4e0] sm:$0xff]  ;;  %v308_v15 = vld [vmem:[%s1089_s26 + $0x4e8] sm:$0xff] }
  0x3c   : > { %v310_v16 = vld [vmem:[%s1089_s26 + $0x500] sm:$0xff]  ;;  %307 = vst [vmem:[%s1094_s27 + $0x270] sm:$0xff] %v306_v14  ;;  %309 = vst [vmem:[%s1094_s27 + $0x278] sm:$0xff] %v308_v15  ;;  %v312_v17 = vld [vmem:[%s1089_s26 + $0x508] sm:$0xff] }
  0x3d   : > { %311 = vst [vmem:[%s1094_s27 + $0x280] sm:$0xff] %v310_v16  ;;  %v314_v18 = vld [vmem:[%s1089_s26 + $0x520] sm:$0xff]  ;;  %v316_v19 = vld [vmem:[%s1089_s26 + $0x528] sm:$0xff]  ;;  %313 = vst [vmem:[%s1094_s27 + $0x288] sm:$0xff] %v312_v17 }
  0x3e   : > { %315 = vst [vmem:[%s1094_s27 + $0x290] sm:$0xff] %v314_v18  ;;  %317 = vst [vmem:[%s1094_s27 + $0x298] sm:$0xff] %v316_v19  ;;  %v318_v20 = vld [vmem:[%s1089_s26 + $0x540] sm:$0xff]  ;;  %v320_v21 = vld [vmem:[%s1089_s26 + $0x548] sm:$0xff] }
  0x3f   : > { %v322_v22 = vld [vmem:[%s1089_s26 + $0x560] sm:$0xff]  ;;  %319 = vst [vmem:[%s1094_s27 + $0x2a0] sm:$0xff] %v318_v20  ;;  %321 = vst [vmem:[%s1094_s27 + $0x2a8] sm:$0xff] %v320_v21  ;;  %v324_v23 = vld [vmem:[%s1089_s26 + $0x568] sm:$0xff] }
  0x40   : > { %323 = vst [vmem:[%s1094_s27 + $0x2b0] sm:$0xff] %v322_v22  ;;  %v326_v24 = vld [vmem:[%s1089_s26 + $0x580] sm:$0xff]  ;;  %v328_v25 = vld [vmem:[%s1089_s26 + $0x588] sm:$0xff]  ;;  %325 = vst [vmem:[%s1094_s27 + $0x2b8] sm:$0xff] %v324_v23 }
  0x41   : > { %327 = vst [vmem:[%s1094_s27 + $0x2c0] sm:$0xff] %v326_v24  ;;  %329 = vst [vmem:[%s1094_s27 + $0x2c8] sm:$0xff] %v328_v25  ;;  %v330_v26 = vld [vmem:[%s1089_s26 + $0x5a0] sm:$0xff]  ;;  %v332_v27 = vld [vmem:[%s1089_s26 + $0x5a8] sm:$0xff] }
  0x42   : > { %v334_v28 = vld [vmem:[%s1089_s26 + $0x5c0] sm:$0xff]  ;;  %331 = vst [vmem:[%s1094_s27 + $0x2d0] sm:$0xff] %v330_v26  ;;  %333 = vst [vmem:[%s1094_s27 + $0x2d8] sm:$0xff] %v332_v27  ;;  %v336_v29 = vld [vmem:[%s1089_s26 + $0x5c8] sm:$0xff] }
  0x43   : > { %335 = vst [vmem:[%s1094_s27 + $0x2e0] sm:$0xff] %v334_v28  ;;  %v338_v30 = vld [vmem:[%s1089_s26 + $0x5e0] sm:$0xff]  ;;  %v340_v31 = vld [vmem:[%s1089_s26 + $0x5e8] sm:$0xff]  ;;  %337 = vst [vmem:[%s1094_s27 + $0x2e8] sm:$0xff] %v336_v29 }
  0x44   : > { %339 = vst [vmem:[%s1094_s27 + $0x2f0] sm:$0xff] %v338_v30  ;;  %341 = vst [vmem:[%s1094_s27 + $0x2f8] sm:$0xff] %v340_v31  ;;  %v342_v32 = vld [vmem:[%s1089_s26 + $0x600] sm:$0xff]  ;;  %v344_v33 = vld [vmem:[%s1089_s26 + $0x608] sm:$0xff] }
  0x45   : > { %v346_v34 = vld [vmem:[%s1089_s26 + $0x620] sm:$0xff]  ;;  %343 = vst [vmem:[%s1094_s27 + $0x300] sm:$0xff] %v342_v32  ;;  %345 = vst [vmem:[%s1094_s27 + $0x308] sm:$0xff] %v344_v33  ;;  %v348_v35 = vld [vmem:[%s1089_s26 + $0x628] sm:$0xff] }
  0x46   : > { %347 = vst [vmem:[%s1094_s27 + $0x310] sm:$0xff] %v346_v34  ;;  %v350_v36 = vld [vmem:[%s1089_s26 + $0x640] sm:$0xff]  ;;  %v352_v37 = vld [vmem:[%s1089_s26 + $0x648] sm:$0xff]  ;;  %349 = vst [vmem:[%s1094_s27 + $0x318] sm:$0xff] %v348_v35 }
  0x47   : > { %351 = vst [vmem:[%s1094_s27 + $0x320] sm:$0xff] %v350_v36  ;;  %353 = vst [vmem:[%s1094_s27 + $0x328] sm:$0xff] %v352_v37  ;;  %v354_v38 = vld [vmem:[%s1089_s26 + $0x660] sm:$0xff]  ;;  %v356_v39 = vld [vmem:[%s1089_s26 + $0x668] sm:$0xff] }
  0x48   : > { %v358_v40 = vld [vmem:[%s1089_s26 + $0x680] sm:$0xff]  ;;  %355 = vst [vmem:[%s1094_s27 + $0x330] sm:$0xff] %v354_v38  ;;  %357 = vst [vmem:[%s1094_s27 + $0x338] sm:$0xff] %v356_v39  ;;  %v360_v41 = vld [vmem:[%s1089_s26 + $0x688] sm:$0xff] }
  0x49   : > { %359 = vst [vmem:[%s1094_s27 + $0x340] sm:$0xff] %v358_v40  ;;  %v362_v42 = vld [vmem:[%s1089_s26 + $0x6a0] sm:$0xff]  ;;  %v364_v43 = vld [vmem:[%s1089_s26 + $0x6a8] sm:$0xff]  ;;  %361 = vst [vmem:[%s1094_s27 + $0x348] sm:$0xff] %v360_v41 }
  0x4a   : > { %363 = vst [vmem:[%s1094_s27 + $0x350] sm:$0xff] %v362_v42  ;;  %365 = vst [vmem:[%s1094_s27 + $0x358] sm:$0xff] %v364_v43  ;;  %v366_v44 = vld [vmem:[%s1089_s26 + $0x6c0] sm:$0xff]  ;;  %v368_v45 = vld [vmem:[%s1089_s26 + $0x6c8] sm:$0xff] }
  0x4b   : > { %v370_v46 = vld [vmem:[%s1089_s26 + $0x6e0] sm:$0xff]  ;;  %367 = vst [vmem:[%s1094_s27 + $0x360] sm:$0xff] %v366_v44  ;;  %369 = vst [vmem:[%s1094_s27 + $0x368] sm:$0xff] %v368_v45  ;;  %v372_v47 = vld [vmem:[%s1089_s26 + $0x6e8] sm:$0xff] }
  0x4c   : > { %371 = vst [vmem:[%s1094_s27 + $0x370] sm:$0xff] %v370_v46  ;;  %v374_v48 = vld [vmem:[%s1089_s26 + $0x700] sm:$0xff]  ;;  %v376_v49 = vld [vmem:[%s1089_s26 + $0x708] sm:$0xff]  ;;  %373 = vst [vmem:[%s1094_s27 + $0x378] sm:$0xff] %v372_v47 }
  0x4d   : > { %375 = vst [vmem:[%s1094_s27 + $0x380] sm:$0xff] %v374_v48  ;;  %377 = vst [vmem:[%s1094_s27 + $0x388] sm:$0xff] %v376_v49  ;;  %v378_v50 = vld [vmem:[%s1089_s26 + $0x720] sm:$0xff]  ;;  %v380_v51 = vld [vmem:[%s1089_s26 + $0x728] sm:$0xff] }
  0x4e   : > { %v382_v52 = vld [vmem:[%s1089_s26 + $0x740] sm:$0xff]  ;;  %379 = vst [vmem:[%s1094_s27 + $0x390] sm:$0xff] %v378_v50  ;;  %381 = vst [vmem:[%s1094_s27 + $0x398] sm:$0xff] %v380_v51  ;;  %v384_v53 = vld [vmem:[%s1089_s26 + $0x748] sm:$0xff] }
  0x4f   : > { %383 = vst [vmem:[%s1094_s27 + $0x3a0] sm:$0xff] %v382_v52  ;;  %v386_v54 = vld [vmem:[%s1089_s26 + $0x760] sm:$0xff]  ;;  %v388_v55 = vld [vmem:[%s1089_s26 + $0x768] sm:$0xff]  ;;  %385 = vst [vmem:[%s1094_s27 + $0x3a8] sm:$0xff] %v384_v53 }
  0x50   : > { %387 = vst [vmem:[%s1094_s27 + $0x3b0] sm:$0xff] %v386_v54  ;;  %389 = vst [vmem:[%s1094_s27 + $0x3b8] sm:$0xff] %v388_v55  ;;  %v390_v56 = vld [vmem:[%s1089_s26 + $0x780] sm:$0xff]  ;;  %v392_v57 = vld [vmem:[%s1089_s26 + $0x788] sm:$0xff] }
  0x51   : > { %v394_v58 = vld [vmem:[%s1089_s26 + $0x7a0] sm:$0xff]  ;;  %391 = vst [vmem:[%s1094_s27 + $0x3c0] sm:$0xff] %v390_v56  ;;  %393 = vst [vmem:[%s1094_s27 + $0x3c8] sm:$0xff] %v392_v57  ;;  %v396_v59 = vld [vmem:[%s1089_s26 + $0x7a8] sm:$0xff] }
  0x52   : > { %395 = vst [vmem:[%s1094_s27 + $0x3d0] sm:$0xff] %v394_v58  ;;  %v398_v60 = vld [vmem:[%s1089_s26 + $0x7c0] sm:$0xff]  ;;  %v400_v61 = vld [vmem:[%s1089_s26 + $0x7c8] sm:$0xff]  ;;  %397 = vst [vmem:[%s1094_s27 + $0x3d8] sm:$0xff] %v396_v59 }
  0x53   : > { %399 = vst [vmem:[%s1094_s27 + $0x3e0] sm:$0xff] %v398_v60  ;;  %401 = vst [vmem:[%s1094_s27 + $0x3e8] sm:$0xff] %v400_v61  ;;  %v402_v62 = vld [vmem:[%s1089_s26 + $0x7e0] sm:$0xff]  ;;  %v404_v63 = vld [vmem:[%s1089_s26 + $0x7e8] sm:$0xff] }
  0x54   : > { %403 = vst [vmem:[%s1094_s27 + $0x3f0] sm:$0xff] %v402_v62  ;;  %405 = vst [vmem:[%s1094_s27 + $0x3f8] sm:$0xff] %v404_v63 }
  0x55 PF: > { %p931_p7 = scmp.ge.s32.totalorder %s1026_s14, 1  ;;  %p410_p8 = scmp.lt.s32.totalorder %s1026_s14, 3 }
  0x57   : > { %p411_p9 = pnand %p931_p7, %p410_p8 }
  0x58   : > { %s417_s28 = sand.u32 (!%p411_p9), 1, %s1018_s12   ;;  %v994_v0 = vld [vmem:[%s1557_s0 + $0x4] ss:$16 sps:$4 sm:$0xff] (!%p411_p9)   ;;  %v1028_v1 = vmov (!%p411_p9), 0   ;;  %v997_v2 = vld [vmem:[%s1557_s0 + $0xc] ss:$16 sps:$4 sm:$0xff] (!%p411_p9)  }
  0x59   : > { %414 = sbr.rel (%p411_p9) target bundleno = 396 (0x18c), region = 51  ;;  %s932_s29 = sshll.u32 (!%p411_p9), %s417_s28, 10  ;;  %990 = vset.pattern.permute.xlu0 (!%p411_p9), %v1028_v1  ;;  %991 = vset.pattern.permute.xlu1 (!%p411_p9), %v1028_v1 }
  0x5a   : > { %s1360_s7 = scalar_lea.vmem (!%p411_p9), [#allocation2], %s932_s29  ;;  %737 = vmatprep.mubr.bf16.mxu1 (!%p411_p9), %v994_v0  ;;  %790 = vmatprep.mubr.bf16.mxu0 (!%p411_p9), %v997_v2  ;;  %s933_s9 = sshll.u32 (!%p411_p9), %s417_s28, 6 }
  0x5b   : > { %v450_v3 = vld [vmem:[%s1360_s7 + $0x8] sm:$0xff] (!%p411_p9)  ;;  %v452_v4 = vld [vmem:[%s1360_s7 + $0x18] sm:$0xff] (!%p411_p9)  ;;  %v449_v8 = vld [vmem:[%s1360_s7] sm:$0xff] (!%p411_p9)  ;;  %s1522_s10 = scalar_lea.vmem (!%p411_p9), [#allocation3], %s933_s9 }
  0x5c   : > { %v514_v5 = vld [vmem:[%s1360_s7 + $0x208] sm:$0xff] (!%p411_p9)  ;;  %v578_v6 = vpack.c.bf16 (!%p411_p9), %v452_v4, %v450_v3  ;;  %v516_v7 = vld [vmem:[%s1360_s7 + $0x218] sm:$0xff] (!%p411_p9)  ;;  %v451_v9 = vld [vmem:[%s1360_s7 + $0x10] sm:$0xff] (!%p411_p9) }
  0x5d   : > { %v610_v10 = vpack.c.bf16 (!%p411_p9), %v516_v7, %v514_v5  ;;  %v577_v11 = vpack.c.bf16 (!%p411_p9), %v451_v9, %v449_v8  ;;  %v513_v12 = vld [vmem:[%s1360_s7 + $0x200] sm:$0xff] (!%p411_p9)  ;;  %v515_v13 = vld [vmem:[%s1360_s7 + $0x210] sm:$0xff] (!%p411_p9)  ;;  %v454_v14 = vld [vmem:[%s1360_s7 + $0x28] sm:$0xff] (!%p411_p9) }
  0x5e   : > { %705 = vmatprep.subr.bf16.mxu1 (!%p411_p9), %v578_v6  ;;  %v609_v15 = vpack.c.bf16 (!%p411_p9), %v515_v13, %v513_v12  ;;  %v456_v16 = vld [vmem:[%s1360_s7 + $0x38] sm:$0xff] (!%p411_p9)  ;;  %v518_v17 = vld [vmem:[%s1360_s7 + $0x228] sm:$0xff] (!%p411_p9)  ;;  %v453_v21 = vld [vmem:[%s1360_s7 + $0x20] sm:$0xff] (!%p411_p9) }
  0x5f   : > { %v520_v18 = vld [vmem:[%s1360_s7 + $0x238] sm:$0xff] (!%p411_p9)  ;;  %758 = vmatprep.subr.bf16.mxu0 (!%p411_p9), %v610_v10  ;;  %706 = vmatpush1.bf16.msra.mxu1 (!%p411_p9), %v577_v11  ;;  %v580_v19 = vpack.c.bf16 (!%p411_p9), %v456_v16, %v454_v14  ;;  %v455_v22 = vld [vmem:[%s1360_s7 + $0x30] sm:$0xff] (!%p411_p9)  ;;  %v517_v23 = vld [vmem:[%s1360_s7 + $0x220] sm:$0xff] (!%p411_p9) }
  0x60   : > { %v612_v20 = vpack.c.bf16 %v520_v18, %v518_v17  ;;  %759 = vmatpush1.bf16.msra.mxu0 %v609_v15  ;;  %v579_v24 = vpack.c.bf16 %v455_v22, %v453_v21  ;;  %v519_v25 = vld [vmem:[%s1360_s7 + $0x230] sm:$0xff]  ;;  %v458_v26 = vld [vmem:[%s1360_s7 + $0x48] sm:$0xff]  ;;  %v460_v27 = vld [vmem:[%s1360_s7 + $0x58] sm:$0xff]  ;;  %s948_s12 = sshll.u32 (%p1079_p5), %s924_s15, 4 }
  0x61   : > { %707 = vmatprep.subr.bf16.mxu1 %v580_v19  ;;  %v611_v28 = vpack.c.bf16 %v519_v25, %v517_v23  ;;  %v582_v29 = vpack.c.bf16 %v460_v27, %v458_v26  ;;  %v522_v30 = vld [vmem:[%s1360_s7 + $0x248] sm:$0xff]  ;;  %v524_v31 = vld [vmem:[%s1360_s7 + $0x258] sm:$0xff]  ;;  %v457_v32 = vld [vmem:[%s1360_s7 + $0x40] sm:$0xff]  ;;  %s836_s17 = scalar_lea.vmem (%p1079_p5), %s1560_s3, %s948_s12 }
  0x62   : > { %760 = vmatprep.subr.bf16.mxu0 %v612_v20  ;;  %v614_v33 = vpack.c.bf16 %v524_v31, %v522_v30  ;;  %v459_v34 = vld [vmem:[%s1360_s7 + $0x50] sm:$0xff]  ;;  %v521_v35 = vld [vmem:[%s1360_s7 + $0x240] sm:$0xff]  ;;  %v462_v38 = vld [vmem:[%s1360_s7 + $0x68] sm:$0xff] }
  0x63   : > { %v523_v36 = vld [vmem:[%s1360_s7 + $0x250] sm:$0xff]  ;;  %708 = vmatpush1.bf16.msra.mxu1 %v579_v24  ;;  %v581_v37 = vpack.c.bf16 %v459_v34, %v457_v32  ;;  %v464_v39 = vld [vmem:[%s1360_s7 + $0x78] sm:$0xff]  ;;  %v526_v40 = vld [vmem:[%s1360_s7 + $0x268] sm:$0xff] }
  0x64   : > { %761 = vmatpush1.bf16.msra.mxu0 %v611_v28  ;;  %709 = vmatprep.subr.bf16.mxu1 %v582_v29  ;;  %v613_v41 = vpack.c.bf16 %v523_v36, %v521_v35  ;;  %v584_v42 = vpack.c.bf16 %v464_v39, %v462_v38  ;;  %v528_v43 = vld [vmem:[%s1360_s7 + $0x278] sm:$0xff]  ;;  %v461_v44 = vld [vmem:[%s1360_s7 + $0x60] sm:$0xff]  ;;  %v463_v45 = vld [vmem:[%s1360_s7 + $0x70] sm:$0xff] }
  0x65   : > { %762 = vmatprep.subr.bf16.mxu0 %v614_v33  ;;  %v616_v46 = vpack.c.bf16 %v528_v43, %v526_v40  ;;  %v525_v47 = vld [vmem:[%s1360_s7 + $0x260] sm:$0xff]  ;;  %v527_v48 = vld [vmem:[%s1360_s7 + $0x270] sm:$0xff]  ;;  %v466_v49 = vld [vmem:[%s1360_s7 + $0x88] sm:$0xff]  ;;  %v583_v53 = vpack.c.bf16 %v463_v45, %v461_v44 }
  0x66   : > { %v468_v50 = vld [vmem:[%s1360_s7 + $0x98] sm:$0xff]  ;;  %v530_v51 = vld [vmem:[%s1360_s7 + $0x288] sm:$0xff]  ;;  %v615_v54 = vpack.c.bf16 %v527_v48, %v525_v47  ;;  %v465_v56 = vld [vmem:[%s1360_s7 + $0x80] sm:$0xff] }
  0x67   : > { %v532_v52 = vld [vmem:[%s1360_s7 + $0x298] sm:$0xff]  ;;  %710 = vmatpush1.bf16.msra.mxu1 %v581_v37  ;;  %v586_v55 = vpack.c.bf16 %v468_v50, %v466_v49  ;;  %v467_v57 = vld [vmem:[%s1360_s7 + $0x90] sm:$0xff]  ;;  %v529_v58 = vld [vmem:[%s1360_s7 + $0x280] sm:$0xff] }
  0x68   : > { %763 = vmatpush1.bf16.msra.mxu0 %v613_v41  ;;  %711 = vmatprep.subr.bf16.mxu1 %v584_v42  ;;  %v618_v59 = vpack.c.bf16 %v532_v52, %v530_v51  ;;  %v531_v60 = vld [vmem:[%s1360_s7 + $0x290] sm:$0xff]  ;;  %v470_v61 = vld [vmem:[%s1360_s7 + $0xa8] sm:$0xff]  ;;  %v472_v62 = vld [vmem:[%s1360_s7 + $0xb8] sm:$0xff]  ;;  %v585_v1 = vpack.c.bf16 %v467_v57, %v465_v56 }
  0x69   : > { %764 = vmatprep.subr.bf16.mxu0 %v616_v46  ;;  %v534_v63 = vld [vmem:[%s1360_s7 + $0x2a8] sm:$0xff]  ;;  %v536_v0 = vld [vmem:[%s1360_s7 + $0x2b8] sm:$0xff]  ;;  %v617_v2 = vpack.c.bf16 %v531_v60, %v529_v58  ;;  %v588_v3 = vpack.c.bf16 %v472_v62, %v470_v61  ;;  %v469_v4 = vld [vmem:[%s1360_s7 + $0xa0] sm:$0xff] }
  0x6a   : > { %v471_v5 = vld [vmem:[%s1360_s7 + $0xb0] sm:$0xff]  ;;  %v533_v6 = vld [vmem:[%s1360_s7 + $0x2a0] sm:$0xff]  ;;  %v620_v7 = vpack.c.bf16 %v536_v0, %v534_v63  ;;  %v474_v9 = vld [vmem:[%s1360_s7 + $0xc8] sm:$0xff] }
  0x6b   : > { %712 = vmatpush1.bf16.msra.mxu1 %v583_v53  ;;  %v535_v8 = vld [vmem:[%s1360_s7 + $0x2b0] sm:$0xff]  ;;  %v476_v10 = vld [vmem:[%s1360_s7 + $0xd8] sm:$0xff]  ;;  %v538_v11 = vld [vmem:[%s1360_s7 + $0x2c8] sm:$0xff]  ;;  %v587_v13 = vpack.c.bf16 %v471_v5, %v469_v4 }
  0x6c   : > { %765 = vmatpush1.bf16.msra.mxu0 %v615_v54  ;;  %713 = vmatprep.subr.bf16.mxu1 %v586_v55  ;;  %v540_v12 = vld [vmem:[%s1360_s7 + $0x2d8] sm:$0xff]  ;;  %v619_v14 = vpack.c.bf16 %v535_v8, %v533_v6  ;;  %v590_v15 = vpack.c.bf16 %v476_v10, %v474_v9  ;;  %v473_v16 = vld [vmem:[%s1360_s7 + $0xc0] sm:$0xff]  ;;  %v475_v17 = vld [vmem:[%s1360_s7 + $0xd0] sm:$0xff] }
  0x6d   : > { %766 = vmatprep.subr.bf16.mxu0 %v618_v59  ;;  %v537_v18 = vld [vmem:[%s1360_s7 + $0x2c0] sm:$0xff]  ;;  %v622_v19 = vpack.c.bf16 %v540_v12, %v538_v11  ;;  %v539_v20 = vld [vmem:[%s1360_s7 + $0x2d0] sm:$0xff]  ;;  %v478_v21 = vld [vmem:[%s1360_s7 + $0xe8] sm:$0xff]  ;;  %v589_v25 = vpack.c.bf16 %v475_v17, %v473_v16 }
  0x6e   : > { %v480_v22 = vld [vmem:[%s1360_s7 + $0xf8] sm:$0xff]  ;;  %v542_v23 = vld [vmem:[%s1360_s7 + $0x2e8] sm:$0xff]  ;;  %v621_v26 = vpack.c.bf16 %v539_v20, %v537_v18  ;;  %v477_v28 = vld [vmem:[%s1360_s7 + $0xe0] sm:$0xff] }
  0x6f   : > { %714 = vmatpush1.bf16.msra.mxu1 %v585_v1  ;;  %v544_v24 = vld [vmem:[%s1360_s7 + $0x2f8] sm:$0xff]  ;;  %v592_v27 = vpack.c.bf16 %v480_v22, %v478_v21  ;;  %v479_v29 = vld [vmem:[%s1360_s7 + $0xf0] sm:$0xff]  ;;  %v541_v30 = vld [vmem:[%s1360_s7 + $0x2e0] sm:$0xff] }
  0x70   : > { %767 = vmatpush1.bf16.msra.mxu0 %v617_v2  ;;  %715 = vmatprep.subr.bf16.mxu1 %v588_v3  ;;  %v624_v31 = vpack.c.bf16 %v544_v24, %v542_v23  ;;  %v543_v32 = vld [vmem:[%s1360_s7 + $0x2f0] sm:$0xff]  ;;  %v482_v33 = vld [vmem:[%s1360_s7 + $0x108] sm:$0xff]  ;;  %v484_v34 = vld [vmem:[%s1360_s7 + $0x118] sm:$0xff]  ;;  %v591_v37 = vpack.c.bf16 %v479_v29, %v477_v28 }
  0x71   : > { %768 = vmatprep.subr.bf16.mxu0 %v620_v7  ;;  %v546_v35 = vld [vmem:[%s1360_s7 + $0x308] sm:$0xff]  ;;  %v548_v36 = vld [vmem:[%s1360_s7 + $0x318] sm:$0xff]  ;;  %v623_v38 = vpack.c.bf16 %v543_v32, %v541_v30  ;;  %v594_v39 = vpack.c.bf16 %v484_v34, %v482_v33  ;;  %v481_v40 = vld [vmem:[%s1360_s7 + $0x100] sm:$0xff] }
  0x72   : > { %v483_v41 = vld [vmem:[%s1360_s7 + $0x110] sm:$0xff]  ;;  %v545_v42 = vld [vmem:[%s1360_s7 + $0x300] sm:$0xff]  ;;  %v626_v43 = vpack.c.bf16 %v548_v36, %v546_v35  ;;  %v486_v45 = vld [vmem:[%s1360_s7 + $0x128] sm:$0xff] }
  0x73   : > { %716 = vmatpush1.bf16.msra.mxu1 %v587_v13  ;;  %v547_v44 = vld [vmem:[%s1360_s7 + $0x310] sm:$0xff]  ;;  %v488_v46 = vld [vmem:[%s1360_s7 + $0x138] sm:$0xff]  ;;  %v550_v47 = vld [vmem:[%s1360_s7 + $0x328] sm:$0xff]  ;;  %v593_v49 = vpack.c.bf16 %v483_v41, %v481_v40 }
  0x74   : > { %769 = vmatpush1.bf16.msra.mxu0 %v619_v14  ;;  %717 = vmatprep.subr.bf16.mxu1 %v590_v15  ;;  %v552_v48 = vld [vmem:[%s1360_s7 + $0x338] sm:$0xff]  ;;  %v625_v50 = vpack.c.bf16 %v547_v44, %v545_v42  ;;  %v596_v51 = vpack.c.bf16 %v488_v46, %v486_v45  ;;  %v485_v52 = vld [vmem:[%s1360_s7 + $0x120] sm:$0xff]  ;;  %v487_v53 = vld [vmem:[%s1360_s7 + $0x130] sm:$0xff] }
  0x75   : > { %770 = vmatprep.subr.bf16.mxu0 %v622_v19  ;;  %v549_v54 = vld [vmem:[%s1360_s7 + $0x320] sm:$0xff]  ;;  %v628_v55 = vpack.c.bf16 %v552_v48, %v550_v47  ;;  %v551_v56 = vld [vmem:[%s1360_s7 + $0x330] sm:$0xff]  ;;  %v490_v57 = vld [vmem:[%s1360_s7 + $0x148] sm:$0xff]  ;;  %v595_v61 = vpack.c.bf16 %v487_v53, %v485_v52 }
  0x76   : > { %v492_v58 = vld [vmem:[%s1360_s7 + $0x158] sm:$0xff]  ;;  %v554_v59 = vld [vmem:[%s1360_s7 + $0x348] sm:$0xff]  ;;  %v627_v62 = vpack.c.bf16 %v551_v56, %v549_v54  ;;  %v489_v0 = vld [vmem:[%s1360_s7 + $0x140] sm:$0xff] }
  0x77   : > { %718 = vmatpush1.bf16.msra.mxu1 %v589_v25  ;;  %v556_v60 = vld [vmem:[%s1360_s7 + $0x358] sm:$0xff]  ;;  %v598_v63 = vpack.c.bf16 %v492_v58, %v490_v57  ;;  %v491_v1 = vld [vmem:[%s1360_s7 + $0x150] sm:$0xff]  ;;  %v553_v2 = vld [vmem:[%s1360_s7 + $0x340] sm:$0xff] }
  0x78   : > { %771 = vmatpush1.bf16.msra.mxu0 %v621_v26  ;;  %719 = vmatprep.subr.bf16.mxu1 %v592_v27  ;;  %v630_v3 = vpack.c.bf16 %v556_v60, %v554_v59  ;;  %v555_v4 = vld [vmem:[%s1360_s7 + $0x350] sm:$0xff]  ;;  %v494_v5 = vld [vmem:[%s1360_s7 + $0x168] sm:$0xff]  ;;  %v496_v6 = vld [vmem:[%s1360_s7 + $0x178] sm:$0xff]  ;;  %v597_v9 = vpack.c.bf16 %v491_v1, %v489_v0 }
  0x79   : > { %772 = vmatprep.subr.bf16.mxu0 %v624_v31  ;;  %v558_v7 = vld [vmem:[%s1360_s7 + $0x368] sm:$0xff]  ;;  %v560_v8 = vld [vmem:[%s1360_s7 + $0x378] sm:$0xff]  ;;  %v493_v10 = vld [vmem:[%s1360_s7 + $0x160] sm:$0xff]  ;;  %v629_v12 = vpack.c.bf16 %v555_v4, %v553_v2  ;;  %v600_v13 = vpack.c.bf16 %v496_v6, %v494_v5 }
  0x7a   : > { %v495_v11 = vld [vmem:[%s1360_s7 + $0x170] sm:$0xff]  ;;  %v557_v14 = vld [vmem:[%s1360_s7 + $0x360] sm:$0xff]  ;;  %v498_v16 = vld [vmem:[%s1360_s7 + $0x188] sm:$0xff]  ;;  %v632_v17 = vpack.c.bf16 %v560_v8, %v558_v7 }
  0x7b   : > { %720 = vmatpush1.bf16.msra.mxu1 %v591_v37  ;;  %v559_v15 = vld [vmem:[%s1360_s7 + $0x370] sm:$0xff]  ;;  %v500_v18 = vld [vmem:[%s1360_s7 + $0x198] sm:$0xff]  ;;  %v562_v19 = vld [vmem:[%s1360_s7 + $0x388] sm:$0xff]  ;;  %v599_v21 = vpack.c.bf16 %v495_v11, %v493_v10 }
  0x7c   : > { %773 = vmatpush1.bf16.msra.mxu0 %v623_v38  ;;  %721 = vmatprep.subr.bf16.mxu1 %v594_v39  ;;  %v564_v20 = vld [vmem:[%s1360_s7 + $0x398] sm:$0xff]  ;;  %v497_v22 = vld [vmem:[%s1360_s7 + $0x180] sm:$0xff]  ;;  %v499_v23 = vld [vmem:[%s1360_s7 + $0x190] sm:$0xff]  ;;  %v631_v24 = vpack.c.bf16 %v559_v15, %v557_v14  ;;  %v602_v25 = vpack.c.bf16 %v500_v18, %v498_v16 }
  0x7d   : > { %774 = vmatprep.subr.bf16.mxu0 %v626_v43  ;;  %v561_v26 = vld [vmem:[%s1360_s7 + $0x380] sm:$0xff]  ;;  %v643_v28 = vld [vmem:[%s1559_s2 + $0x10] sm:$0xff]  ;;  %v634_v29 = vpack.c.bf16 %v564_v20, %v562_v19  ;;  %v502_v31 = vld [vmem:[%s1360_s7 + $0x1a8] sm:$0xff]  ;;  %v601_v36 = vpack.c.bf16 %v499_v23, %v497_v22 }
  0x7e   : > { %v641_v27 = vld [vmem:[%s1559_s2] sm:$0xff]  ;;  %v563_v30 = vld [vmem:[%s1360_s7 + $0x390] sm:$0xff]  ;;  %v504_v32 = vld [vmem:[%s1360_s7 + $0x1b8] sm:$0xff]  ;;  %657 = vperm.xlu1 %991, %v643_v28  }
  0x7f   : > { %722 = vmatpush1.bf16.msra.mxu1 %v593_v49  ;;  %647 = vperm.xlu0 %990, %v641_v27   ;;  %v566_v33 = vld [vmem:[%s1360_s7 + $0x3a8] sm:$0xff]  ;;  %v568_v34 = vld [vmem:[%s1360_s7 + $0x3b8] sm:$0xff]  ;;  %v633_v38 = vpack.c.bf16 %v563_v30, %v561_v26  ;;  %v604_v39 = vpack.c.bf16 %v504_v32, %v502_v31  ;;  %v501_v40 = vld [vmem:[%s1360_s7 + $0x1a0] sm:$0xff] }
  0x80   : > { %775 = vmatpush1.bf16.msra.mxu0 %v625_v50  ;;  %723 = vmatprep.subr.bf16.mxu1 %v596_v51  ;;  %v642_v35 = vld [vmem:[%s1559_s2 + $0x8] sm:$0xff]  ;;  %v644_v37 = vld [vmem:[%s1559_s2 + $0x18] sm:$0xff]  ;;  %v503_v41 = vld [vmem:[%s1360_s7 + $0x1b0] sm:$0xff]  ;;  %v636_v43 = vpack.c.bf16 %v568_v34, %v566_v33 }
  0x81   : > { %776 = vmatprep.subr.bf16.mxu0 %v628_v55  ;;  %v565_v42 = vld [vmem:[%s1360_s7 + $0x3a0] sm:$0xff]  ;;  %v567_v44 = vld [vmem:[%s1360_s7 + $0x3b0] sm:$0xff]  ;;  %v506_v45 = vld [vmem:[%s1360_s7 + $0x1c8] sm:$0xff]  ;;  %v603_v49 = vpack.c.bf16 %v503_v41, %v501_v40 }
  0x82   : > { %v508_v46 = vld [vmem:[%s1360_s7 + $0x1d8] sm:$0xff]  ;;  %v570_v47 = vld [vmem:[%s1360_s7 + $0x3c8] sm:$0xff]  ;;  %662 = vperm.xlu1 %991, %v644_v37   ;;  %v635_v50 = vpack.c.bf16 %v567_v44, %v565_v42  ;;  %v505_v52 = vld [vmem:[%s1360_s7 + $0x1c0] sm:$0xff] }
  0x83   : > { %724 = vmatpush1.bf16.msra.mxu1 %v595_v61  ;;  %652 = vperm.xlu0 %990, %v642_v35   ;;  %v572_v48 = vld [vmem:[%s1360_s7 + $0x3d8] sm:$0xff]  ;;  %v606_v51 = vpack.c.bf16 %v508_v46, %v506_v45  ;;  %v507_v53 = vld [vmem:[%s1360_s7 + $0x1d0] sm:$0xff]  ;;  %v569_v54 = vld [vmem:[%s1360_s7 + $0x3c0] sm:$0xff] }
  0x84   : > { %777 = vmatpush1.bf16.msra.mxu0 %v627_v62  ;;  %725 = vmatprep.subr.bf16.mxu1 %v598_v63  ;;  %v638_v55 = vpack.c.bf16 %v572_v48, %v570_v47  ;;  %v571_v56 = vld [vmem:[%s1360_s7 + $0x3d0] sm:$0xff]  ;;  %v510_v57 = vld [vmem:[%s1360_s7 + $0x1e8] sm:$0xff]  ;;  %v512_v58 = vld [vmem:[%s1360_s7 + $0x1f8] sm:$0xff]  ;;  %v605_v61 = vpack.c.bf16 %v507_v53, %v505_v52 }
  0x85   : > { %778 = vmatprep.subr.bf16.mxu0 %v630_v3  ;;  %v574_v59 = vld [vmem:[%s1360_s7 + $0x3e8] sm:$0xff]  ;;  %v576_v60 = vld [vmem:[%s1360_s7 + $0x3f8] sm:$0xff]  ;;  %v637_v62 = vpack.c.bf16 %v571_v56, %v569_v54  ;;  %v608_v63 = vpack.c.bf16 %v512_v58, %v510_v57  ;;  %v509_v0 = vld [vmem:[%s1360_s7 + $0x1e0] sm:$0xff] }
  0x86   : > { %v511_v1 = vld [vmem:[%s1360_s7 + $0x1f0] sm:$0xff]  ;;  %v640_v2 = vpack.c.bf16 %v576_v60, %v574_v59  ;;  %v573_v3 = vld [vmem:[%s1360_s7 + $0x3e0] sm:$0xff]  ;;  %v995_v8 = vld [vmem:[%s1557_s0 + $0x8] ss:$16 sps:$4 sm:$0xff]  }
  0x87   : > { %726 = vmatpush1.bf16.msra.mxu1 %v597_v9  ;;  %v575_v4 = vld [vmem:[%s1360_s7 + $0x3f0] sm:$0xff]  ;;  %v607_v5 = vpack.c.bf16 %v511_v1, %v509_v0  ;;  %v1000_v10 = vld [vmem:[%s1557_s0 + $0x2c] ss:$16 sps:$4 sm:$0xff]  }
  0x88   : > { %779 = vmatpush1.bf16.msra.mxu0 %v629_v12  ;;  %727 = vmatprep.subr.bf16.mxu1 %v600_v13  ;;  %v639_v6 = vpack.c.bf16 %v575_v4, %v573_v3  ;;  %v992_v7 = vld [vmem:[%s1557_s0] ss:$16 sps:$4 sm:$0xff]   ;;  %v998_v9 = vld [vmem:[%s1557_s0 + $0x24] ss:$16 sps:$4 sm:$0xff]   ;;  %v1003_v12 = vld [vmem:[%s1557_s0 + $0x28] ss:$16 sps:$4 sm:$0xff]  }
  0x89   : > { %780 = vmatprep.subr.bf16.mxu0 %v632_v17  ;;  %v1002_v11 = vld [vmem:[%s1557_s0 + $0x20] ss:$16 sps:$4 sm:$0xff]  }
  0x8b   : > { %728 = vmatpush1.bf16.msra.mxu1 %v599_v21 }
  0x8c   : > { %781 = vmatpush1.bf16.msra.mxu0 %v631_v24  ;;  %729 = vmatprep.subr.bf16.mxu1 %v602_v25 }
  0x8d   : > { %782 = vmatprep.subr.bf16.mxu0 %v634_v29 }
  0x8f   : > { %730 = vmatpush1.bf16.msra.mxu1 %v601_v36 }
  0x90   : > { %783 = vmatpush1.bf16.msra.mxu0 %v633_v38  ;;  %731 = vmatprep.subr.bf16.mxu1 %v604_v39 }
  0x91   : > { %784 = vmatprep.subr.bf16.mxu0 %v636_v43 }
  0x93   : > { %732 = vmatpush1.bf16.msra.mxu1 %v603_v49 }
  0x94   : > { %785 = vmatpush1.bf16.msra.mxu0 %v635_v50  ;;  %733 = vmatprep.subr.bf16.mxu1 %v606_v51 }
  0x95   : > { %786 = vmatprep.subr.bf16.mxu0 %v638_v55 }
  0x97   : > { %734 = vmatpush1.bf16.msra.mxu1 %v605_v61 }
  0x98   : > { %787 = vmatpush1.bf16.msra.mxu0 %v637_v62  ;;  %735 = vmatprep.subr.bf16.mxu1 %v608_v63 }
  0x99   : > { %788 = vmatprep.subr.bf16.mxu0 %v640_v2 }
  0x9b   : > { %736 = vmatpush1.bf16.msra.mxu1 %v607_v5 }
  0x9c   : > { %789 = vmatpush1.bf16.msra.mxu0 %v639_v6 }
  0x9e   : > { %738 = vmatmul.mubr.bf16.vlgmr.msra.gmra.mrb[0].mxu1 %v992_v7 }
  0x9f   : > { %791 = vmatmul.mubr.bf16.vlgmr.msra.gmra.mrb[0].mxu0 %v995_v8  ;;  %747 = vmatprep.mubr.bf16.mxu1 %v998_v9 }
  0xa0   : > { %800 = vmatprep.mubr.bf16.mxu0 %v1000_v10 }
  0xa6   : > { %748 = vmatmul.mubr.bf16.gmra.mrb[4].mxu1 %v1002_v11 }
  0xa7   : > { %801 = vmatmul.mubr.bf16.gmra.mrb[4].mxu0 %v1003_v12 }
  0xfd   : > { %v658_v14 = vpop.permute.xlu1 %657 }
  0xfe   : > { %v648_v13 = vpop.permute.xlu0 %647 }
 0x101   : > { %v663_v36 = vpop.permute.xlu1 %662 }
 0x102   : > { %v653_v16 = vpop.permute.xlu0 %652 }
 0x171   : > { %v739_v15 = vpop.f32.mrb[0].mxu1 }
 0x172   : > { %v740_v17 = vadd.f32 %v739_v15, %v648_v13  ;;  %v792_v18 = vpop.f32.mrb[0].mxu0  ;;  %v741_v19 = vpop.f32.mrb[1].mxu1 }
 0x173   : > { %v742_v20 = vadd.f32 %v741_v19, %v648_v13  ;;  %v794_v21 = vpop.f32.mrb[1].mxu0  ;;  %v743_v22 = vpop.f32.mrb[2].mxu1 }
 0x174   : > { %v793_v23 = vadd.f32 %v792_v18, %v740_v17  ;;  %v744_v24 = vadd.f32 %v743_v22, %v653_v16  ;;  %v796_v25 = vpop.f32.mrb[2].mxu0  ;;  %v745_v26 = vpop.f32.mrb[3].mxu1 }
 0x175   : > { %v795_v27 = vadd.f32 %v794_v21, %v742_v20  ;;  %v746_v28 = vadd.f32 %v745_v26, %v653_v16  ;;  %v798_v29 = vpop.f32.mrb[3].mxu0 }
 0x176   : > { %v811_v30 = vmax.f32 %v793_v23, 0.0  ;;  %v797_v31 = vadd.f32 %v796_v25, %v744_v24 }
 0x177   : > { %v812_v32 = vmax.f32 %v795_v27, 0.0  ;;  %v799_v33 = vadd.f32 %v798_v29, %v746_v28 }
 0x178   : > { %819 = vst [vmem:[%s1522_s10] sm:$0xff] %v811_v30  ;;  %v813_v34 = vmax.f32 %v797_v31, 0.0 }
 0x179   : > { %820 = vst [vmem:[%s1522_s10 + $0x8] sm:$0xff] %v812_v32  ;;  %v814_v35 = vmax.f32 %v799_v33, 0.0  ;;  %v749_v37 = vpop.f32.mrb[4].mxu1 }
 0x17a   : > { %821 = vst [vmem:[%s1522_s10 + $0x10] sm:$0xff] %v813_v34  ;;  %v750_v38 = vadd.f32 %v749_v37, %v658_v14  ;;  %v802_v39 = vpop.f32.mrb[4].mxu0  ;;  %v751_v40 = vpop.f32.mrb[5].mxu1 }
 0x17b   : > { %822 = vst [vmem:[%s1522_s10 + $0x18] sm:$0xff] %v814_v35  ;;  %v752_v41 = vadd.f32 %v751_v40, %v658_v14  ;;  %v804_v42 = vpop.f32.mrb[5].mxu0  ;;  %v753_v43 = vpop.f32.mrb[6].mxu1 }
 0x17c   : > { %v803_v44 = vadd.f32 %v802_v39, %v750_v38  ;;  %v754_v45 = vadd.f32 %v753_v43, %v663_v36  ;;  %v806_v46 = vpop.f32.mrb[6].mxu0  ;;  %v755_v47 = vpop.f32.mrb[7].mxu1 }
 0x17d   : > { %v805_v48 = vadd.f32 %v804_v42, %v752_v41  ;;  %v756_v49 = vadd.f32 %v755_v47, %v663_v36  ;;  %v808_v50 = vpop.f32.mrb[7].mxu0  ;;  %833 = sbr.rel (!%p1079_p5) target bundleno = 396 (0x18c), region = 59 }
 0x17e   : > { %v815_v51 = vmax.f32 %v803_v44, 0.0  ;;  %v807_v52 = vadd.f32 %v806_v46, %v754_v45 }
 0x17f   : > { %v816_v53 = vmax.f32 %v805_v48, 0.0  ;;  %v809_v54 = vadd.f32 %v808_v50, %v756_v49  ;;  %v849_v57 = vld [vmem:[%s1522_s10] sm:$0xff] (%p1079_p5) }
 0x180   : > { %823 = vst [vmem:[%s1522_s10 + $0x20] sm:$0xff] %v815_v51  ;;  %v817_v55 = vmax.f32 %v807_v52, 0.0  ;;  %v851_v58 = vld [vmem:[%s1522_s10 + $0x8] sm:$0xff] (%p1079_p5)  ;;  %850 = vst [vmem:[%s836_s17] sm:$0xff] (%p1079_p5), %v849_v57 }
 0x181   : > { %824 = vst [vmem:[%s1522_s10 + $0x28] sm:$0xff] %v816_v53  ;;  %v818_v56 = vmax.f32 %v809_v54, 0.0  ;;  %v853_v59 = vld [vmem:[%s1522_s10 + $0x10] sm:$0xff] (%p1079_p5)  ;;  %852 = vst [vmem:[%s836_s17 + $0x8] sm:$0xff] (%p1079_p5), %v851_v58 }
 0x182   : > { %825 = vst [vmem:[%s1522_s10 + $0x30] sm:$0xff] %v817_v55  ;;  %v855_v60 = vld [vmem:[%s1522_s10 + $0x18] sm:$0xff] (%p1079_p5)  ;;  %854 = vst [vmem:[%s836_s17 + $0x20] sm:$0xff] (%p1079_p5), %v853_v59 }
 0x183   : > { %826 = vst [vmem:[%s1522_s10 + $0x38] sm:$0xff] %v818_v56  ;;  %856 = vst [vmem:[%s836_s17 + $0x28] sm:$0xff] (%p1079_p5), %v855_v60 }
 0x187   : > { %v857_v61 = vld [vmem:[%s1522_s10 + $0x20] sm:$0xff] }
 0x188   : > { %v859_v62 = vld [vmem:[%s1522_s10 + $0x28] sm:$0xff]  ;;  %858 = vst [vmem:[%s836_s17 + $0x40] sm:$0xff] %v857_v61 }
 0x189   : > { %860 = vst [vmem:[%s836_s17 + $0x48] sm:$0xff] %v859_v62  ;;  %v861_v63 = vld [vmem:[%s1522_s10 + $0x30] sm:$0xff] }
 0x18a   : > { %v863_v0 = vld [vmem:[%s1522_s10 + $0x38] sm:$0xff]  ;;  %862 = vst [vmem:[%s836_s17 + $0x60] sm:$0xff] %v861_v63 }
 0x18b   : > { %864 = vst [vmem:[%s836_s17 + $0x68] sm:$0xff] %v863_v0 }
 0x18c PF: > { %p10_p10 = scmp.ge.s32.totalorder %s1066_s16, 4   ;;  %s1562_s12 = smov %s1022_s13 }
 0x18d   : > { %s1563_s13 = smov %s1077_s19  ;;  %s1564_s14 = smov %s1066_s16 }
 0x18e   :  { %12 = sbr.rel (!%p10_p10) target bundleno = 2 (0x2), region = 113 }

// kernel: encoder_burgess_forward.7
= control target key start
LH: loop header
LB: loop body
LE: loop exit
PB: predicated region body
PF: predicated region fallthrough
CT: control target
= control target key end

     0   :  { %v372_v3 = vmov 0   ;;  %s633_s1 = inlined_call_operand.vmem [shape: f32[512,128], index: 1, kind: input, shape index: {}]   ;;  %s634_s0 = inlined_call_operand.vmem [shape: bf16[32,512], index: 0, kind: input, shape index: {}]   ;;  %s635_s2 = inlined_call_operand.vmem [shape: f32[32,1], index: 2, kind: input, shape index: {}]   ;;  %s636_s3 = inlined_call_operand.vmem [shape: f32[32,128], index: 3, kind: output, shape index: {}]  }
   0x1   :  { %v39_v0 = vld [vmem:[%s633_s1 + $0x80] sm:$0xff]  ;;  %v40_v1 = vld [vmem:[%s633_s1 + $0x88] sm:$0xff]  ;;  %358 = vset.pattern.permute.xlu0 %v372_v3  ;;  %359 = vset.pattern.permute.xlu1 %v372_v3  ;;  %v41_v12 = vld [vmem:[%s633_s1 + $0x90] sm:$0xff] }
   0x2   :  { %v71_v2 = vld [vmem:[%s633_s1 + $0x180] sm:$0xff]  ;;  %v95_v4 = vpack.c.bf16 %v40_v1, %v39_v0  ;;  %v72_v5 = vld [vmem:[%s633_s1 + $0x188] sm:$0xff]  ;;  %v42_v14 = vld [vmem:[%s633_s1 + $0x98] sm:$0xff] }
   0x3   :  { %v23_v6 = vld [vmem:[%s633_s1] sm:$0xff]  ;;  %v24_v7 = vld [vmem:[%s633_s1 + $0x8] sm:$0xff]  ;;  %v111_v8 = vpack.c.bf16 %v72_v5, %v71_v2  ;;  %v73_v15 = vld [vmem:[%s633_s1 + $0x190] sm:$0xff]  ;;  %v96_v17 = vpack.c.bf16 %v42_v14, %v41_v12 }
   0x4   :  { %v87_v9 = vpack.c.bf16 %v24_v7, %v23_v6  ;;  %v55_v10 = vld [vmem:[%s633_s1 + $0x100] sm:$0xff]  ;;  %v56_v11 = vld [vmem:[%s633_s1 + $0x108] sm:$0xff]  ;;  %301 = vmatprep.subr.bf16.mxu0 %v95_v4  ;;  %v74_v16 = vld [vmem:[%s633_s1 + $0x198] sm:$0xff] }
   0x5   :  { %v103_v13 = vpack.c.bf16 %v56_v11, %v55_v10  ;;  %329 = vmatprep.subr.bf16.mxu1 %v111_v8  ;;  %v112_v18 = vpack.c.bf16 %v74_v16, %v73_v15  ;;  %v25_v19 = vld [vmem:[%s633_s1 + $0x10] sm:$0xff]  ;;  %v26_v20 = vld [vmem:[%s633_s1 + $0x18] sm:$0xff]  ;;  %v43_v24 = vld [vmem:[%s633_s1 + $0xa0] sm:$0xff] }
   0x6   :  { %302 = vmatpush3.bf16.msra.mxu0 %v87_v9  ;;  %v57_v21 = vld [vmem:[%s633_s1 + $0x110] sm:$0xff]  ;;  %v88_v22 = vpack.c.bf16 %v26_v20, %v25_v19  ;;  %v58_v23 = vld [vmem:[%s633_s1 + $0x118] sm:$0xff]  ;;  %v44_v25 = vld [vmem:[%s633_s1 + $0xa8] sm:$0xff] }
   0x7   :  { %330 = vmatpush3.bf16.msra.mxu1 %v103_v13  ;;  %303 = vmatprep.subr.bf16.mxu0 %v96_v17  ;;  %v104_v26 = vpack.c.bf16 %v58_v23, %v57_v21  ;;  %v97_v27 = vpack.c.bf16 %v44_v25, %v43_v24  ;;  %v75_v28 = vld [vmem:[%s633_s1 + $0x1a0] sm:$0xff]  ;;  %v76_v29 = vld [vmem:[%s633_s1 + $0x1a8] sm:$0xff]  ;;  %v45_v36 = vld [vmem:[%s633_s1 + $0xb0] sm:$0xff] }
   0x8   :  { %331 = vmatprep.subr.bf16.mxu1 %v112_v18  ;;  %v27_v30 = vld [vmem:[%s633_s1 + $0x20] sm:$0xff]  ;;  %v113_v31 = vpack.c.bf16 %v76_v29, %v75_v28  ;;  %v28_v32 = vld [vmem:[%s633_s1 + $0x28] sm:$0xff]  ;;  %v46_v37 = vld [vmem:[%s633_s1 + $0xb8] sm:$0xff] }
   0x9   :  { %v59_v33 = vld [vmem:[%s633_s1 + $0x120] sm:$0xff]  ;;  %v60_v34 = vld [vmem:[%s633_s1 + $0x128] sm:$0xff]  ;;  %v89_v35 = vpack.c.bf16 %v28_v32, %v27_v30  ;;  %v77_v38 = vld [vmem:[%s633_s1 + $0x1b0] sm:$0xff]  ;;  %v98_v40 = vpack.c.bf16 %v46_v37, %v45_v36 }
   0xa   :  { %304 = vmatpush3.bf16.msra.mxu0 %v88_v22  ;;  %v105_v39 = vpack.c.bf16 %v60_v34, %v59_v33  ;;  %v78_v41 = vld [vmem:[%s633_s1 + $0x1b8] sm:$0xff]  ;;  %v29_v42 = vld [vmem:[%s633_s1 + $0x30] sm:$0xff]  ;;  %v47_v47 = vld [vmem:[%s633_s1 + $0xc0] sm:$0xff] }
   0xb   :  { %332 = vmatpush3.bf16.msra.mxu1 %v104_v26  ;;  %305 = vmatprep.subr.bf16.mxu0 %v97_v27  ;;  %v30_v43 = vld [vmem:[%s633_s1 + $0x38] sm:$0xff]  ;;  %v114_v44 = vpack.c.bf16 %v78_v41, %v77_v38  ;;  %v61_v45 = vld [vmem:[%s633_s1 + $0x130] sm:$0xff]  ;;  %v48_v48 = vld [vmem:[%s633_s1 + $0xc8] sm:$0xff] }
   0xc   :  { %333 = vmatprep.subr.bf16.mxu1 %v113_v31  ;;  %v62_v46 = vld [vmem:[%s633_s1 + $0x138] sm:$0xff]  ;;  %v79_v49 = vld [vmem:[%s633_s1 + $0x1c0] sm:$0xff]  ;;  %v80_v50 = vld [vmem:[%s633_s1 + $0x1c8] sm:$0xff]  ;;  %v90_v51 = vpack.c.bf16 %v30_v43, %v29_v42  ;;  %v99_v53 = vpack.c.bf16 %v48_v48, %v47_v47 }
   0xd   :  { %v106_v52 = vpack.c.bf16 %v62_v46, %v61_v45  ;;  %v31_v54 = vld [vmem:[%s633_s1 + $0x40] sm:$0xff]  ;;  %v32_v55 = vld [vmem:[%s633_s1 + $0x48] sm:$0xff]  ;;  %v115_v57 = vpack.c.bf16 %v80_v50, %v79_v49  ;;  %v49_v59 = vld [vmem:[%s633_s1 + $0xd0] sm:$0xff] }
   0xe   :  { %306 = vmatpush3.bf16.msra.mxu0 %v89_v35  ;;  %v63_v56 = vld [vmem:[%s633_s1 + $0x140] sm:$0xff]  ;;  %v64_v58 = vld [vmem:[%s633_s1 + $0x148] sm:$0xff]  ;;  %v50_v60 = vld [vmem:[%s633_s1 + $0xd8] sm:$0xff]  ;;  %v91_v63 = vpack.c.bf16 %v32_v55, %v31_v54 }
   0xf   :  { %334 = vmatpush3.bf16.msra.mxu1 %v105_v39  ;;  %307 = vmatprep.subr.bf16.mxu0 %v98_v40  ;;  %v81_v61 = vld [vmem:[%s633_s1 + $0x1d0] sm:$0xff]  ;;  %v82_v62 = vld [vmem:[%s633_s1 + $0x1d8] sm:$0xff]  ;;  %v107_v1 = vpack.c.bf16 %v64_v58, %v63_v56  ;;  %v100_v2 = vpack.c.bf16 %v50_v60, %v49_v59  ;;  %v51_v7 = vld [vmem:[%s633_s1 + $0xe0] sm:$0xff] }
  0x10   :  { %335 = vmatprep.subr.bf16.mxu1 %v114_v44  ;;  %v33_v0 = vld [vmem:[%s633_s1 + $0x50] sm:$0xff]  ;;  %v34_v3 = vld [vmem:[%s633_s1 + $0x58] sm:$0xff]  ;;  %v116_v6 = vpack.c.bf16 %v82_v62, %v81_v61  ;;  %v52_v8 = vld [vmem:[%s633_s1 + $0xe8] sm:$0xff] }
  0x11   :  { %v65_v4 = vld [vmem:[%s633_s1 + $0x150] sm:$0xff]  ;;  %v66_v5 = vld [vmem:[%s633_s1 + $0x158] sm:$0xff]  ;;  %v83_v9 = vld [vmem:[%s633_s1 + $0x1e0] sm:$0xff]  ;;  %v92_v13 = vpack.c.bf16 %v34_v3, %v33_v0  ;;  %v101_v18 = vpack.c.bf16 %v52_v8, %v51_v7 }
  0x12   :  { %308 = vmatpush3.bf16.msra.mxu0 %v90_v51  ;;  %v84_v10 = vld [vmem:[%s633_s1 + $0x1e8] sm:$0xff]  ;;  %v35_v11 = vld [vmem:[%s633_s1 + $0x60] sm:$0xff]  ;;  %v53_v16 = vld [vmem:[%s633_s1 + $0xf0] sm:$0xff]  ;;  %v108_v17 = vpack.c.bf16 %v66_v5, %v65_v4 }
  0x13   :  { %336 = vmatpush3.bf16.msra.mxu1 %v106_v52  ;;  %309 = vmatprep.subr.bf16.mxu0 %v99_v53  ;;  %v36_v12 = vld [vmem:[%s633_s1 + $0x68] sm:$0xff]  ;;  %v67_v14 = vld [vmem:[%s633_s1 + $0x160] sm:$0xff]  ;;  %v54_v19 = vld [vmem:[%s633_s1 + $0xf8] sm:$0xff]  ;;  %v117_v20 = vpack.c.bf16 %v84_v10, %v83_v9 }
  0x14   :  { %337 = vmatprep.subr.bf16.mxu1 %v115_v57  ;;  %v68_v15 = vld [vmem:[%s633_s1 + $0x168] sm:$0xff]  ;;  %v85_v21 = vld [vmem:[%s633_s1 + $0x1f0] sm:$0xff]  ;;  %v86_v23 = vld [vmem:[%s633_s1 + $0x1f8] sm:$0xff]  ;;  %v93_v25 = vpack.c.bf16 %v36_v12, %v35_v11  ;;  %v102_v28 = vpack.c.bf16 %v54_v19, %v53_v16 }
  0x15   :  { %v362_v22 = vld [vmem:[%s634_s0 + $0x4] ss:$16 sps:$4 sm:$0xff]   ;;  %v365_v24 = vld [vmem:[%s634_s0 + $0xc] ss:$16 sps:$4 sm:$0xff]   ;;  %v109_v27 = vpack.c.bf16 %v68_v15, %v67_v14  ;;  %v118_v30 = vpack.c.bf16 %v86_v23, %v85_v21  ;;  %v360_v39 = vld [vmem:[%s634_s0] ss:$16 sps:$4 sm:$0xff]  }
  0x16   :  { %310 = vmatpush3.bf16.msra.mxu0 %v91_v63  ;;  %v37_v26 = vld [vmem:[%s633_s1 + $0x70] sm:$0xff]  ;;  %215 = vmatprep.mubr.bf16.mxu0 %v362_v22  ;;  %v38_v29 = vld [vmem:[%s633_s1 + $0x78] sm:$0xff]  ;;  %v119_v33 = vld [vmem:[%s635_s2] sm:$0xff] }
  0x17   :  { %338 = vmatpush3.bf16.msra.mxu1 %v107_v1  ;;  %311 = vmatprep.subr.bf16.mxu0 %v100_v2  ;;  %v69_v31 = vld [vmem:[%s633_s1 + $0x170] sm:$0xff]  ;;  %v70_v32 = vld [vmem:[%s633_s1 + $0x178] sm:$0xff]  ;;  %v94_v35 = vpack.c.bf16 %v38_v29, %v37_v26  ;;  %v120_v36 = vld [vmem:[%s635_s2 + $0x8] sm:$0xff] }
  0x18   :  { %339 = vmatprep.subr.bf16.mxu1 %v116_v6  ;;  %264 = vmatprep.mubr.bf16.mxu1 %v365_v24  ;;  %v121_v34 = vld [vmem:[%s635_s2 + $0x10] sm:$0xff]  ;;  %v110_v37 = vpack.c.bf16 %v70_v32, %v69_v31  ;;  %v122_v38 = vld [vmem:[%s635_s2 + $0x18] sm:$0xff] }
  0x19   :  { %125 = vperm.xlu0 %358, %v119_v33   ;;  %135 = vperm.xlu1 %359, %v121_v34   ;;  %v363_v40 = vld [vmem:[%s634_s0 + $0x8] ss:$16 sps:$4 sm:$0xff]   ;;  %v366_v41 = vld [vmem:[%s634_s0 + $0x24] ss:$16 sps:$4 sm:$0xff]   ;;  %v368_v42 = vld [vmem:[%s634_s0 + $0x2c] ss:$16 sps:$4 sm:$0xff]  }
  0x1a   :  { %312 = vmatpush3.bf16.msra.mxu0 %v92_v13  ;;  %v370_v43 = vld [vmem:[%s634_s0 + $0x20] ss:$16 sps:$4 sm:$0xff]   ;;  %v371_v44 = vld [vmem:[%s634_s0 + $0x28] ss:$16 sps:$4 sm:$0xff]  }
  0x1b   :  { %340 = vmatpush3.bf16.msra.mxu1 %v108_v17  ;;  %313 = vmatprep.subr.bf16.mxu0 %v101_v18 }
  0x1c   :  { %341 = vmatprep.subr.bf16.mxu1 %v117_v20 }
  0x1d   :  { %130 = vperm.xlu0 %358, %v120_v36   ;;  %140 = vperm.xlu1 %359, %v122_v38  }
  0x1e   :  { %314 = vmatpush3.bf16.msra.mxu0 %v93_v25 }
  0x1f   :  { %342 = vmatpush3.bf16.msra.mxu1 %v109_v27  ;;  %315 = vmatprep.subr.bf16.mxu0 %v102_v28 }
  0x20   :  { %343 = vmatprep.subr.bf16.mxu1 %v118_v30 }
  0x22   :  { %316 = vmatpush3.bf16.msra.mxu0 %v94_v35 }
  0x23   :  { %344 = vmatpush3.bf16.msra.mxu1 %v110_v37 }
  0x25   :  { %216 = vmatmul.mubr.bf16.vlgmr.msra.gmra.mrb[0].mxu0 %v360_v39 }
  0x26   :  { %265 = vmatmul.mubr.bf16.vlgmr.msra.gmra.mrb[0].mxu1 %v363_v40  ;;  %223 = vmatprep.mubr.bf16.mxu0 %v366_v41 }
  0x27   :  { %272 = vmatprep.mubr.bf16.mxu1 %v368_v42 }
  0x2d   :  { %224 = vmatmul.mubr.bf16.gmra.mrb[4].mxu0 %v370_v43 }
  0x2e   :  { %273 = vmatmul.mubr.bf16.gmra.mrb[4].mxu1 %v371_v44 }
  0x98   :  { %v126_v45 = vpop.permute.xlu0 %125  ;;  %v136_v62 = vpop.permute.xlu1 %135 }
  0x9c   :  { %v131_v47 = vpop.permute.xlu0 %130  ;;  %v141_v14 = vpop.permute.xlu1 %140 }
  0xf8   :  { %v317_v46 = vpop.f32.mrb[0].mxu0 }
  0xf9   :  { %v345_v48 = vpop.f32.mrb[0].mxu1  ;;  %v318_v49 = vpop.f32.mrb[1].mxu0 }
  0xfa   :  { %v319_v50 = vadd.f32 %v318_v49, %v317_v46  ;;  %v346_v51 = vpop.f32.mrb[1].mxu1  ;;  %v320_v52 = vpop.f32.mrb[2].mxu0 }
  0xfb   :  { %v347_v53 = vadd.f32 %v346_v51, %v345_v48  ;;  %v348_v54 = vpop.f32.mrb[2].mxu1  ;;  %v321_v55 = vpop.f32.mrb[3].mxu0 }
  0xfc   :  { %v218_v56 = vadd.f32 %v319_v50, %v126_v45  ;;  %v322_v57 = vadd.f32 %v321_v55, %v320_v52  ;;  %v349_v58 = vpop.f32.mrb[3].mxu1 }
  0xfd   :  { %v350_v59 = vadd.f32 %v349_v58, %v348_v54 }
  0xfe   :  { %v267_v60 = vadd.f32 %v347_v53, %v218_v56  ;;  %v221_v61 = vadd.f32 %v322_v57, %v131_v47 }
 0x100   :  { %v281_v63 = vmax.f32 %v267_v60, 0.0  ;;  %v270_v0 = vadd.f32 %v350_v59, %v221_v61  ;;  %v323_v1 = vpop.f32.mrb[4].mxu0 }
 0x101   :  { %v351_v2 = vpop.f32.mrb[4].mxu1  ;;  %v324_v3 = vpop.f32.mrb[5].mxu0 }
 0x102   :  { %285 = vst [vmem:[%s636_s3] sm:$0xff] %v281_v63  ;;  %v282_v4 = vmax.f32 %v270_v0, 0.0  ;;  %v325_v5 = vadd.f32 %v324_v3, %v323_v1  ;;  %v352_v6 = vpop.f32.mrb[5].mxu1  ;;  %v326_v7 = vpop.f32.mrb[6].mxu0 }
 0x103   :  { %v353_v8 = vadd.f32 %v352_v6, %v351_v2  ;;  %v354_v9 = vpop.f32.mrb[6].mxu1  ;;  %v327_v10 = vpop.f32.mrb[7].mxu0 }
 0x104   :  { %286 = vst [vmem:[%s636_s3 + $0x8] sm:$0xff] %v282_v4  ;;  %v226_v11 = vadd.f32 %v325_v5, %v136_v62  ;;  %v328_v12 = vadd.f32 %v327_v10, %v326_v7  ;;  %v355_v13 = vpop.f32.mrb[7].mxu1 }
 0x105   :  { %v356_v15 = vadd.f32 %v355_v13, %v354_v9 }
 0x106   :  { %v275_v16 = vadd.f32 %v353_v8, %v226_v11  ;;  %v229_v17 = vadd.f32 %v328_v12, %v141_v14 }
 0x108   :  { %v283_v18 = vmax.f32 %v275_v16, 0.0  ;;  %v278_v19 = vadd.f32 %v356_v15, %v229_v17 }
 0x10a   :  { %287 = vst [vmem:[%s636_s3 + $0x10] sm:$0xff] %v283_v18  ;;  %v284_v20 = vmax.f32 %v278_v19, 0.0 }
 0x10c   :  { %288 = vst [vmem:[%s636_s3 + $0x18] sm:$0xff] %v284_v20 }

// kernel: encoder_burgess_forward.8
= control target key start
LH: loop header
LB: loop body
LE: loop exit
PB: predicated region body
PF: predicated region fallthrough
CT: control target
= control target key end

     0   :  { %v373_v3 = vmov 0   ;;  %vm285_vm0 = vcmask 261120   ;;  %s638_s1 = inlined_call_operand.vmem [shape: f32[512,32], index: 1, kind: input, shape index: {}]   ;;  %s639_s0 = inlined_call_operand.vmem [shape: bf16[32,512], index: 0, kind: input, shape index: {}]   ;;  %s640_s2 = inlined_call_operand.vmem [shape: f32[32,1], index: 2, kind: input, shape index: {}]   ;;  %s641_s3 = inlined_call_operand.vmem [shape: f32[32,32], index: 3, kind: output, shape index: {}]  }
   0x1   :  { %v39_v0 = vld [vmem:[%s638_s1 + $0x80] sm:$0xff]  ;;  %v40_v1 = vld [vmem:[%s638_s1 + $0x88] sm:$0xff]  ;;  %359 = vset.pattern.permute.xlu0 %v373_v3  ;;  %360 = vset.pattern.permute.xlu1 %v373_v3  ;;  %v41_v12 = vld [vmem:[%s638_s1 + $0x90] sm:$0xff] }
   0x2   :  { %v71_v2 = vld [vmem:[%s638_s1 + $0x180] sm:$0xff]  ;;  %v95_v4 = vpack.c.bf16 %v40_v1, %v39_v0  ;;  %v72_v5 = vld [vmem:[%s638_s1 + $0x188] sm:$0xff]  ;;  %v42_v14 = vld [vmem:[%s638_s1 + $0x98] sm:$0xff] }
   0x3   :  { %v23_v6 = vld [vmem:[%s638_s1] sm:$0xff]  ;;  %v24_v7 = vld [vmem:[%s638_s1 + $0x8] sm:$0xff]  ;;  %v111_v8 = vpack.c.bf16 %v72_v5, %v71_v2  ;;  %v73_v15 = vld [vmem:[%s638_s1 + $0x190] sm:$0xff]  ;;  %v96_v17 = vpack.c.bf16 %v42_v14, %v41_v12 }
   0x4   :  { %v87_v9 = vpack.c.bf16 %v24_v7, %v23_v6  ;;  %v55_v10 = vld [vmem:[%s638_s1 + $0x100] sm:$0xff]  ;;  %v56_v11 = vld [vmem:[%s638_s1 + $0x108] sm:$0xff]  ;;  %302 = vmatprep.subr.bf16.mxu0 %v95_v4  ;;  %v74_v16 = vld [vmem:[%s638_s1 + $0x198] sm:$0xff] }
   0x5   :  { %v103_v13 = vpack.c.bf16 %v56_v11, %v55_v10  ;;  %330 = vmatprep.subr.bf16.mxu1 %v111_v8  ;;  %v112_v18 = vpack.c.bf16 %v74_v16, %v73_v15  ;;  %v25_v19 = vld [vmem:[%s638_s1 + $0x10] sm:$0xff]  ;;  %v26_v20 = vld [vmem:[%s638_s1 + $0x18] sm:$0xff]  ;;  %v43_v24 = vld [vmem:[%s638_s1 + $0xa0] sm:$0xff] }
   0x6   :  { %303 = vmatpush3.bf16.msra.mxu0 %v87_v9  ;;  %v57_v21 = vld [vmem:[%s638_s1 + $0x110] sm:$0xff]  ;;  %v88_v22 = vpack.c.bf16 %v26_v20, %v25_v19  ;;  %v58_v23 = vld [vmem:[%s638_s1 + $0x118] sm:$0xff]  ;;  %v44_v25 = vld [vmem:[%s638_s1 + $0xa8] sm:$0xff] }
   0x7   :  { %331 = vmatpush3.bf16.msra.mxu1 %v103_v13  ;;  %304 = vmatprep.subr.bf16.mxu0 %v96_v17  ;;  %v104_v26 = vpack.c.bf16 %v58_v23, %v57_v21  ;;  %v97_v27 = vpack.c.bf16 %v44_v25, %v43_v24  ;;  %v75_v28 = vld [vmem:[%s638_s1 + $0x1a0] sm:$0xff]  ;;  %v76_v29 = vld [vmem:[%s638_s1 + $0x1a8] sm:$0xff]  ;;  %v45_v36 = vld [vmem:[%s638_s1 + $0xb0] sm:$0xff] }
   0x8   :  { %332 = vmatprep.subr.bf16.mxu1 %v112_v18  ;;  %v27_v30 = vld [vmem:[%s638_s1 + $0x20] sm:$0xff]  ;;  %v113_v31 = vpack.c.bf16 %v76_v29, %v75_v28  ;;  %v28_v32 = vld [vmem:[%s638_s1 + $0x28] sm:$0xff]  ;;  %v46_v37 = vld [vmem:[%s638_s1 + $0xb8] sm:$0xff] }
   0x9   :  { %v59_v33 = vld [vmem:[%s638_s1 + $0x120] sm:$0xff]  ;;  %v60_v34 = vld [vmem:[%s638_s1 + $0x128] sm:$0xff]  ;;  %v89_v35 = vpack.c.bf16 %v28_v32, %v27_v30  ;;  %v77_v38 = vld [vmem:[%s638_s1 + $0x1b0] sm:$0xff]  ;;  %v98_v40 = vpack.c.bf16 %v46_v37, %v45_v36 }
   0xa   :  { %305 = vmatpush3.bf16.msra.mxu0 %v88_v22  ;;  %v105_v39 = vpack.c.bf16 %v60_v34, %v59_v33  ;;  %v78_v41 = vld [vmem:[%s638_s1 + $0x1b8] sm:$0xff]  ;;  %v29_v42 = vld [vmem:[%s638_s1 + $0x30] sm:$0xff]  ;;  %v47_v47 = vld [vmem:[%s638_s1 + $0xc0] sm:$0xff] }
   0xb   :  { %333 = vmatpush3.bf16.msra.mxu1 %v104_v26  ;;  %306 = vmatprep.subr.bf16.mxu0 %v97_v27  ;;  %v30_v43 = vld [vmem:[%s638_s1 + $0x38] sm:$0xff]  ;;  %v114_v44 = vpack.c.bf16 %v78_v41, %v77_v38  ;;  %v61_v45 = vld [vmem:[%s638_s1 + $0x130] sm:$0xff]  ;;  %v48_v48 = vld [vmem:[%s638_s1 + $0xc8] sm:$0xff] }
   0xc   :  { %334 = vmatprep.subr.bf16.mxu1 %v113_v31  ;;  %v62_v46 = vld [vmem:[%s638_s1 + $0x138] sm:$0xff]  ;;  %v79_v49 = vld [vmem:[%s638_s1 + $0x1c0] sm:$0xff]  ;;  %v80_v50 = vld [vmem:[%s638_s1 + $0x1c8] sm:$0xff]  ;;  %v90_v51 = vpack.c.bf16 %v30_v43, %v29_v42  ;;  %v99_v53 = vpack.c.bf16 %v48_v48, %v47_v47 }
   0xd   :  { %v106_v52 = vpack.c.bf16 %v62_v46, %v61_v45  ;;  %v31_v54 = vld [vmem:[%s638_s1 + $0x40] sm:$0xff]  ;;  %v32_v55 = vld [vmem:[%s638_s1 + $0x48] sm:$0xff]  ;;  %v115_v57 = vpack.c.bf16 %v80_v50, %v79_v49  ;;  %v49_v59 = vld [vmem:[%s638_s1 + $0xd0] sm:$0xff] }
   0xe   :  { %307 = vmatpush3.bf16.msra.mxu0 %v89_v35  ;;  %v63_v56 = vld [vmem:[%s638_s1 + $0x140] sm:$0xff]  ;;  %v64_v58 = vld [vmem:[%s638_s1 + $0x148] sm:$0xff]  ;;  %v50_v60 = vld [vmem:[%s638_s1 + $0xd8] sm:$0xff]  ;;  %v91_v63 = vpack.c.bf16 %v32_v55, %v31_v54 }
   0xf   :  { %335 = vmatpush3.bf16.msra.mxu1 %v105_v39  ;;  %308 = vmatprep.subr.bf16.mxu0 %v98_v40  ;;  %v81_v61 = vld [vmem:[%s638_s1 + $0x1d0] sm:$0xff]  ;;  %v82_v62 = vld [vmem:[%s638_s1 + $0x1d8] sm:$0xff]  ;;  %v107_v1 = vpack.c.bf16 %v64_v58, %v63_v56  ;;  %v100_v2 = vpack.c.bf16 %v50_v60, %v49_v59  ;;  %v51_v7 = vld [vmem:[%s638_s1 + $0xe0] sm:$0xff] }
  0x10   :  { %336 = vmatprep.subr.bf16.mxu1 %v114_v44  ;;  %v33_v0 = vld [vmem:[%s638_s1 + $0x50] sm:$0xff]  ;;  %v34_v3 = vld [vmem:[%s638_s1 + $0x58] sm:$0xff]  ;;  %v116_v6 = vpack.c.bf16 %v82_v62, %v81_v61  ;;  %v52_v8 = vld [vmem:[%s638_s1 + $0xe8] sm:$0xff] }
  0x11   :  { %v65_v4 = vld [vmem:[%s638_s1 + $0x150] sm:$0xff]  ;;  %v66_v5 = vld [vmem:[%s638_s1 + $0x158] sm:$0xff]  ;;  %v83_v9 = vld [vmem:[%s638_s1 + $0x1e0] sm:$0xff]  ;;  %v92_v13 = vpack.c.bf16 %v34_v3, %v33_v0  ;;  %v101_v18 = vpack.c.bf16 %v52_v8, %v51_v7 }
  0x12   :  { %309 = vmatpush3.bf16.msra.mxu0 %v90_v51  ;;  %v84_v10 = vld [vmem:[%s638_s1 + $0x1e8] sm:$0xff]  ;;  %v35_v11 = vld [vmem:[%s638_s1 + $0x60] sm:$0xff]  ;;  %v53_v16 = vld [vmem:[%s638_s1 + $0xf0] sm:$0xff]  ;;  %v108_v17 = vpack.c.bf16 %v66_v5, %v65_v4 }
  0x13   :  { %337 = vmatpush3.bf16.msra.mxu1 %v106_v52  ;;  %310 = vmatprep.subr.bf16.mxu0 %v99_v53  ;;  %v36_v12 = vld [vmem:[%s638_s1 + $0x68] sm:$0xff]  ;;  %v67_v14 = vld [vmem:[%s638_s1 + $0x160] sm:$0xff]  ;;  %v54_v19 = vld [vmem:[%s638_s1 + $0xf8] sm:$0xff]  ;;  %v117_v20 = vpack.c.bf16 %v84_v10, %v83_v9 }
  0x14   :  { %338 = vmatprep.subr.bf16.mxu1 %v115_v57  ;;  %v68_v15 = vld [vmem:[%s638_s1 + $0x168] sm:$0xff]  ;;  %v85_v21 = vld [vmem:[%s638_s1 + $0x1f0] sm:$0xff]  ;;  %v86_v23 = vld [vmem:[%s638_s1 + $0x1f8] sm:$0xff]  ;;  %v93_v25 = vpack.c.bf16 %v36_v12, %v35_v11  ;;  %v102_v28 = vpack.c.bf16 %v54_v19, %v53_v16 }
  0x15   :  { %v363_v22 = vld [vmem:[%s639_s0 + $0x4] ss:$16 sps:$4 sm:$0xff]   ;;  %v366_v24 = vld [vmem:[%s639_s0 + $0xc] ss:$16 sps:$4 sm:$0xff]   ;;  %v109_v27 = vpack.c.bf16 %v68_v15, %v67_v14  ;;  %v118_v30 = vpack.c.bf16 %v86_v23, %v85_v21  ;;  %v361_v39 = vld [vmem:[%s639_s0] ss:$16 sps:$4 sm:$0xff]  }
  0x16   :  { %311 = vmatpush3.bf16.msra.mxu0 %v91_v63  ;;  %v37_v26 = vld [vmem:[%s638_s1 + $0x70] sm:$0xff]  ;;  %215 = vmatprep.mubr.bf16.mxu0 %v363_v22  ;;  %v38_v29 = vld [vmem:[%s638_s1 + $0x78] sm:$0xff]  ;;  %v119_v33 = vld [vmem:[%s640_s2] sm:$0xff] }
  0x17   :  { %339 = vmatpush3.bf16.msra.mxu1 %v107_v1  ;;  %312 = vmatprep.subr.bf16.mxu0 %v100_v2  ;;  %v69_v31 = vld [vmem:[%s638_s1 + $0x170] sm:$0xff]  ;;  %v70_v32 = vld [vmem:[%s638_s1 + $0x178] sm:$0xff]  ;;  %v94_v35 = vpack.c.bf16 %v38_v29, %v37_v26  ;;  %v120_v36 = vld [vmem:[%s640_s2 + $0x8] sm:$0xff] }
  0x18   :  { %340 = vmatprep.subr.bf16.mxu1 %v116_v6  ;;  %264 = vmatprep.mubr.bf16.mxu1 %v366_v24  ;;  %v121_v34 = vld [vmem:[%s640_s2 + $0x10] sm:$0xff]  ;;  %v110_v37 = vpack.c.bf16 %v70_v32, %v69_v31  ;;  %v122_v38 = vld [vmem:[%s640_s2 + $0x18] sm:$0xff] }
  0x19   :  { %125 = vperm.xlu0 %359, %v119_v33   ;;  %135 = vperm.xlu1 %360, %v121_v34   ;;  %v364_v40 = vld [vmem:[%s639_s0 + $0x8] ss:$16 sps:$4 sm:$0xff]   ;;  %v367_v41 = vld [vmem:[%s639_s0 + $0x24] ss:$16 sps:$4 sm:$0xff]   ;;  %v369_v42 = vld [vmem:[%s639_s0 + $0x2c] ss:$16 sps:$4 sm:$0xff]  }
  0x1a   :  { %313 = vmatpush3.bf16.msra.mxu0 %v92_v13  ;;  %v371_v43 = vld [vmem:[%s639_s0 + $0x20] ss:$16 sps:$4 sm:$0xff]   ;;  %v372_v44 = vld [vmem:[%s639_s0 + $0x28] ss:$16 sps:$4 sm:$0xff]  }
  0x1b   :  { %341 = vmatpush3.bf16.msra.mxu1 %v108_v17  ;;  %314 = vmatprep.subr.bf16.mxu0 %v101_v18 }
  0x1c   :  { %342 = vmatprep.subr.bf16.mxu1 %v117_v20 }
  0x1d   :  { %130 = vperm.xlu0 %359, %v120_v36   ;;  %140 = vperm.xlu1 %360, %v122_v38  }
  0x1e   :  { %315 = vmatpush3.bf16.msra.mxu0 %v93_v25 }
  0x1f   :  { %343 = vmatpush3.bf16.msra.mxu1 %v109_v27  ;;  %316 = vmatprep.subr.bf16.mxu0 %v102_v28 }
  0x20   :  { %344 = vmatprep.subr.bf16.mxu1 %v118_v30 }
  0x22   :  { %317 = vmatpush3.bf16.msra.mxu0 %v94_v35 }
  0x23   :  { %345 = vmatpush3.bf16.msra.mxu1 %v110_v37 }
  0x25   :  { %216 = vmatmul.mubr.bf16.vlgmr.msra.gmra.mrb[0].mxu0 %v361_v39 }
  0x26   :  { %265 = vmatmul.mubr.bf16.vlgmr.msra.gmra.mrb[0].mxu1 %v364_v40  ;;  %223 = vmatprep.mubr.bf16.mxu0 %v367_v41 }
  0x27   :  { %272 = vmatprep.mubr.bf16.mxu1 %v369_v42 }
  0x2d   :  { %224 = vmatmul.mubr.bf16.gmra.mrb[4].mxu0 %v371_v43 }
  0x2e   :  { %273 = vmatmul.mubr.bf16.gmra.mrb[4].mxu1 %v372_v44 }
  0x98   :  { %v126_v45 = vpop.permute.xlu0 %125  ;;  %v136_v62 = vpop.permute.xlu1 %135 }
  0x9c   :  { %v131_v47 = vpop.permute.xlu0 %130  ;;  %v141_v14 = vpop.permute.xlu1 %140 }
  0xf8   :  { %v318_v46 = vpop.f32.mrb[0].mxu0 }
  0xf9   :  { %v346_v48 = vpop.f32.mrb[0].mxu1  ;;  %v319_v49 = vpop.f32.mrb[1].mxu0 }
  0xfa   :  { %v320_v50 = vadd.f32 %v319_v49, %v318_v46  ;;  %v347_v51 = vpop.f32.mrb[1].mxu1  ;;  %v321_v52 = vpop.f32.mrb[2].mxu0 }
  0xfb   :  { %v348_v53 = vadd.f32 %v347_v51, %v346_v48  ;;  %v349_v54 = vpop.f32.mrb[2].mxu1  ;;  %v322_v55 = vpop.f32.mrb[3].mxu0 }
  0xfc   :  { %v218_v56 = vadd.f32 %v320_v50, %v126_v45  ;;  %v323_v57 = vadd.f32 %v322_v55, %v321_v52  ;;  %v350_v58 = vpop.f32.mrb[3].mxu1 }
  0xfd   :  { %v351_v59 = vadd.f32 %v350_v58, %v349_v54 }
  0xfe   :  { %v267_v60 = vadd.f32 %v348_v53, %v218_v56  ;;  %v221_v61 = vadd.f32 %v323_v57, %v131_v47 }
 0x100   :  { %v281_v63 = vmax.f32 %v267_v60, 0.0  ;;  %v270_v0 = vadd.f32 %v351_v59, %v221_v61  ;;  %v324_v1 = vpop.f32.mrb[4].mxu0 }
 0x101   :  { %v352_v2 = vpop.f32.mrb[4].mxu1  ;;  %v325_v3 = vpop.f32.mrb[5].mxu0 }
 0x102   :  { %286 = vst.msk [vmem:[%s641_s3] sm:$0xff] %vm285_vm0, %v281_v63  ;;  %v282_v4 = vmax.f32 %v270_v0, 0.0  ;;  %v326_v5 = vadd.f32 %v325_v3, %v324_v1  ;;  %v353_v6 = vpop.f32.mrb[5].mxu1  ;;  %v327_v7 = vpop.f32.mrb[6].mxu0 }
 0x103   :  { %v354_v8 = vadd.f32 %v353_v6, %v352_v2  ;;  %v355_v9 = vpop.f32.mrb[6].mxu1  ;;  %v328_v10 = vpop.f32.mrb[7].mxu0 }
 0x104   :  { %287 = vst.msk [vmem:[%s641_s3 + $0x8] sm:$0xff] %vm285_vm0, %v282_v4  ;;  %v226_v11 = vadd.f32 %v326_v5, %v136_v62  ;;  %v329_v12 = vadd.f32 %v328_v10, %v327_v7  ;;  %v356_v13 = vpop.f32.mrb[7].mxu1 }
 0x105   :  { %v357_v15 = vadd.f32 %v356_v13, %v355_v9 }
 0x106   :  { %v275_v16 = vadd.f32 %v354_v8, %v226_v11  ;;  %v229_v17 = vadd.f32 %v329_v12, %v141_v14 }
 0x108   :  { %v283_v18 = vmax.f32 %v275_v16, 0.0  ;;  %v278_v19 = vadd.f32 %v357_v15, %v229_v17 }
 0x10a   :  { %288 = vst.msk [vmem:[%s641_s3 + $0x10] sm:$0xff] %vm285_vm0, %v283_v18  ;;  %v284_v20 = vmax.f32 %v278_v19, 0.0 }
 0x10c   :  { %289 = vst.msk [vmem:[%s641_s3 + $0x18] sm:$0xff] %vm285_vm0, %v284_v20 }

// kernel: encoder_burgess_forward.9
= control target key start
LH: loop header
LB: loop body
LE: loop exit
PB: predicated region body
PF: predicated region fallthrough
CT: control target
= control target key end

     0   :  { %v1269_v7 = vmov 1983009808   ;;  %v33_v9 = vlaneseq  ;;  %vm960_vm0 = vcmask 25600   ;;  %s1678_s1 = inlined_call_operand.vmem [shape: bf16[512,256], index: 1, kind: input, shape index: {}]   ;;  %s1679_s0 = inlined_call_operand.vmem [shape: f32[2,512], index: 0, kind: input, shape index: {}]   ;;  %s1680_s3 = inlined_call_operand.vmem [shape: bf16[256,256], index: 3, kind: input, shape index: {}]   ;;  %s1681_s5 = inlined_call_operand.vmem [shape: bf16[256,4], index: 5, kind: input, shape index: {}]   ;;  %s1682_s2 = inlined_call_operand.vmem [shape: f32[1,256], index: 2, kind: input, shape index: {}]   ;;  %s1683_s4 = inlined_call_operand.vmem [shape: f32[1,256], index: 4, kind: input, shape index: {}]   ;;  %s1684_s6 = inlined_call_operand.vmem [shape: f32[1,4], index: 6, kind: input, shape index: {}]   ;;  %s1685_s7 = inlined_call_operand.vmem [shape: f32[2,4], index: 7, kind: output, shape index: {}]  }
   0x1   :  { %v1108_v0 = vld [vmem:[%s1678_s1 + $0x4] ss:$8 sps:$4 sm:$0xff]   ;;  %v1110_v1 = vld [vmem:[%s1678_s1] ss:$8 sps:$4 sm:$0xff]   ;;  %v1111_v2 = vld [vmem:[%s1678_s1 + $0x14] ss:$8 sps:$4 sm:$0xff]   ;;  %v31_v8 = vunpack.c.l.s4 %v1269_v7 }
   0x2   :  { %450 = vmatprep.subr.bf16.mxu0 %v1108_v0  ;;  %v1113_v3 = vld [vmem:[%s1678_s1 + $0x10] ss:$8 sps:$4 sm:$0xff]   ;;  %v1114_v4 = vld [vmem:[%s1678_s1 + $0x24] ss:$8 sps:$4 sm:$0xff]   ;;  %v1116_v5 = vld [vmem:[%s1678_s1 + $0x20] ss:$8 sps:$4 sm:$0xff]  }
   0x3   :  { %451 = vmatpush1.bf16.msra.mxu0 %v1110_v1  ;;  %v1117_v6 = vld [vmem:[%s1678_s1 + $0x34] ss:$8 sps:$4 sm:$0xff]   ;;  %v1119_v10 = vld [vmem:[%s1678_s1 + $0x30] ss:$8 sps:$4 sm:$0xff]   ;;  %v1120_v11 = vld [vmem:[%s1678_s1 + $0x44] ss:$8 sps:$4 sm:$0xff]   ;;  %v32_v12 = vunpack.c.0.s8 %v31_v8 }
   0x4   :  { %452 = vmatprep.subr.bf16.mxu0 %v1111_v2  ;;  %v1337_v13 = vshrl.u32 %v33_v9, 7  ;;  %v1122_v14 = vld [vmem:[%s1678_s1 + $0x40] ss:$8 sps:$4 sm:$0xff]   ;;  %v1123_v15 = vld [vmem:[%s1678_s1 + $0x54] ss:$8 sps:$4 sm:$0xff]  }
   0x5   :  { %v1125_v17 = vld [vmem:[%s1678_s1 + $0x50] ss:$8 sps:$4 sm:$0xff]   ;;  %v1126_v18 = vld [vmem:[%s1678_s1 + $0x64] ss:$8 sps:$4 sm:$0xff]   ;;  %v1128_v21 = vld [vmem:[%s1678_s1 + $0x60] ss:$8 sps:$4 sm:$0xff]  }
   0x6   :  { %v35_v16 = vsub.s32 %v32_v12, %v1337_v13  ;;  %v27_v19 = vld [vmem:[%s1679_s0] sm:$0xff]  ;;  %v1129_v22 = vld [vmem:[%s1678_s1 + $0x74] ss:$8 sps:$4 sm:$0xff]   ;;  %v1131_v25 = vld [vmem:[%s1678_s1 + $0x70] ss:$8 sps:$4 sm:$0xff]  }
   0x7   :  { %453 = vmatpush1.bf16.msra.mxu0 %v1113_v3  ;;  %v1132_v26 = vld [vmem:[%s1678_s1 + $0x84] ss:$8 sps:$4 sm:$0xff]   ;;  %v1134_v27 = vld [vmem:[%s1678_s1 + $0x80] ss:$8 sps:$4 sm:$0xff]   ;;  %v1135_v28 = vld [vmem:[%s1678_s1 + $0x94] ss:$8 sps:$4 sm:$0xff]   ;;  %v29_v44 = vcombine.high %v27_v19, %v27_v19 }
   0x8   :  { %454 = vmatprep.subr.bf16.mxu0 %v1114_v4  ;;  %v1355_v20 = vrot.slane %v27_v19, %v35_v16  ;;  %v1137_v29 = vld [vmem:[%s1678_s1 + $0x90] ss:$8 sps:$4 sm:$0xff]   ;;  %v1138_v30 = vld [vmem:[%s1678_s1 + $0xa4] ss:$8 sps:$4 sm:$0xff]   ;;  %v1140_v31 = vld [vmem:[%s1678_s1 + $0xa0] ss:$8 sps:$4 sm:$0xff]  }
   0x9   :  { %v1141_v32 = vld [vmem:[%s1678_s1 + $0xb4] ss:$8 sps:$4 sm:$0xff]   ;;  %v1143_v33 = vld [vmem:[%s1678_s1 + $0xb0] ss:$8 sps:$4 sm:$0xff]   ;;  %v1144_v34 = vld [vmem:[%s1678_s1 + $0xc4] ss:$8 sps:$4 sm:$0xff]   ;;  %v1434_v49 = vrot.slane %v29_v44, %v35_v16 }
   0xa   :  { %v44_v23 = vcombine.high %v1355_v20, %v1355_v20  ;;  %v1205_v35 = vld [vmem:[%s1680_s3 + $0x4] ss:$8 sps:$4 sm:$0xff]   ;;  %v1207_v36 = vld [vmem:[%s1680_s3] ss:$8 sps:$4 sm:$0xff]   ;;  %v1208_v37 = vld [vmem:[%s1680_s3 + $0x14] ss:$8 sps:$4 sm:$0xff]   ;;  %v50_v58 = vpack.c.bf16 %v1355_v20, %v1355_v20 }
   0xb   :  { %455 = vmatpush1.bf16.msra.mxu0 %v1116_v5  ;;  %740 = vmatprep.subr.bf16.mxu1 %v1205_v35  ;;  %v1146_v38 = vld [vmem:[%s1678_s1 + $0xc0] ss:$8 sps:$4 sm:$0xff]   ;;  %v1210_v39 = vld [vmem:[%s1680_s3 + $0x10] ss:$8 sps:$4 sm:$0xff]   ;;  %v1211_v40 = vld [vmem:[%s1680_s3 + $0x24] ss:$8 sps:$4 sm:$0xff]   ;;  %v45_v54 = vcombine.high %v1434_v49, %v1434_v49  ;;  %v52_v44 = vpack.c.bf16 %v1434_v49, %v1434_v49 }
   0xc   :  { %456 = vmatprep.subr.bf16.mxu0 %v1117_v6  ;;  %v51_v24 = vpack.c.bf16 %v44_v23, %v44_v23  ;;  %741 = vmatpush1.bf16.msra.mxu1 %v1207_v36  ;;  %v1147_v41 = vld [vmem:[%s1678_s1 + $0xd4] ss:$8 sps:$4 sm:$0xff]   ;;  %v1149_v42 = vld [vmem:[%s1678_s1 + $0xd0] ss:$8 sps:$4 sm:$0xff]   ;;  %v1213_v43 = vld [vmem:[%s1680_s3 + $0x20] ss:$8 sps:$4 sm:$0xff]  }
   0xd   :  { %742 = vmatprep.subr.bf16.mxu1 %v1208_v37  ;;  %v1214_v45 = vld [vmem:[%s1680_s3 + $0x34] ss:$8 sps:$4 sm:$0xff]   ;;  %v1150_v46 = vld [vmem:[%s1678_s1 + $0xe4] ss:$8 sps:$4 sm:$0xff]   ;;  %v1152_v47 = vld [vmem:[%s1678_s1 + $0xe0] ss:$8 sps:$4 sm:$0xff]   ;;  %v53_v60 = vpack.c.bf16 %v45_v54, %v45_v54 }
   0xe   :  { %482 = vmatprep.mubr.bf16.mxu0 %v51_v24  ;;  %v1216_v48 = vld [vmem:[%s1680_s3 + $0x30] ss:$8 sps:$4 sm:$0xff]   ;;  %v1217_v50 = vld [vmem:[%s1680_s3 + $0x44] ss:$8 sps:$4 sm:$0xff]   ;;  %v1153_v51 = vld [vmem:[%s1678_s1 + $0xf4] ss:$8 sps:$4 sm:$0xff]  }
   0xf   :  { %457 = vmatpush1.bf16.msra.mxu0 %v1119_v10  ;;  %v1155_v52 = vld [vmem:[%s1678_s1 + $0xf0] ss:$8 sps:$4 sm:$0xff]   ;;  %v1219_v53 = vld [vmem:[%s1680_s3 + $0x40] ss:$8 sps:$4 sm:$0xff]   ;;  %v1220_v55 = vld [vmem:[%s1680_s3 + $0x54] ss:$8 sps:$4 sm:$0xff]  }
  0x10   :  { %458 = vmatprep.subr.bf16.mxu0 %v1120_v11  ;;  %743 = vmatpush1.bf16.msra.mxu1 %v1210_v39  ;;  %v1159_v56 = vld [vmem:[%s1678_s1 + $0x104] ss:$8 sps:$4 sm:$0xff]   ;;  %v1222_v57 = vld [vmem:[%s1680_s3 + $0x50] ss:$8 sps:$4 sm:$0xff]   ;;  %v1157_v59 = vld [vmem:[%s1678_s1 + $0x100] ss:$8 sps:$4 sm:$0xff]  }
  0x11   :  { %744 = vmatprep.subr.bf16.mxu1 %v1211_v40  ;;  %v1162_v61 = vld [vmem:[%s1678_s1 + $0x114] ss:$8 sps:$4 sm:$0xff]   ;;  %v1223_v62 = vld [vmem:[%s1680_s3 + $0x64] ss:$8 sps:$4 sm:$0xff]   ;;  %v1225_v63 = vld [vmem:[%s1680_s3 + $0x60] ss:$8 sps:$4 sm:$0xff]  }
  0x12   :  { %v1160_v0 = vld [vmem:[%s1678_s1 + $0x110] ss:$8 sps:$4 sm:$0xff]   ;;  %v1226_v1 = vld [vmem:[%s1680_s3 + $0x74] ss:$8 sps:$4 sm:$0xff]   ;;  %v1165_v2 = vld [vmem:[%s1678_s1 + $0x124] ss:$8 sps:$4 sm:$0xff]  }
  0x13   :  { %459 = vmatpush1.bf16.msra.mxu0 %v1122_v14  ;;  %v1228_v3 = vld [vmem:[%s1680_s3 + $0x70] ss:$8 sps:$4 sm:$0xff]   ;;  %v1163_v4 = vld [vmem:[%s1678_s1 + $0x120] ss:$8 sps:$4 sm:$0xff]   ;;  %v1229_v5 = vld [vmem:[%s1680_s3 + $0x84] ss:$8 sps:$4 sm:$0xff]  }
  0x14   :  { %460 = vmatprep.subr.bf16.mxu0 %v1123_v15  ;;  %745 = vmatpush1.bf16.msra.mxu1 %v1213_v43  ;;  %v1168_v6 = vld [vmem:[%s1678_s1 + $0x134] ss:$8 sps:$4 sm:$0xff]   ;;  %v1231_v7 = vld [vmem:[%s1680_s3 + $0x80] ss:$8 sps:$4 sm:$0xff]   ;;  %v1166_v8 = vld [vmem:[%s1678_s1 + $0x130] ss:$8 sps:$4 sm:$0xff]  }
  0x15   :  { %746 = vmatprep.subr.bf16.mxu1 %v1214_v45  ;;  %v1232_v9 = vld [vmem:[%s1680_s3 + $0x94] ss:$8 sps:$4 sm:$0xff]   ;;  %v1171_v10 = vld [vmem:[%s1678_s1 + $0x144] ss:$8 sps:$4 sm:$0xff]   ;;  %v1234_v11 = vld [vmem:[%s1680_s3 + $0x90] ss:$8 sps:$4 sm:$0xff]  }
  0x16   :  { %v1169_v12 = vld [vmem:[%s1678_s1 + $0x140] ss:$8 sps:$4 sm:$0xff]   ;;  %v1235_v14 = vld [vmem:[%s1680_s3 + $0xa4] ss:$8 sps:$4 sm:$0xff]   ;;  %v1174_v15 = vld [vmem:[%s1678_s1 + $0x154] ss:$8 sps:$4 sm:$0xff]  }
  0x17   :  { %461 = vmatpush1.bf16.msra.mxu0 %v1125_v17  ;;  %v1237_v16 = vld [vmem:[%s1680_s3 + $0xa0] ss:$8 sps:$4 sm:$0xff]   ;;  %v1172_v17 = vld [vmem:[%s1678_s1 + $0x150] ss:$8 sps:$4 sm:$0xff]   ;;  %v1177_v19 = vld [vmem:[%s1678_s1 + $0x164] ss:$8 sps:$4 sm:$0xff]  }
  0x18   :  { %462 = vmatprep.subr.bf16.mxu0 %v1126_v18  ;;  %747 = vmatpush1.bf16.msra.mxu1 %v1216_v48  ;;  %v1238_v18 = vld [vmem:[%s1680_s3 + $0xb4] ss:$8 sps:$4 sm:$0xff]   ;;  %v1240_v20 = vld [vmem:[%s1680_s3 + $0xb0] ss:$8 sps:$4 sm:$0xff]   ;;  %v1243_v24 = vld [vmem:[%s1680_s3 + $0xc0] ss:$8 sps:$4 sm:$0xff]  }
  0x19   :  { %748 = vmatprep.subr.bf16.mxu1 %v1217_v50  ;;  %v1180_v23 = vld [vmem:[%s1678_s1 + $0x174] ss:$8 sps:$4 sm:$0xff]   ;;  %v1190_v35 = vld [vmem:[%s1678_s1 + $0x1b0] ss:$8 sps:$4 sm:$0xff]   ;;  %v1195_v36 = vld [vmem:[%s1678_s1 + $0x1c4] ss:$8 sps:$4 sm:$0xff]  }
  0x1a   :  { %v1193_v37 = vld [vmem:[%s1678_s1 + $0x1c0] ss:$8 sps:$4 sm:$0xff]   ;;  %v1196_v39 = vld [vmem:[%s1678_s1 + $0x1d0] ss:$8 sps:$4 sm:$0xff]   ;;  %v1201_v40 = vld [vmem:[%s1678_s1 + $0x1e4] ss:$8 sps:$4 sm:$0xff]  }
  0x1b   :  { %463 = vmatpush1.bf16.msra.mxu0 %v1128_v21  ;;  %v1175_v21 = vld [vmem:[%s1678_s1 + $0x160] ss:$8 sps:$4 sm:$0xff]   ;;  %v1202_v43 = vld [vmem:[%s1678_s1 + $0x1f0] ss:$8 sps:$4 sm:$0xff]   ;;  %v1247_v45 = vld [vmem:[%s1680_s3 + $0xe4] ss:$8 sps:$4 sm:$0xff]  }
  0x1c   :  { %464 = vmatprep.subr.bf16.mxu0 %v1129_v22  ;;  %749 = vmatpush1.bf16.msra.mxu1 %v1219_v53  ;;  %v1241_v22 = vld [vmem:[%s1680_s3 + $0xc4] ss:$8 sps:$4 sm:$0xff]   ;;  %v1252_v48 = vld [vmem:[%s1680_s3 + $0xf0] ss:$8 sps:$4 sm:$0xff]   ;;  %v122_v50 = vsub.s32 0, %v1337_v13 }
  0x1d   :  { %750 = vmatprep.subr.bf16.mxu1 %v1220_v55  ;;  %v1253_v49 = vld [vmem:[%s1681_s5 + $0x40] sm:$0xff]  }
  0x1f   :  { %465 = vmatpush1.bf16.msra.mxu0 %v1131_v25  ;;  %v1178_v25 = vld [vmem:[%s1678_s1 + $0x170] ss:$8 sps:$4 sm:$0xff]  }
  0x20   :  { %466 = vmatprep.subr.bf16.mxu0 %v1132_v26  ;;  %751 = vmatpush1.bf16.msra.mxu1 %v1222_v57  ;;  %v1244_v26 = vld [vmem:[%s1680_s3 + $0xd4] ss:$8 sps:$4 sm:$0xff]  }
  0x21   :  { %752 = vmatprep.subr.bf16.mxu1 %v1223_v62 }
  0x23   :  { %467 = vmatpush1.bf16.msra.mxu0 %v1134_v27  ;;  %v1183_v27 = vld [vmem:[%s1678_s1 + $0x184] ss:$8 sps:$4 sm:$0xff]  }
  0x24   :  { %468 = vmatprep.subr.bf16.mxu0 %v1135_v28  ;;  %753 = vmatpush1.bf16.msra.mxu1 %v1225_v63  ;;  %v1246_v28 = vld [vmem:[%s1680_s3 + $0xd0] ss:$8 sps:$4 sm:$0xff]  }
  0x25   :  { %754 = vmatprep.subr.bf16.mxu1 %v1226_v1 }
  0x27   :  { %469 = vmatpush1.bf16.msra.mxu0 %v1137_v29  ;;  %v1181_v29 = vld [vmem:[%s1678_s1 + $0x180] ss:$8 sps:$4 sm:$0xff]  }
  0x28   :  { %470 = vmatprep.subr.bf16.mxu0 %v1138_v30  ;;  %755 = vmatpush1.bf16.msra.mxu1 %v1228_v3  ;;  %v1186_v30 = vld [vmem:[%s1678_s1 + $0x194] ss:$8 sps:$4 sm:$0xff]  }
  0x29   :  { %756 = vmatprep.subr.bf16.mxu1 %v1229_v5  ;;  %v1257_v3 = vld [vmem:[%s1681_s5 + $0x50] sm:$0xff]   ;;  %v1259_v5 = vld [vmem:[%s1681_s5 + $0x58] sm:$0xff]  }
  0x2b   :  { %471 = vmatpush1.bf16.msra.mxu0 %v1140_v31  ;;  %v1184_v31 = vld [vmem:[%s1678_s1 + $0x190] ss:$8 sps:$4 sm:$0xff]  }
  0x2c   :  { %472 = vmatprep.subr.bf16.mxu0 %v1141_v32  ;;  %757 = vmatpush1.bf16.msra.mxu1 %v1231_v7  ;;  %v1189_v32 = vld [vmem:[%s1678_s1 + $0x1a4] ss:$8 sps:$4 sm:$0xff]  }
  0x2d   :  { %758 = vmatprep.subr.bf16.mxu1 %v1232_v9  ;;  %v1261_v7 = vld [vmem:[%s1681_s5 + $0x60] sm:$0xff]   ;;  %v1263_v9 = vld [vmem:[%s1681_s5 + $0x68] sm:$0xff]  }
  0x2f   :  { %473 = vmatpush1.bf16.msra.mxu0 %v1143_v33  ;;  %v1187_v33 = vld [vmem:[%s1678_s1 + $0x1a0] ss:$8 sps:$4 sm:$0xff]  }
  0x30   :  { %474 = vmatprep.subr.bf16.mxu0 %v1144_v34  ;;  %759 = vmatpush1.bf16.msra.mxu1 %v1234_v11  ;;  %v1192_v34 = vld [vmem:[%s1678_s1 + $0x1b4] ss:$8 sps:$4 sm:$0xff]  }
  0x31   :  { %760 = vmatprep.subr.bf16.mxu1 %v1235_v14  ;;  %v1265_v11 = vld [vmem:[%s1681_s5 + $0x70] sm:$0xff]   ;;  %v1267_v14 = vld [vmem:[%s1681_s5 + $0x78] sm:$0xff]  }
  0x33   :  { %475 = vmatpush1.bf16.msra.mxu0 %v1146_v38  ;;  %v1198_v38 = vld [vmem:[%s1678_s1 + $0x1d4] ss:$8 sps:$4 sm:$0xff]  }
  0x34   :  { %476 = vmatprep.subr.bf16.mxu0 %v1147_v41  ;;  %761 = vmatpush1.bf16.msra.mxu1 %v1237_v16  ;;  %v1199_v41 = vld [vmem:[%s1678_s1 + $0x1e0] ss:$8 sps:$4 sm:$0xff]  }
  0x35   :  { %762 = vmatprep.subr.bf16.mxu1 %v1238_v18  ;;  %v568_v16 = vld [vmem:[%s1683_s4] sm:$0x3] }
  0x37   :  { %477 = vmatpush1.bf16.msra.mxu0 %v1149_v42  ;;  %v1204_v42 = vld [vmem:[%s1678_s1 + $0x1f4] ss:$8 sps:$4 sm:$0xff]  }
  0x38   :  { %478 = vmatprep.subr.bf16.mxu0 %v1150_v46  ;;  %763 = vmatpush1.bf16.msra.mxu1 %v1240_v20  ;;  %v1249_v46 = vld [vmem:[%s1680_s3 + $0xe0] ss:$8 sps:$4 sm:$0xff]  }
  0x39   :  { %764 = vmatprep.subr.bf16.mxu1 %v1241_v22 }
  0x3b   :  { %479 = vmatpush1.bf16.msra.mxu0 %v1152_v47  ;;  %v1250_v47 = vld [vmem:[%s1680_s3 + $0xf4] ss:$8 sps:$4 sm:$0xff]  }
  0x3c   :  { %480 = vmatprep.subr.bf16.mxu0 %v1153_v51  ;;  %765 = vmatpush1.bf16.msra.mxu1 %v1243_v24  ;;  %v118_v51 = vld [vmem:[%s1682_s2] sm:$0x3] }
  0x3d   :  { %766 = vmatprep.subr.bf16.mxu1 %v1244_v26  ;;  %v123_v53 = vrot.slane %v118_v51, %v122_v50 }
  0x3f   :  { %481 = vmatpush1.bf16.msra.mxu0 %v1155_v52  ;;  %v126_v52 = vsub.s32 1, %v1337_v13  ;;  %v1255_v13 = vld [vmem:[%s1681_s5 + $0x48] sm:$0xff]  }
  0x40   :  { %491 = vmatprep.subr.bf16.mxu0 %v1159_v56  ;;  %767 = vmatpush1.bf16.msra.mxu1 %v1246_v28 }
  0x41   :  { %768 = vmatprep.subr.bf16.mxu1 %v1247_v45  ;;  %v127_v54 = vrot.slane %v118_v51, %v126_v52  ;;  %v577_v18 = vrot.slane %v568_v16, %v126_v52 }
  0x42   :  { %483 = vmatmul.mubr.bf16.vlgmr.msra.gmra.mrb[0].mxu0 %v50_v58 }
  0x43   :  { %492 = vmatpush1.bf16.msra.mxu0 %v1157_v59  ;;  %523 = vmatprep.mubr.bf16.mxu0 %v53_v60 }
  0x44   :  { %493 = vmatprep.subr.bf16.mxu0 %v1162_v61  ;;  %769 = vmatpush1.bf16.msra.mxu1 %v1249_v46 }
  0x45   :  { %770 = vmatprep.subr.bf16.mxu1 %v1250_v47 }
  0x47   :  { %494 = vmatpush1.bf16.msra.mxu0 %v1160_v0  ;;  %v1254_v0 = vld [vmem:[%s1681_s5] sm:$0xff]  }
  0x48   :  { %495 = vmatprep.subr.bf16.mxu0 %v1165_v2  ;;  %771 = vmatpush1.bf16.msra.mxu1 %v1252_v48  ;;  %v1256_v2 = vld [vmem:[%s1681_s5 + $0x8] sm:$0xff]  }
  0x49   :  { %1079 = vmatprep.subr.bf16.mxu1 %v1253_v49 }
  0x4b   :  { %496 = vmatpush1.bf16.msra.mxu0 %v1163_v4  ;;  %v1258_v4 = vld [vmem:[%s1681_s5 + $0x10] sm:$0xff]  }
  0x4c   :  { %497 = vmatprep.subr.bf16.mxu0 %v1168_v6  ;;  %v1260_v6 = vld [vmem:[%s1681_s5 + $0x18] sm:$0xff]  }
  0x4f   :  { %498 = vmatpush1.bf16.msra.mxu0 %v1166_v8  ;;  %v1262_v8 = vld [vmem:[%s1681_s5 + $0x20] sm:$0xff]  }
  0x50   :  { %499 = vmatprep.subr.bf16.mxu0 %v1171_v10  ;;  %v1264_v10 = vld [vmem:[%s1681_s5 + $0x28] sm:$0xff]  }
  0x53   :  { %500 = vmatpush1.bf16.msra.mxu0 %v1169_v12  ;;  %v1266_v12 = vld [vmem:[%s1681_s5 + $0x30] sm:$0xff]  }
  0x54   :  { %501 = vmatprep.subr.bf16.mxu0 %v1174_v15  ;;  %v1268_v15 = vld [vmem:[%s1681_s5 + $0x38] sm:$0xff]  }
  0x57   :  { %502 = vmatpush1.bf16.msra.mxu0 %v1172_v17  ;;  %v573_v17 = vrot.slane %v568_v16, %v122_v50 }
  0x58   :  { %503 = vmatprep.subr.bf16.mxu0 %v1177_v19 }
  0x5b   :  { %504 = vmatpush1.bf16.msra.mxu0 %v1175_v21 }
  0x5c   :  { %505 = vmatprep.subr.bf16.mxu0 %v1180_v23 }
  0x5f   :  { %506 = vmatpush1.bf16.msra.mxu0 %v1178_v25 }
  0x60   :  { %507 = vmatprep.subr.bf16.mxu0 %v1183_v27 }
  0x63   :  { %508 = vmatpush1.bf16.msra.mxu0 %v1181_v29 }
  0x64   :  { %509 = vmatprep.subr.bf16.mxu0 %v1186_v30  ;;  %v1062_v30 = vld [vmem:[%s1684_s6] ss:$0 sm:$0xff] }
  0x67   :  { %510 = vmatpush1.bf16.msra.mxu0 %v1184_v31 }
  0x68   :  { %511 = vmatprep.subr.bf16.mxu0 %v1189_v32 }
  0x6b   :  { %512 = vmatpush1.bf16.msra.mxu0 %v1187_v33 }
  0x6c   :  { %513 = vmatprep.subr.bf16.mxu0 %v1192_v34 }
  0x6f   :  { %514 = vmatpush1.bf16.msra.mxu0 %v1190_v35 }
  0x70   :  { %515 = vmatprep.subr.bf16.mxu0 %v1195_v36 }
  0x73   :  { %516 = vmatpush1.bf16.msra.mxu0 %v1193_v37 }
  0x74   :  { %517 = vmatprep.subr.bf16.mxu0 %v1198_v38 }
  0x77   :  { %518 = vmatpush1.bf16.msra.mxu0 %v1196_v39 }
  0x78   :  { %519 = vmatprep.subr.bf16.mxu0 %v1201_v40 }
  0x7b   :  { %520 = vmatpush1.bf16.msra.mxu0 %v1199_v41 }
  0x7c   :  { %521 = vmatprep.subr.bf16.mxu0 %v1204_v42 }
  0x7f   :  { %522 = vmatpush1.bf16.msra.mxu0 %v1202_v43 }
  0x82   :  { %524 = vmatmul.mubr.bf16.vlgmr.msra.gmra.mrb[0].mxu0 %v52_v44 }
 0x155   :  { %v525_v55 = vpop.f32.mrb[0].mxu0 }
 0x156   :  { %v1101_v56 = vadd.f32 %v525_v55, %v123_v53  ;;  %v527_v57 = vpop.f32.mrb[1].mxu0 }
 0x157   :  { %v1102_v58 = vadd.f32 %v527_v57, %v127_v54  ;;  %v529_v59 = vpop.f32.mrb[2].mxu0 }
 0x158   :  { %v532_v60 = vmax.f32 %v1101_v56, 0.0  ;;  %v530_v61 = vpop.f32.mrb[3].mxu0 }
 0x159   :  { %v533_v62 = vmax.f32 %v1102_v58, 0.0 }
 0x15a   :  { %v534_v1 = vpack.c.bf16 %v532_v60, %v532_v60 }
 0x15b   :  { %v535_v63 = vpack.c.bf16 %v533_v62, %v533_v62 }
 0x15d   :  { %772 = vmatprep.mubr.bf16.mxu1 %v535_v63 }
 0x15e   :  { %773 = vmatmul.mubr.bf16.vlgmr.msra.gmra.mrb[0].mxu1 %v534_v1 }
 0x15f   :  { %1080 = vmatpush3.bf16.msra.mxu1 %v1254_v0 }
 0x160   :  { %1081 = vmatprep.subr.bf16.mxu1 %v1255_v13 }
 0x163   :  { %1082 = vmatpush3.bf16.msra.mxu1 %v1256_v2 }
 0x164   :  { %1083 = vmatprep.subr.bf16.mxu1 %v1257_v3 }
 0x167   :  { %1084 = vmatpush3.bf16.msra.mxu1 %v1258_v4 }
 0x168   :  { %1085 = vmatprep.subr.bf16.mxu1 %v1259_v5 }
 0x16b   :  { %1086 = vmatpush3.bf16.msra.mxu1 %v1260_v6 }
 0x16c   :  { %1087 = vmatprep.subr.bf16.mxu1 %v1261_v7 }
 0x16f   :  { %1088 = vmatpush3.bf16.msra.mxu1 %v1262_v8 }
 0x170   :  { %1089 = vmatprep.subr.bf16.mxu1 %v1263_v9 }
 0x173   :  { %1090 = vmatpush3.bf16.msra.mxu1 %v1264_v10 }
 0x174   :  { %1091 = vmatprep.subr.bf16.mxu1 %v1265_v11 }
 0x177   :  { %1092 = vmatpush3.bf16.msra.mxu1 %v1266_v12 }
 0x178   :  { %1093 = vmatprep.subr.bf16.mxu1 %v1267_v14 }
 0x17b   :  { %1094 = vmatpush3.bf16.msra.mxu1 %v1268_v15 }
 0x231   :  { %v774_v19 = vpop.f32.mrb[0].mxu1 }
 0x232   :  { %v775_v20 = vadd.f32 %v774_v19, %v573_v17  ;;  %v776_v21 = vpop.f32.mrb[1].mxu1 }
 0x233   :  { %v777_v22 = vadd.f32 %v776_v21, %v577_v18  ;;  %v778_v23 = vpop.f32.mrb[2].mxu1 }
 0x234   :  { %v781_v24 = vmax.f32 %v775_v20, 0.0  ;;  %v779_v25 = vpop.f32.mrb[3].mxu1 }
 0x235   :  { %v782_v26 = vmax.f32 %v777_v22, 0.0 }
 0x236   :  { %v783_v28 = vpack.c.bf16 %v781_v24, %v781_v24 }
 0x237   :  { %v784_v27 = vpack.c.bf16 %v782_v26, %v782_v26 }
 0x239   :  { %952 = vmatprep.mubr.bf16.mxu1 %v784_v27 }
 0x23a   :  { %953 = vmatmul.mubr.bf16.vlgmr.msra.gmra.mrb[4].mxu1 %v783_v28 }
 0x30d   :  { %v1095_v29 = vpop.f32.mrb[4].mxu1 }
 0x30e   :  { %v1096_v31 = vpop.f32.mrb[5].mxu1 }
 0x30f   :  { %v1097_v32 = vadd.f32 %v1096_v31, %v1095_v29  ;;  %v1098_v33 = vpop.f32.mrb[6].mxu1 }
 0x310   :  { %v1099_v34 = vpop.f32.mrb[7].mxu1 }
 0x311   :  { %v955_v35 = vadd.f32 %v1097_v32, %v1062_v30 }
 0x313   :  { %961 = vst.msk [vmem:[%s1685_s7] sm:$0x3] %vm960_vm0, %v955_v35 }

</bundles_post_ra>
